<compile_context>
chip_gen: v7x
topology: tpu7x:2x2x1
jax: 0.10.0
libtpu: 0.0.40
codegen_flags: <defaults>
</compile_context>

<pallas_src>
import math

import numpy as np
import jax
import jax.numpy as jnp
from jax import lax
from jax.experimental import pallas as pl
from jax.experimental.pallas import tpu as pltpu

jax.config.update("jax_default_matmul_precision", "highest")


def _round_up(v, m):
    return -(-v // m) * m


def _adaptive_bounds(in_size, out_size):
    # PyTorch AdaptiveMaxPool2d window i = [floor(i*in/out), ceil((i+1)*in/out))
    return [((i * in_size) // out_size, -(-((i + 1) * in_size) // out_size))
            for i in range(out_size)]


def _build_conv_matrix(w, w_in, stride=1):
    """Toeplitz-style matrix T (kH*C_in*(w_in*stride), C_out*w_out) so one whole conv
    layer is `patches @ T`, where `patches` is the H-direction im2col of the previous
    activation kept in its WIDE post-shift-max layout (physical width w_in*stride,
    only every `stride`-th column meaningful).  The previous layer's adaptive-W-pool
    selection is folded in as zero rows, and the module's right W-pad (kH-1 zero
    columns) is folded in by omitting those (zero-valued) input rows."""
    c_out, c_in, kH, kW = w.shape
    w_wide = w_in * stride
    w_out = w_in + kH - kW                      # module quirk: W right-padded by kH-1
    K = kH * c_in * w_wide
    N = c_out * w_out
    k_idx = np.arange(K)
    dy = k_idx // (c_in * w_wide)
    ci = (k_idx // w_wide) % c_in
    jw = k_idx % w_wide
    live = (jw % stride == 0)
    j = jw // stride
    n_idx = np.arange(N)
    co = n_idx // w_out
    jo = n_idx % w_out
    dx = j[:, None] - jo[None, :]               # (K, N)
    valid = live[:, None] & (dx >= 0) & (dx < kW)
    dxc = np.clip(dx, 0, kW - 1)
    t = w[co[None, :], ci[:, None], dy[:, None], dxc]       # gather (K, N)
    return jnp.where(jnp.asarray(valid), t, 0.0).astype(jnp.float32)


def _build_head_w1(w1, c, ph, pw, w_phys, starts):
    """Dense W1 (out, c*ph*pw) in torch's (c, h, w) flatten order, re-laid out to the
    kernel's (h, c, w_phys) WIDE feature order with the last layer's W-pool selection
    folded in (zero rows for never-selected wide columns)."""
    o = w1.shape[0]
    w1_hcw = jnp.transpose(w1.reshape(o, c, ph, pw), (2, 1, 3, 0))   # (ph, c, pw, o)
    out = jnp.zeros((ph, c, w_phys, o), jnp.float32)
    out = out.at[:, :, np.asarray(starts), :].set(w1_hcw.astype(jnp.float32))
    return out.reshape(ph * c * w_phys, o)


def _shifted_left(x, k, size):
    """Value at lane j becomes x[..., (j + k) % size].  Wrapped lanes only ever land
    on columns the fused downstream (zero) weight rows ignore, so wrap is harmless."""
    if size % 128 == 0:
        return pltpu.roll(x, shift=size - k, axis=2)   # XLU rotate (free vex slot)
    return jnp.concatenate([x[:, :, k:], x[:, :, :k]], axis=2)


def _make_kernel(plan, bt, ph_last):
    n_conv_refs = 2 * len(plan)

    def kernel(*refs):
        q_ref, d_ref = refs[0], refs[1]
        conv_refs = refs[2:2 + n_conv_refs]
        w1_ref, b1_ref, w2_ref, b2_ref, w3_ref, out_ref = refs[2 + n_conv_refs:]

        # --- CosineMatrixAttention: rsqrt row norms, batched Q @ D^T on the MXU ---
        eps = jnp.float32(1e-13)                 # tiny_value_of_dtype(float32)
        q = q_ref[...]                           # (bt, Lq + pad_h0, E); pad rows = 0
        d = d_ref[...]                           # (bt, Ld, E)
        q_inv = lax.rsqrt(jnp.sum(q * q, axis=-1, keepdims=True) + eps * eps)
        d_inv = lax.rsqrt(jnp.sum(d * d, axis=-1, keepdims=True) + eps * eps)
        x = jnp.einsum("bqe,bde->bqd", q * q_inv, d * d_inv,
                       preferred_element_type=jnp.float32)   # (bt, H0_padded, Ld)

        for li, p in enumerate(plan):
            t_ref, b_ref = conv_refs[2 * li], conv_refs[2 * li + 1]
            kH, h_out, c_out, w_out = p["kH"], p["h_out"], p["c_out"], p["w_out"]
            N = c_out * w_out
            K = kH * p["c_in"] * p["w_phys_in"]

            # H-direction im2col: the input already carries its bottom zero-pad rows.
            patches = jnp.concatenate(
                [x[:, dy:dy + h_out, :] for dy in range(kH)], axis=2)  # (bt,h_out,K)
            h_pad8 = _round_up(h_out, 8)
            if h_pad8 != h_out:                  # keep the fold-to-2D sublane aligned
                patches = jnp.concatenate(
                    [patches, jnp.zeros((bt, h_pad8 - h_out, K), jnp.float32)],
                    axis=1)

            # Conv2d + bias + ReLU: ONE 2-D MXU matmul with M = bt * h_out.
            y = jnp.dot(patches.reshape(bt * h_pad8, K), t_ref[...],
                        preferred_element_type=jnp.float32)           # (bt*h, N)
            y = jnp.maximum(y + b_ref[...], 0.0).reshape(bt, h_pad8, N)
            if h_pad8 != h_out:
                y = y[:, :h_out, :]

            # Adaptive max pool over H (sublane reductions); the NEXT layer's bottom
            # H zero-pad rows are appended inside the same concat for free.
            if p["ph"] == h_out:
                rows = [y]
            else:
                rows = [jnp.max(y[:, ys:ye, :], axis=1, keepdims=True)
                        for (ys, ye) in _adaptive_bounds(h_out, p["ph"])]
            if p["next_pad"] > 0:
                rows.append(jnp.zeros((bt, p["next_pad"], N), jnp.float32))
            hp = jnp.concatenate(rows, axis=1) if len(rows) > 1 else rows[0]

            # Adaptive max pool over W: shift-max along lanes.  The window maxima land
            # on the window-start columns and stay in that WIDE layout — the 0/1
            # selection is folded into the next layer's Toeplitz matrix / W1.
            if p["w_uniform"]:
                z = hp
                for k in range(1, p["ww"]):
                    z = jnp.maximum(z, _shifted_left(hp, k, N))
                x = z
            else:
                # general (non-uniform window) fallback: compact per-window reductions
                x = jnp.concatenate(
                    [jnp.max(hp[:, :, c * w_out + xs: c * w_out + xe],
                             axis=2, keepdims=True)
                     for c in range(c_out)
                     for (xs, xe) in _adaptive_bounds(w_out, p["pw"])],
                    axis=2)

        # --- flatten (h, c, w) lane-dense, pad to 8 sublanes, fused 2-D MLP head ---
        flat = jnp.concatenate([x[:, i:i + 1, :] for i in range(ph_last)],
                               axis=2)                            # (bt, 1, feat)
        feat = flat.shape[2]
        flat = jnp.concatenate(
            [flat, jnp.zeros((bt, 7, feat), jnp.float32)], axis=1)   # (bt, 8, feat)
        flat = flat.reshape(bt * 8, feat)     # rows 1..7 of each group are dummies
        h1 = jnp.maximum(
            jnp.dot(flat, w1_ref[...], preferred_element_type=jnp.float32)
            + b1_ref[...], 0.0)
        h2 = jnp.maximum(
            jnp.dot(h1, w2_ref[...], preferred_element_type=jnp.float32)
            + b2_ref[...], 0.0)
        o = jnp.dot(h2, w3_ref[...], preferred_element_type=jnp.float32)  # (bt*8, 1)
        out_ref[...] = o.reshape(bt, 8, 1)    # wrapper reads [:, 0, 0]

    return kernel


def _choose_bt(b):
    """Batch tile: multiple of 8, up to 128 rows, capped at ceil(b/2) once the batch
    is big enough so the grid keeps >= 2 parallel steps (v7x megacore)."""
    if b <= 8:
        return 8
    return max(8, min(128, _round_up(-(-b // 2), 8)))


def match_pyramid_forward(q_tokens, d_tokens, params, cfg):
    conv_output_size = cfg["conv_output_size"]
    conv_kernel_size = cfg["conv_kernel_size"]
    adaptive_pooling_size = cfg["adaptive_pooling_size"]
    n_layers = len(conv_output_size)

    # Embedding lookup + pad/OOV masking (glue, plain JAX).
    emb = params["emb"]
    q_mask = (q_tokens > 0).astype(jnp.float32)
    d_mask = (d_tokens > 0).astype(jnp.float32)
    q_emb = jnp.take(emb, q_tokens, axis=0) * q_mask[..., None]
    d_emb = jnp.take(emb, d_tokens, axis=0) * d_mask[..., None]

    b, lq, e = q_emb.shape
    ld = d_emb.shape[1]

    # Layer 0's bottom H pad (ConstantPad2d bottom = kW0-1) folded into the query:
    # zero query rows give zero cosine rows, so the kernel never pads layer 0 itself.
    pad_h0 = conv_kernel_size[0][1] - 1
    if pad_h0 > 0:
        q_emb = jnp.concatenate(
            [q_emb, jnp.zeros((b, pad_h0, e), jnp.float32)], axis=1)
    lq_pad = lq + pad_h0

    # Batch tiling (multiple of 8, >= 2 grid steps when the batch allows).
    bt = _choose_bt(b)
    b_pad = _round_up(b, bt)
    if b_pad != b:
        q_emb = jnp.concatenate(
            [q_emb, jnp.zeros((b_pad - b, lq_pad, e), jnp.float32)], axis=0)
        d_emb = jnp.concatenate(
            [d_emb, jnp.zeros((b_pad - b, ld, e), jnp.float32)], axis=0)

    # Per-layer static plan + precomputed fused weight matrices (Toeplitz conv with the
    # previous layer's W-pool selection folded in, plus per-column bias).
    plan, conv_inputs, conv_specs = [], [], []
    h_log, w_log = lq, ld           # logical (unpadded / pooled) input height & width
    c_in, stride_in, w_phys_in = 1, 1, ld
    for li in range(n_layers):
        kH, kW = conv_kernel_size[li]
        c_out = conv_output_size[li]
        ph, pw = adaptive_pooling_size[li]
        h_out = h_log + kW - kH          # module's swapped-pad quirk (faithful)
        w_out = w_log + kH - kW

        t_mat = _build_conv_matrix(params["conv_w"][li], w_log, stride_in)
        bias = jnp.repeat(params["conv_b"][li].astype(jnp.float32), w_out)[None, :]
        conv_inputs += [t_mat, bias]
        conv_specs += [pl.BlockSpec(t_mat.shape, lambda i: (0, 0)),
                       pl.BlockSpec(bias.shape, lambda i: (0, 0))]

        w_uniform = (w_out % pw == 0)
        ww = (w_out // pw) if w_uniform else 1
        next_pad = conv_kernel_size[li + 1][1] - 1 if li + 1 < n_layers else 0
        plan.append(dict(kH=kH, c_in=c_in, w_phys_in=w_phys_in, c_out=c_out,
                         h_out=h_out, w_out=w_out, ph=ph, pw=pw, ww=ww,
                         w_uniform=w_uniform, next_pad=next_pad))

        h_log, c_in = ph, c_out
        if w_uniform:
            stride_in, w_phys_in, w_log = ww, w_out, pw
        else:
            stride_in, w_phys_in, w_log = 1, pw, pw

    # Dense head: last layer's W-pool selection folded into W1, and W1's columns
    # permuted from torch's (c, h, w) flatten order to the kernel's (h, c, w_wide).
    last = plan[-1]
    c_last, (ph_l, pw_l) = conv_output_size[-1], adaptive_pooling_size[-1]
    w_phys_l = last["w_out"] if last["w_uniform"] else last["pw"]
    starts = ([p * last["ww"] for p in range(pw_l)] if last["w_uniform"]
              else list(range(pw_l)))
    head_inputs = [
        _build_head_w1(params["w1"], c_last, ph_l, pw_l, w_phys_l, starts),
        params["b1"].reshape(1, -1).astype(jnp.float32),
        params["w2"].T.astype(jnp.float32),
        params["b2"].reshape(1, -1).astype(jnp.float32),
        params["w3"].T.astype(jnp.float32),
    ]
    head_specs = [pl.BlockSpec(a.shape, lambda i: (0, 0)) for a in head_inputs]

    kernel = _make_kernel(plan, bt, ph_l)

    in_specs = ([pl.BlockSpec((bt, lq_pad, e), lambda i: (i, 0, 0)),
                 pl.BlockSpec((bt, ld, e), lambda i: (i, 0, 0))]
                + conv_specs + head_specs)

    out = pl.pallas_call(
        kernel,
        out_shape=jax.ShapeDtypeStruct((b_pad, 8, 1), jnp.float32),
        grid=(b_pad // bt,),
        in_specs=in_specs,
        out_specs=pl.BlockSpec((bt, 8, 1), lambda i: (i, 0, 0)),
        compiler_params=pltpu.CompilerParams(dimension_semantics=("parallel",)),
    )(q_emb, d_emb, *conv_inputs, *head_inputs)

    return out[:b, 0, 0]                                 # torch.squeeze(dense_out, 1)


# --------------------------- pure-JAX reference ----------------------------

def _adaptive_max_pool_ref(x, out_size):
    _, _, h, w = x.shape
    p_h, p_w = out_size
    rows = []
    for (ys, ye) in _adaptive_bounds(h, p_h):
        cols = []
        for (xs, xe) in _adaptive_bounds(w, p_w):
            cols.append(jnp.max(x[:, :, ys:ye, xs:xe], axis=(2, 3), keepdims=True))
        rows.append(jnp.concatenate(cols, axis=3))
    return jnp.concatenate(rows, axis=2)


def reference_forward(q_tokens, d_tokens, params, cfg):
    emb = params["emb"]
    q_mask = (q_tokens > 0).astype(jnp.float32)
    d_mask = (d_tokens > 0).astype(jnp.float32)
    qe = jnp.take(emb, q_tokens, axis=0) * q_mask[..., None]
    de = jnp.take(emb, d_tokens, axis=0) * d_mask[..., None]
    eps = 1e-13
    qn = qe / (jnp.sqrt(jnp.sum(qe * qe, -1, keepdims=True)) + eps)
    dn = de / (jnp.sqrt(jnp.sum(de * de, -1, keepdims=True)) + eps)
    cos = jnp.einsum("bqe,bde->bqd", qn, dn)
    x = cos[:, None, :, :]
    for li in range(len(cfg["conv_output_size"])):
        kH, kW = cfg["conv_kernel_size"][li]
        x = jnp.pad(x, ((0, 0), (0, 0), (0, kW - 1), (0, kH - 1)))
        x = lax.conv_general_dilated(
            x, params["conv_w"][li], (1, 1), "VALID",
            dimension_numbers=("NCHW", "OIHW", "NCHW"))
        x = x + params["conv_b"][li][None, :, None, None]
        x = jnp.maximum(x, 0.0)
        x = _adaptive_max_pool_ref(x, cfg["adaptive_pooling_size"][li])
    flat = x.reshape(x.shape[0], -1)
    h = jnp.maximum(flat @ params["w1"].T + params["b1"], 0.0)
    h = jnp.maximum(h @ params["w2"].T + params["b2"], 0.0)
    return (h @ params["w3"].T)[:, 0]


# --------------------------------- main -------------------------------------

if __name__ == "__main__":
    B, LQ, LD = 2, 8, 16
    VOCAB, EMB = 64, 32
    cfg = dict(
        conv_output_size=[4, 8],
        conv_kernel_size=[(3, 3), (3, 3)],
        adaptive_pooling_size=[(8, 8), (4, 4)],
    )

    key = jax.random.PRNGKey(0)
    keys = jax.random.split(key, 12)
    ki = 0

    params = {}
    params["emb"] = jax.random.normal(keys[ki], (VOCAB, EMB), jnp.float32) * 0.1
    ki += 1

    conv_w, conv_b = [], []
    c_in = 1
    for c_out, (kh, kw) in zip(cfg["conv_output_size"], cfg["conv_kernel_size"]):
        bound = 1.0 / math.sqrt(c_in * kh * kw)
        conv_w.append(jax.random.uniform(keys[ki], (c_out, c_in, kh, kw),
                                         jnp.float32, -bound, bound)); ki += 1
        conv_b.append(jax.random.uniform(keys[ki], (c_out,),
                                         jnp.float32, -bound, bound)); ki += 1
        c_in = c_out
    params["conv_w"], params["conv_b"] = conv_w, conv_b

    p_h, p_w = cfg["adaptive_pooling_size"][-1]
    feat_dim = cfg["conv_output_size"][-1] * p_h * p_w
    params["w1"] = jax.random.uniform(keys[ki], (100, feat_dim), jnp.float32,
                                      -0.014, 0.014); ki += 1        # module init
    params["b1"] = jnp.zeros((100,), jnp.float32)                    # module init
    params["w2"] = jax.random.uniform(keys[ki], (10, 100), jnp.float32, -0.1, 0.1); ki += 1
    params["b2"] = jax.random.uniform(keys[ki], (10,), jnp.float32, -0.1, 0.1); ki += 1
    params["w3"] = jax.random.uniform(keys[ki], (1, 10), jnp.float32, -0.3, 0.3); ki += 1

    q_tokens = jax.random.randint(keys[ki], (B, LQ), 0, VOCAB, dtype=jnp.int32); ki += 1
    d_tokens = jax.random.randint(keys[ki], (B, LD), 0, VOCAB, dtype=jnp.int32); ki += 1

    out = jax.block_until_ready(match_pyramid_forward(q_tokens, d_tokens, params, cfg))
    ref = jax.block_until_ready(reference_forward(q_tokens, d_tokens, params, cfg))
    np.testing.assert_allclose(np.asarray(out), np.asarray(ref), rtol=1e-2, atol=1e-3)

    print("KERNEL_OK")
</pallas_src>

<mosaic_0001>
module attributes {stable_mosaic.version = 11 : i64} {
  func.func @kernel(%arg0: i32, %arg1: memref<8x10x32xf32, #tpu.memory_space<vmem>>, %arg2: memref<8x16x32xf32, #tpu.memory_space<vmem>>, %arg3: memref<48x64xf32, #tpu.memory_space<vmem>>, %arg4: memref<1x64xf32, #tpu.memory_space<vmem>>, %arg5: memref<192x64xf32, #tpu.memory_space<vmem>>, %arg6: memref<1x64xf32, #tpu.memory_space<vmem>>, %arg7: memref<256x100xf32, #tpu.memory_space<vmem>>, %arg8: memref<1x100xf32, #tpu.memory_space<vmem>>, %arg9: memref<100x10xf32, #tpu.memory_space<vmem>>, %arg10: memref<1x10xf32, #tpu.memory_space<vmem>>, %arg11: memref<10x1xf32, #tpu.memory_space<vmem>>, %arg12: memref<8x8x1xf32, #tpu.memory_space<vmem>>) attributes {dimension_semantics = [#tpu.dimension_semantics<parallel>], iteration_bounds = array<i64: 1>, scalar_prefetch = 0 : i64, scratch_operands = 0 : i64, tpu.core_type = #tpu.core_type<tc>, window_params = [{transform_indices = @transform_0, window_bounds = array<i64: 8, 10, 32>}, {transform_indices = @transform_1, window_bounds = array<i64: 8, 16, 32>}, {pipeline_mode = #tpu.pipeline_mode<synchronous>, transform_indices = @transform_2, window_bounds = array<i64: 48, 64>}, {pipeline_mode = #tpu.pipeline_mode<synchronous>, transform_indices = @transform_3, window_bounds = array<i64: 1, 64>}, {pipeline_mode = #tpu.pipeline_mode<synchronous>, transform_indices = @transform_4, window_bounds = array<i64: 192, 64>}, {pipeline_mode = #tpu.pipeline_mode<synchronous>, transform_indices = @transform_5, window_bounds = array<i64: 1, 64>}, {pipeline_mode = #tpu.pipeline_mode<synchronous>, transform_indices = @transform_6, window_bounds = array<i64: 256, 100>}, {pipeline_mode = #tpu.pipeline_mode<synchronous>, transform_indices = @transform_7, window_bounds = array<i64: 1, 100>}, {pipeline_mode = #tpu.pipeline_mode<synchronous>, transform_indices = @transform_8, window_bounds = array<i64: 100, 10>}, {pipeline_mode = #tpu.pipeline_mode<synchronous>, transform_indices = @transform_9, window_bounds = array<i64: 1, 10>}, {pipeline_mode = #tpu.pipeline_mode<synchronous>, transform_indices = @transform_10, window_bounds = array<i64: 10, 1>}, {transform_indices = @transform_11, window_bounds = array<i64: 8, 8, 1>}]} {
    %c0 = arith.constant 0 : index
    %c0_0 = arith.constant 0 : index
    %c0_1 = arith.constant 0 : index
    %0 = vector.load %arg1[%c0, %c0_0, %c0_1] : memref<8x10x32xf32, #tpu.memory_space<vmem>>, vector<8x10x32xf32>
    %c0_2 = arith.constant 0 : index
    %c0_3 = arith.constant 0 : index
    %c0_4 = arith.constant 0 : index
    %1 = vector.load %arg2[%c0_2, %c0_3, %c0_4] : memref<8x16x32xf32, #tpu.memory_space<vmem>>, vector<8x16x32xf32>
    %2 = arith.mulf %0, %0 : vector<8x10x32xf32>
    %cst = arith.constant dense<0.000000e+00> : vector<8x10xf32>
    %3 = vector.multi_reduction <add>, %2, %cst [2] : vector<8x10x32xf32> to vector<8x10xf32>
    %4 = vector.shape_cast %3 : vector<8x10xf32> to vector<8x10x1xf32>
    %cst_5 = arith.constant 9.99999982E-14 : f32
    %cst_6 = arith.constant 9.99999982E-14 : f32
    %5 = arith.mulf %cst_5, %cst_6 : f32
    %6 = vector.broadcast %5 : f32 to vector<8x10x1xf32>
    %7 = arith.addf %4, %6 : vector<8x10x1xf32>
    %8 = math.rsqrt %7 : vector<8x10x1xf32>
    %9 = arith.mulf %1, %1 : vector<8x16x32xf32>
    %cst_7 = arith.constant dense<0.000000e+00> : vector<8x16xf32>
    %10 = vector.multi_reduction <add>, %9, %cst_7 [2] : vector<8x16x32xf32> to vector<8x16xf32>
    %11 = vector.shape_cast %10 : vector<8x16xf32> to vector<8x16x1xf32>
    %cst_8 = arith.constant 9.99999982E-14 : f32
    %cst_9 = arith.constant 9.99999982E-14 : f32
    %12 = arith.mulf %cst_8, %cst_9 : f32
    %13 = vector.broadcast %12 : f32 to vector<8x16x1xf32>
    %14 = arith.addf %11, %13 : vector<8x16x1xf32>
    %15 = math.rsqrt %14 : vector<8x16x1xf32>
    %16 = vector.broadcast %8 : vector<8x10x1xf32> to vector<8x10x32xf32>
    %17 = arith.mulf %0, %16 : vector<8x10x32xf32>
    %18 = vector.broadcast %15 : vector<8x16x1xf32> to vector<8x16x32xf32>
    %19 = arith.mulf %1, %18 : vector<8x16x32xf32>
    "tpu.trace_start"() <{level = 10 : i32, message = "bqe,bde->bqd"}> : () -> ()
    %cst_10 = arith.constant dense<0.000000e+00> : vector<8x10x16xf32>
    %20 = tpu.matmul %17, %19, %cst_10 {dimension_numbers = #tpu.dot_dimension_numbers<[2], [2], [1], [1], [0, 0, 0, 1, 1, 1], [0], [0]>, precision = #tpu.contract_precision<fp32>} : vector<8x10x32xf32>, vector<8x16x32xf32>, vector<8x10x16xf32> -> vector<8x10x16xf32>
    "tpu.trace_stop"() : () -> ()
    %21 = vector.extract_strided_slice %20 {offsets = [0, 0, 0], sizes = [8, 8, 16], strides = [1, 1, 1]} : vector<8x10x16xf32> to vector<8x8x16xf32>
    %22 = vector.extract_strided_slice %20 {offsets = [0, 1, 0], sizes = [8, 8, 16], strides = [1, 1, 1]} : vector<8x10x16xf32> to vector<8x8x16xf32>
    %23 = vector.extract_strided_slice %20 {offsets = [0, 2, 0], sizes = [8, 8, 16], strides = [1, 1, 1]} : vector<8x10x16xf32> to vector<8x8x16xf32>
    %24 = tpu.concatenate %21, %22, %23 in 2 : vector<8x8x16xf32>, vector<8x8x16xf32>, vector<8x8x16xf32> -> vector<8x8x48xf32>
    %25 = vector.shape_cast %24 : vector<8x8x48xf32> to vector<64x48xf32>
    %c0_11 = arith.constant 0 : index
    %c0_12 = arith.constant 0 : index
    %26 = vector.load %arg3[%c0_11, %c0_12] : memref<48x64xf32, #tpu.memory_space<vmem>>, vector<48x64xf32>
    %cst_13 = arith.constant dense<0.000000e+00> : vector<64x64xf32>
    %27 = tpu.matmul %25, %26, %cst_13 {dimension_numbers = #tpu.dot_dimension_numbers<[1], [0], [0], [1], [0, 0, 1, 1], [], []>, precision = #tpu.contract_precision<fp32>} : vector<64x48xf32>, vector<48x64xf32>, vector<64x64xf32> -> vector<64x64xf32>
    %c0_14 = arith.constant 0 : index
    %c0_15 = arith.constant 0 : index
    %28 = vector.load %arg4[%c0_14, %c0_15] : memref<1x64xf32, #tpu.memory_space<vmem>>, vector<1x64xf32>
    %29 = vector.broadcast %28 : vector<1x64xf32> to vector<64x64xf32>
    %30 = arith.addf %27, %29 : vector<64x64xf32>
    %cst_16 = arith.constant 0.000000e+00 : f32
    %31 = vector.broadcast %cst_16 : f32 to vector<64x64xf32>
    %32 = arith.maximumf %30, %31 : vector<64x64xf32>
    %33 = vector.shape_cast %32 : vector<64x64xf32> to vector<8x8x64xf32>
    %cst_17 = arith.constant 0.000000e+00 : f32
    %34 = vector.broadcast %cst_17 : f32 to vector<8x2x64xf32>
    %35 = tpu.concatenate %33, %34 in 1 : vector<8x8x64xf32>, vector<8x2x64xf32> -> vector<8x10x64xf32>
    %36 = vector.extract_strided_slice %35 {offsets = [0, 0, 1], sizes = [8, 10, 63], strides = [1, 1, 1]} : vector<8x10x64xf32> to vector<8x10x63xf32>
    %37 = vector.extract_strided_slice %35 {offsets = [0, 0, 0], sizes = [8, 10, 1], strides = [1, 1, 1]} : vector<8x10x64xf32> to vector<8x10x1xf32>
    %38 = tpu.concatenate %36, %37 in 2 : vector<8x10x63xf32>, vector<8x10x1xf32> -> vector<8x10x64xf32>
    %39 = arith.maximumf %35, %38 : vector<8x10x64xf32>
    %40 = vector.extract_strided_slice %39 {offsets = [0, 0, 0], sizes = [8, 8, 64], strides = [1, 1, 1]} : vector<8x10x64xf32> to vector<8x8x64xf32>
    %41 = vector.extract_strided_slice %39 {offsets = [0, 1, 0], sizes = [8, 8, 64], strides = [1, 1, 1]} : vector<8x10x64xf32> to vector<8x8x64xf32>
    %42 = vector.extract_strided_slice %39 {offsets = [0, 2, 0], sizes = [8, 8, 64], strides = [1, 1, 1]} : vector<8x10x64xf32> to vector<8x8x64xf32>
    %43 = tpu.concatenate %40, %41, %42 in 2 : vector<8x8x64xf32>, vector<8x8x64xf32>, vector<8x8x64xf32> -> vector<8x8x192xf32>
    %44 = vector.shape_cast %43 : vector<8x8x192xf32> to vector<64x192xf32>
    %c0_18 = arith.constant 0 : index
    %c0_19 = arith.constant 0 : index
    %45 = vector.load %arg5[%c0_18, %c0_19] : memref<192x64xf32, #tpu.memory_space<vmem>>, vector<192x64xf32>
    %cst_20 = arith.constant dense<0.000000e+00> : vector<64x64xf32>
    %46 = tpu.matmul %44, %45, %cst_20 {dimension_numbers = #tpu.dot_dimension_numbers<[1], [0], [0], [1], [0, 0, 1, 1], [], []>, precision = #tpu.contract_precision<fp32>} : vector<64x192xf32>, vector<192x64xf32>, vector<64x64xf32> -> vector<64x64xf32>
    %c0_21 = arith.constant 0 : index
    %c0_22 = arith.constant 0 : index
    %47 = vector.load %arg6[%c0_21, %c0_22] : memref<1x64xf32, #tpu.memory_space<vmem>>, vector<1x64xf32>
    %48 = vector.broadcast %47 : vector<1x64xf32> to vector<64x64xf32>
    %49 = arith.addf %46, %48 : vector<64x64xf32>
    %cst_23 = arith.constant 0.000000e+00 : f32
    %50 = vector.broadcast %cst_23 : f32 to vector<64x64xf32>
    %51 = arith.maximumf %49, %50 : vector<64x64xf32>
    %52 = vector.shape_cast %51 : vector<64x64xf32> to vector<8x8x64xf32>
    %53 = vector.extract_strided_slice %52 {offsets = [0, 0, 0], sizes = [8, 2, 64], strides = [1, 1, 1]} : vector<8x8x64xf32> to vector<8x2x64xf32>
    %cst_24 = arith.constant dense<0xFF800000> : vector<8x64xf32>
    %54 = vector.multi_reduction <maximumf>, %53, %cst_24 [1] : vector<8x2x64xf32> to vector<8x64xf32>
    %55 = vector.shape_cast %54 : vector<8x64xf32> to vector<8x1x64xf32>
    %56 = vector.extract_strided_slice %52 {offsets = [0, 2, 0], sizes = [8, 2, 64], strides = [1, 1, 1]} : vector<8x8x64xf32> to vector<8x2x64xf32>
    %cst_25 = arith.constant dense<0xFF800000> : vector<8x64xf32>
    %57 = vector.multi_reduction <maximumf>, %56, %cst_25 [1] : vector<8x2x64xf32> to vector<8x64xf32>
    %58 = vector.shape_cast %57 : vector<8x64xf32> to vector<8x1x64xf32>
    %59 = vector.extract_strided_slice %52 {offsets = [0, 4, 0], sizes = [8, 2, 64], strides = [1, 1, 1]} : vector<8x8x64xf32> to vector<8x2x64xf32>
    %cst_26 = arith.constant dense<0xFF800000> : vector<8x64xf32>
    %60 = vector.multi_reduction <maximumf>, %59, %cst_26 [1] : vector<8x2x64xf32> to vector<8x64xf32>
    %61 = vector.shape_cast %60 : vector<8x64xf32> to vector<8x1x64xf32>
    %62 = vector.extract_strided_slice %52 {offsets = [0, 6, 0], sizes = [8, 2, 64], strides = [1, 1, 1]} : vector<8x8x64xf32> to vector<8x2x64xf32>
    %cst_27 = arith.constant dense<0xFF800000> : vector<8x64xf32>
    %63 = vector.multi_reduction <maximumf>, %62, %cst_27 [1] : vector<8x2x64xf32> to vector<8x64xf32>
    %64 = vector.shape_cast %63 : vector<8x64xf32> to vector<8x1x64xf32>
    %65 = tpu.concatenate %55, %58, %61, %64 in 1 : vector<8x1x64xf32>, vector<8x1x64xf32>, vector<8x1x64xf32>, vector<8x1x64xf32> -> vector<8x4x64xf32>
    %66 = vector.extract_strided_slice %65 {offsets = [0, 0, 1], sizes = [8, 4, 63], strides = [1, 1, 1]} : vector<8x4x64xf32> to vector<8x4x63xf32>
    %67 = vector.extract_strided_slice %65 {offsets = [0, 0, 0], sizes = [8, 4, 1], strides = [1, 1, 1]} : vector<8x4x64xf32> to vector<8x4x1xf32>
    %68 = tpu.concatenate %66, %67 in 2 : vector<8x4x63xf32>, vector<8x4x1xf32> -> vector<8x4x64xf32>
    %69 = arith.maximumf %65, %68 : vector<8x4x64xf32>
    %70 = vector.extract_strided_slice %69 {offsets = [0, 0, 0], sizes = [8, 1, 64], strides = [1, 1, 1]} : vector<8x4x64xf32> to vector<8x1x64xf32>
    %71 = vector.extract_strided_slice %69 {offsets = [0, 1, 0], sizes = [8, 1, 64], strides = [1, 1, 1]} : vector<8x4x64xf32> to vector<8x1x64xf32>
    %72 = vector.extract_strided_slice %69 {offsets = [0, 2, 0], sizes = [8, 1, 64], strides = [1, 1, 1]} : vector<8x4x64xf32> to vector<8x1x64xf32>
    %73 = vector.extract_strided_slice %69 {offsets = [0, 3, 0], sizes = [8, 1, 64], strides = [1, 1, 1]} : vector<8x4x64xf32> to vector<8x1x64xf32>
    %74 = tpu.concatenate %70, %71, %72, %73 in 2 : vector<8x1x64xf32>, vector<8x1x64xf32>, vector<8x1x64xf32>, vector<8x1x64xf32> -> vector<8x1x256xf32>
    %cst_28 = arith.constant 0.000000e+00 : f32
    %75 = vector.broadcast %cst_28 : f32 to vector<8x7x256xf32>
    %76 = tpu.concatenate %74, %75 in 1 : vector<8x1x256xf32>, vector<8x7x256xf32> -> vector<8x8x256xf32>
    %77 = vector.shape_cast %76 : vector<8x8x256xf32> to vector<64x256xf32>
    %c0_29 = arith.constant 0 : index
    %c0_30 = arith.constant 0 : index
    %78 = vector.load %arg7[%c0_29, %c0_30] : memref<256x100xf32, #tpu.memory_space<vmem>>, vector<256x100xf32>
    %cst_31 = arith.constant dense<0.000000e+00> : vector<64x100xf32>
    %79 = tpu.matmul %77, %78, %cst_31 {dimension_numbers = #tpu.dot_dimension_numbers<[1], [0], [0], [1], [0, 0, 1, 1], [], []>, precision = #tpu.contract_precision<fp32>} : vector<64x256xf32>, vector<256x100xf32>, vector<64x100xf32> -> vector<64x100xf32>
    %c0_32 = arith.constant 0 : index
    %c0_33 = arith.constant 0 : index
    %80 = vector.load %arg8[%c0_32, %c0_33] : memref<1x100xf32, #tpu.memory_space<vmem>>, vector<1x100xf32>
    %81 = vector.broadcast %80 : vector<1x100xf32> to vector<64x100xf32>
    %82 = arith.addf %79, %81 : vector<64x100xf32>
    %cst_34 = arith.constant 0.000000e+00 : f32
    %83 = vector.broadcast %cst_34 : f32 to vector<64x100xf32>
    %84 = arith.maximumf %82, %83 : vector<64x100xf32>
    %c0_35 = arith.constant 0 : index
    %c0_36 = arith.constant 0 : index
    %85 = vector.load %arg9[%c0_35, %c0_36] : memref<100x10xf32, #tpu.memory_space<vmem>>, vector<100x10xf32>
    %cst_37 = arith.constant dense<0.000000e+00> : vector<64x10xf32>
    %86 = tpu.matmul %84, %85, %cst_37 {dimension_numbers = #tpu.dot_dimension_numbers<[1], [0], [0], [1], [0, 0, 1, 1], [], []>, precision = #tpu.contract_precision<fp32>} : vector<64x100xf32>, vector<100x10xf32>, vector<64x10xf32> -> vector<64x10xf32>
    %c0_38 = arith.constant 0 : index
    %c0_39 = arith.constant 0 : index
    %87 = vector.load %arg10[%c0_38, %c0_39] : memref<1x10xf32, #tpu.memory_space<vmem>>, vector<1x10xf32>
    %88 = vector.broadcast %87 : vector<1x10xf32> to vector<64x10xf32>
    %89 = arith.addf %86, %88 : vector<64x10xf32>
    %cst_40 = arith.constant 0.000000e+00 : f32
    %90 = vector.broadcast %cst_40 : f32 to vector<64x10xf32>
    %91 = arith.maximumf %89, %90 : vector<64x10xf32>
    %c0_41 = arith.constant 0 : index
    %c0_42 = arith.constant 0 : index
    %92 = vector.load %arg11[%c0_41, %c0_42] : memref<10x1xf32, #tpu.memory_space<vmem>>, vector<10x1xf32>
    %cst_43 = arith.constant dense<0.000000e+00> : vector<64x1xf32>
    %93 = tpu.matmul %91, %92, %cst_43 {dimension_numbers = #tpu.dot_dimension_numbers<[1], [0], [0], [1], [0, 0, 1, 1], [], []>, precision = #tpu.contract_precision<fp32>} : vector<64x10xf32>, vector<10x1xf32>, vector<64x1xf32> -> vector<64x1xf32>
    %94 = vector.shape_cast %93 : vector<64x1xf32> to vector<8x8x1xf32>
    %c0_44 = arith.constant 0 : index
    %c0_45 = arith.constant 0 : index
    %c0_46 = arith.constant 0 : index
    %95 = vector.load %arg12[%c0_44, %c0_45, %c0_46] : memref<8x8x1xf32, #tpu.memory_space<vmem>>, vector<8x8x1xf32>
    tpu.vector_store %arg12[%c0_44, %c0_45, %c0_46], %94 {strides = array<i32>} : memref<8x8x1xf32, #tpu.memory_space<vmem>>, vector<8x8x1xf32>,
    return
  }
  func.func @transform_0(%arg0: i32) -> (i32, i32, i32) {
    %c0_i32 = arith.constant 0 : i32
    %c0_i32_0 = arith.constant 0 : i32
    %c0_i32_1 = arith.constant 0 : i32
    return %arg0, %c0_i32, %c0_i32_0 : i32, i32, i32
  }
  func.func @transform_1(%arg0: i32) -> (i32, i32, i32) {
    %c0_i32 = arith.constant 0 : i32
    %c0_i32_0 = arith.constant 0 : i32
    %c0_i32_1 = arith.constant 0 : i32
    return %arg0, %c0_i32, %c0_i32_0 : i32, i32, i32
  }
  func.func @transform_2(%arg0: i32) -> (i32, i32) {
    %c0_i32 = arith.constant 0 : i32
    %c0_i32_0 = arith.constant 0 : i32
    %c0_i32_1 = arith.constant 0 : i32
    return %c0_i32, %c0_i32_0 : i32, i32
  }
  func.func @transform_3(%arg0: i32) -> (i32, i32) {
    %c0_i32 = arith.constant 0 : i32
    %c0_i32_0 = arith.constant 0 : i32
    %c0_i32_1 = arith.constant 0 : i32
    return %c0_i32, %c0_i32_0 : i32, i32
  }
  func.func @transform_4(%arg0: i32) -> (i32, i32) {
    %c0_i32 = arith.constant 0 : i32
    %c0_i32_0 = arith.constant 0 : i32
    %c0_i32_1 = arith.constant 0 : i32
    return %c0_i32, %c0_i32_0 : i32, i32
  }
  func.func @transform_5(%arg0: i32) -> (i32, i32) {
    %c0_i32 = arith.constant 0 : i32
    %c0_i32_0 = arith.constant 0 : i32
    %c0_i32_1 = arith.constant 0 : i32
    return %c0_i32, %c0_i32_0 : i32, i32
  }
  func.func @transform_6(%arg0: i32) -> (i32, i32) {
    %c0_i32 = arith.constant 0 : i32
    %c0_i32_0 = arith.constant 0 : i32
    %c0_i32_1 = arith.constant 0 : i32
    return %c0_i32, %c0_i32_0 : i32, i32
  }
  func.func @transform_7(%arg0: i32) -> (i32, i32) {
    %c0_i32 = arith.constant 0 : i32
    %c0_i32_0 = arith.constant 0 : i32
    %c0_i32_1 = arith.constant 0 : i32
    return %c0_i32, %c0_i32_0 : i32, i32
  }
  func.func @transform_8(%arg0: i32) -> (i32, i32) {
    %c0_i32 = arith.constant 0 : i32
    %c0_i32_0 = arith.constant 0 : i32
    %c0_i32_1 = arith.constant 0 : i32
    return %c0_i32, %c0_i32_0 : i32, i32
  }
  func.func @transform_9(%arg0: i32) -> (i32, i32) {
    %c0_i32 = arith.constant 0 : i32
    %c0_i32_0 = arith.constant 0 : i32
    %c0_i32_1 = arith.constant 0 : i32
    return %c0_i32, %c0_i32_0 : i32, i32
  }
  func.func @transform_10(%arg0: i32) -> (i32, i32) {
    %c0_i32 = arith.constant 0 : i32
    %c0_i32_0 = arith.constant 0 : i32
    %c0_i32_1 = arith.constant 0 : i32
    return %c0_i32, %c0_i32_0 : i32, i32
  }
  func.func @transform_11(%arg0: i32) -> (i32, i32, i32) {
    %c0_i32 = arith.constant 0 : i32
    %c0_i32_0 = arith.constant 0 : i32
    %c0_i32_1 = arith.constant 0 : i32
    return %arg0, %c0_i32, %c0_i32_0 : i32, i32, i32
  }
}

</mosaic_0001>

<bundles_post_ra>
// kernel: tpu_custom_call.1
= control target key start
LH: loop header
LB: loop body
LE: loop exit
PB: predicated region body
PF: predicated region fallthrough
CT: control target
= control target key end

     0   :  { %vm86_vm0 = vcmask 261120   ;;  %vm90_vm1 = vcmask 254976   ;;  %vm4424_vm2 = vcmask 1046528   ;;  %vm4473_vm3 = vcmask 1045504   ;;  %s13093_s16 = smov 32   ;;  %s13096_s17 = smov 63   ;;  %s16889_s1 = inlined_call_operand.vmem [shape: f32[8,16,32], index: 1, kind: input, shape index: {}]   ;;  %s16890_s0 = inlined_call_operand.vmem [shape: f32[8,10,32], index: 0, kind: input, shape index: {}]   ;;  %s16891_s2 = inlined_call_operand.vmem [shape: f32[48,64], index: 2, kind: input, shape index: {}]   ;;  %s16892_s3 = inlined_call_operand.vmem [shape: f32[1,64], index: 3, kind: input, shape index: {}]   ;;  %s16893_s4 = inlined_call_operand.vmem [shape: f32[192,64], index: 4, kind: input, shape index: {}]   ;;  %s16894_s5 = inlined_call_operand.vmem [shape: f32[1,64], index: 5, kind: input, shape index: {}]   ;;  %s16895_s6 = inlined_call_operand.vmem [shape: f32[256,100], index: 6, kind: input, shape index: {}]   ;;  %s16896_s8 = inlined_call_operand.vmem [shape: f32[100,10], index: 8, kind: input, shape index: {}]   ;;  %s16897_s7 = inlined_call_operand.vmem [shape: f32[1,100], index: 7, kind: input, shape index: {}]   ;;  %s16898_s10 = inlined_call_operand.vmem [shape: f32[10,1], index: 10, kind: input, shape index: {}]   ;;  %s16899_s9 = inlined_call_operand.vmem [shape: f32[1,10], index: 9, kind: input, shape index: {}]   ;;  %s16900_s11 = inlined_call_operand.vmem [shape: f32[8,8,1], index: 11, kind: output, shape index: {}]  }
   0x1   :  { %v13162_v0 = vld [vmem:[%s16889_s1 + $0x10] sm:$0xff]  ;;  %v13167_v1 = vld [vmem:[%s16889_s1] sm:$0xff]  ;;  %v13172_v2 = vld [vmem:[%s16889_s1 + $0x18] sm:$0xff]  ;;  %vm4522_vm4 = vcmask 130048   ;;  %vm4552_vm5 = vcmask 392192   ;;  %vm5460_vm6 = vcmask 515072  }
   0x2   :  { %v170_v3 = vmul.f32 %v13162_v0, %v13162_v0  ;;  %v168_v4 = vmul.f32 %v13167_v1, %v13167_v1  ;;  %v171_v5 = vmul.f32 %v13172_v2, %v13172_v2  ;;  %v13183_v6 = vld [vmem:[%s16889_s1 + $0x8] sm:$0xff]  ;;  %v13195_v9 = vld [vmem:[%s16890_s0] sm:$0xff]  ;;  %v13208_v16 = vld [vmem:[%s16890_s0 + $0x18] sm:$0x3]  ;;  %vm5546_vm7 = vcmask 523264  }
   0x3   :  { %v169_v7 = vmul.f32 %v13183_v6, %v13183_v6  ;;  %v13190_v8 = vld [vmem:[%s16890_s0 + $0x8] sm:$0x3]  ;;  %v70_v15 = vmul.f32 %v13195_v9, %v13195_v9  ;;  %v13213_v17 = vld [vmem:[%s16890_s0 + $0x10] sm:$0xff]  ;;  %v73_v20 = vmul.f32 %v13208_v16, %v13208_v16  ;;  %v13229_v23 = vld [vmem:[%s16889_s1 + $0x20] sm:$0xff]  ;;  %vm6760_vm8 = vcmask 517120  }
   0x4   :  { %v190_v10 = vsel %vm86_vm0, %v170_v3, 0.0  ;;  %v184_v11 = vsel %vm86_vm0, %v168_v4, 0.0  ;;  %v193_v12 = vsel %vm86_vm0, %v171_v5, 0.0  ;;  %v71_v14 = vmul.f32 %v13190_v8, %v13190_v8  ;;  %v13224_v22 = vld [vmem:[%s16889_s1 + $0x28] sm:$0xff]  ;;  %v13240_v28 = vld [vmem:[%s16889_s1 + $0x38] sm:$0xff]  ;;  %v13245_v29 = vld [vmem:[%s16889_s1 + $0x30] sm:$0xff] }
   0x5   :  { %191 = vadd.xlane.f32.xlu1 %v190_v10  ;;  %185 = vadd.xlane.f32.xlu0 %v184_v11  ;;  %v187_v13 = vsel %vm86_vm0, %v169_v7, 0.0  ;;  %v87_v19 = vsel %vm86_vm0, %v70_v15, 0.0  ;;  %v72_v21 = vmul.f32 %v13213_v17, %v13213_v17  ;;  %v97_v24 = vsel %vm90_vm1, %v73_v20, 0.0  ;;  %v13256_v34 = vld [vmem:[%s16890_s0 + $0x20] sm:$0xff]  ;;  %v13261_v35 = vld [vmem:[%s16890_s0 + $0x28] sm:$0x3] }
   0x6   :  { %v91_v18 = vsel %vm90_vm1, %v71_v14, 0.0  ;;  %v173_v26 = vmul.f32 %v13224_v22, %v13224_v22  ;;  %v172_v27 = vmul.f32 %v13229_v23, %v13229_v23  ;;  %v175_v32 = vmul.f32 %v13240_v28, %v13240_v28  ;;  %v13272_v40 = vld [vmem:[%s16890_s0 + $0x30] sm:$0xff]  ;;  %v13277_v41 = vld [vmem:[%s16890_s0 + $0x38] sm:$0x3]  ;;  %v13288_v46 = vld [vmem:[%s16889_s1 + $0x48] sm:$0xff] }
   0x7   :  { %v94_v25 = vsel %vm86_vm0, %v72_v21, 0.0  ;;  %v174_v33 = vmul.f32 %v13245_v29, %v13245_v29  ;;  %v74_v38 = vmul.f32 %v13256_v34, %v13256_v34  ;;  %v75_v39 = vmul.f32 %v13261_v35, %v13261_v35  ;;  %v13293_v47 = vld [vmem:[%s16889_s1 + $0x40] sm:$0xff]  ;;  %v13304_v52 = vld [vmem:[%s16889_s1 + $0x58] sm:$0xff]  ;;  %v13309_v53 = vld [vmem:[%s16889_s1 + $0x50] sm:$0xff] }
   0x8   :  { %v199_v30 = vsel %vm86_vm0, %v173_v26, 0.0  ;;  %v196_v31 = vsel %vm86_vm0, %v172_v27, 0.0  ;;  %v205_v36 = vsel %vm86_vm0, %v175_v32, 0.0  ;;  %v76_v44 = vmul.f32 %v13272_v40, %v13272_v40  ;;  %v13320_v58 = vld [vmem:[%s16890_s0 + $0x40] sm:$0xff]  ;;  %v13325_v59 = vld [vmem:[%s16890_s0 + $0x48] sm:$0x3] }
   0x9   :  { %194 = vadd.xlane.f32.xlu1 %v193_v12  ;;  %188 = vadd.xlane.f32.xlu0 %v187_v13  ;;  %v202_v37 = vsel %vm86_vm0, %v174_v33, 0.0  ;;  %v100_v42 = vsel %vm86_vm0, %v74_v38, 0.0  ;;  %v103_v43 = vsel %vm90_vm1, %v75_v39, 0.0  ;;  %v77_v45 = vmul.f32 %v13277_v41, %v13277_v41  ;;  %v13336_v3 = vld [vmem:[%s16890_s0 + $0x50] sm:$0xff]  ;;  %v13341_v4 = vld [vmem:[%s16890_s0 + $0x58] sm:$0x3] }
   0xa   :  { %v106_v48 = vsel %vm86_vm0, %v76_v44, 0.0  ;;  %v177_v50 = vmul.f32 %v13288_v46, %v13288_v46  ;;  %v176_v51 = vmul.f32 %v13293_v47, %v13293_v47  ;;  %v179_v56 = vmul.f32 %v13304_v52, %v13304_v52  ;;  %v13352_v12 = vld [vmem:[%s16889_s1 + $0x60] sm:$0xff]  ;;  %v13357_v13 = vld [vmem:[%s16889_s1 + $0x68] sm:$0xff]  ;;  %v13373_v21 = vld [vmem:[%s16889_s1 + $0x70] sm:$0xff] }
   0xb   :  { %v109_v49 = vsel %vm90_vm1, %v77_v45, 0.0  ;;  %v178_v57 = vmul.f32 %v13309_v53, %v13309_v53  ;;  %v78_v62 = vmul.f32 %v13320_v58, %v13320_v58  ;;  %v79_v63 = vmul.f32 %v13325_v59, %v13325_v59  ;;  %v13368_v20 = vld [vmem:[%s16890_s0 + $0x60] sm:$0xff]  ;;  %v13400_v38 = vld [vmem:[%s16890_s0 + $0x70] sm:$0xff]  ;;  %v13405_v39 = vld [vmem:[%s16890_s0 + $0x78] sm:$0x3] }
   0xc   :  { %v211_v54 = vsel %vm86_vm0, %v177_v50, 0.0  ;;  %v208_v55 = vsel %vm86_vm0, %v176_v51, 0.0  ;;  %v217_v60 = vsel %vm86_vm0, %v179_v56, 0.0  ;;  %v80_v10 = vmul.f32 %v13336_v3, %v13336_v3 }
   0xd   :  { %92 = vadd.xlane.f32.xlu1 %v91_v18  ;;  %88 = vadd.xlane.f32.xlu0 %v87_v19  ;;  %v214_v61 = vsel %vm86_vm0, %v178_v57, 0.0  ;;  %v112_v5 = vsel %vm86_vm0, %v78_v62, 0.0  ;;  %v115_v7 = vsel %vm90_vm1, %v79_v63, 0.0  ;;  %v81_v11 = vmul.f32 %v13341_v4, %v13341_v4 }
   0xe   :  { %v118_v14 = vsel %vm86_vm0, %v80_v10, 0.0  ;;  %v180_v18 = vmul.f32 %v13352_v12, %v13352_v12  ;;  %v181_v19 = vmul.f32 %v13357_v13, %v13357_v13  ;;  %v82_v26 = vmul.f32 %v13368_v20, %v13368_v20 }
   0xf   :  { %v121_v15 = vsel %vm90_vm1, %v81_v11, 0.0  ;;  %v182_v27 = vmul.f32 %v13373_v21, %v13373_v21  ;;  %v84_v44 = vmul.f32 %v13400_v38, %v13400_v38  ;;  %v85_v45 = vmul.f32 %v13405_v39, %v13405_v39 }
  0x10   :  { %v124_v32 = vsel %vm86_vm0, %v82_v26, 0.0  ;;  %vm6817_vm9 = vcmask 519170   ;;  %vm6874_vm10 = vcmask 521220   ;;  %vm6931_vm11 = vcmask 523270  }
  0x11   :  { %98 = vadd.xlane.f32.xlu1 %v97_v24  ;;  %95 = vadd.xlane.f32.xlu0 %v94_v25  ;;  %v220_v24 = vsel %vm86_vm0, %v180_v18, 0.0  ;;  %v223_v25 = vsel %vm86_vm0, %v181_v19, 0.0  ;;  %v226_v33 = vsel %vm86_vm0, %v182_v27, 0.0  ;;  %vm6988_vm12 = vcmask 1040384  }
  0x12   :  { %vm6997_vm13 = vcmask 1041408   ;;  %vm7006_vm14 = vcmask 1042432   ;;  %vm8553_vm15 = vcmask 1043456  }
  0x15   :  { %200 = vadd.xlane.f32.xlu1 %v199_v30  ;;  %197 = vadd.xlane.f32.xlu0 %v196_v31  ;;  %v13384_v30 = vld [vmem:[%s16889_s1 + $0x78] sm:$0xff]  ;;  %v13389_v31 = vld [vmem:[%s16890_s0 + $0x68] sm:$0x3]  ;;  %s13092_s0 = smov 16  }
  0x19   :  { %206 = vadd.xlane.f32.xlu1 %v205_v36  ;;  %203 = vadd.xlane.f32.xlu0 %v202_v37  ;;  %v183_v36 = vmul.f32 %v13384_v30, %v13384_v30  ;;  %v83_v37 = vmul.f32 %v13389_v31, %v13389_v31 }
  0x1d   :  { %101 = vadd.xlane.f32.xlu0 %v100_v42  ;;  %104 = vadd.xlane.f32.xlu1 %v103_v43  ;;  %v229_v42 = vsel %vm86_vm0, %v183_v36, 0.0  ;;  %v127_v43 = vsel %vm90_vm1, %v83_v37, 0.0 }
  0x21   :  { %107 = vadd.xlane.f32.xlu0 %v106_v48  ;;  %110 = vadd.xlane.f32.xlu1 %v109_v49  ;;  %v130_v48 = vsel %vm86_vm0, %v84_v44, 0.0  ;;  %v133_v49 = vsel %vm90_vm1, %v85_v45, 0.0  ;;  %vm9470_vm1 = vcmask 80896  }
  0x25   :  { %212 = vadd.xlane.f32.xlu1 %v211_v54  ;;  %209 = vadd.xlane.f32.xlu0 %v208_v55 }
  0x29   :  { %218 = vadd.xlane.f32.xlu1 %v217_v60  ;;  %215 = vadd.xlane.f32.xlu0 %v214_v61 }
  0x2d   :  { %113 = vadd.xlane.f32.xlu0 %v112_v5  ;;  %116 = vadd.xlane.f32.xlu1 %v115_v7 }
  0x31   :  { %119 = vadd.xlane.f32.xlu0 %v118_v14  ;;  %122 = vadd.xlane.f32.xlu1 %v121_v15 }
  0x35   :  { %221 = vadd.xlane.f32.xlu0 %v220_v24  ;;  %224 = vadd.xlane.f32.xlu1 %v223_v25 }
  0x39   :  { %125 = vadd.xlane.f32.xlu0 %v124_v32  ;;  %227 = vadd.xlane.f32.xlu1 %v226_v33 }
  0x3d   :  { %230 = vadd.xlane.f32.xlu0 %v229_v42  ;;  %128 = vadd.xlane.f32.xlu1 %v127_v43 }
  0x41   :  { %131 = vadd.xlane.f32.xlu0 %v130_v48  ;;  %134 = vadd.xlane.f32.xlu1 %v133_v49 }
  0x92   :  { %v192_v50 = vpop.xlane.xlu1 %191  ;;  %v186_v51 = vpop.xlane.xlu0 %185 }
  0x93   :  { %v234_v54 = vadd.f32 1e-26, %v192_v50  ;;  %v232_v55 = vadd.f32 1e-26, %v186_v51 }
  0x95   :  { %13028 = vrsqrt.f32 %v234_v54 }
  0x96   :  { %13030 = vrsqrt.f32 %v232_v55  ;;  %v195_v56 = vpop.xlane.xlu1 %194  ;;  %v189_v57 = vpop.xlane.xlu0 %188 }
  0x97   :  { %v235_v60 = vadd.f32 1e-26, %v195_v56  ;;  %v233_v61 = vadd.f32 1e-26, %v189_v57 }
  0x99   :  { %13032 = vrsqrt.f32 %v235_v60 }
  0x9a   :  { %13034 = vrsqrt.f32 %v233_v61  ;;  %v93_v62 = vpop.xlane.xlu1 %92  ;;  %v89_v63 = vpop.xlane.xlu0 %88 }
  0x9b   :  { %v137_v5 = vadd.f32 1e-26, %v93_v62  ;;  %v136_v7 = vadd.f32 1e-26, %v89_v63 }
  0x9d   :  { %13036 = vrsqrt.f32 %v137_v5 }
  0x9e   :  { %13038 = vrsqrt.f32 %v136_v7  ;;  %v99_v10 = vpop.xlane.xlu1 %98  ;;  %v96_v11 = vpop.xlane.xlu0 %95 }
  0x9f   :  { %v13029_v14 = vpop.eup %13028  ;;  %v139_v15 = vadd.f32 1e-26, %v99_v10  ;;  %v138_v18 = vadd.f32 1e-26, %v96_v11 }
  0xa0   :  { %v13031_v19 = vpop.eup %13030  ;;  %v282_v24 = vmul.f32 %v13029_v14, %v13162_v0 }
  0xa1   :  { %v280_v25 = vmul.f32 %v13031_v19, %v13167_v1  ;;  %13040 = vrsqrt.f32 %v139_v15 }
  0xa2   :  { %v817_v26 = vsel %vm86_vm0, %v282_v24, 0  ;;  %13042 = vrsqrt.f32 %v138_v18  ;;  %v13419_v36 = vpop.xlane.xlu0 %197  ;;  %v201_v24 = vpop.xlane.xlu1 %200 }
  0xa3   :  { %v13033_v27 = vpop.eup %13032  ;;  %v823_v32 = vand.u32 4294901760, %v817_v26  ;;  %v303_v33 = vsel %vm86_vm0, %v280_v25, 0 }
  0xa4   :  { %v13035_v37 = vpop.eup %13034  ;;  %v309_v42 = vand.u32 4294901760, %v303_v33  ;;  %v283_v43 = vmul.f32 %v13033_v27, %v13172_v2 }
  0xa5   :  { %v281_v44 = vmul.f32 %v13035_v37, %v13183_v6  ;;  %v13423_v45 = vsub.f32 %v817_v26, %v823_v32 }
  0xa6   :  { %v820_v0 = vsel %vm86_vm0, %v283_v43, 0  ;;  %v13426_v1 = vsub.f32 %v303_v33, %v309_v42  ;;  %v204_v62 = vpop.xlane.xlu0 %203 }
  0xa7   :  { %v13037_v48 = vpop.eup %13036  ;;  %v826_v49 = vand.u32 4294901760, %v820_v0  ;;  %v306_v50 = vsel %vm86_vm0, %v281_v44, 0  ;;  %v912_v51 = vand.u32 4294901760, %v13423_v45 }
  0xa8   :  { %v13039_v54 = vpop.eup %13038  ;;  %v312_v55 = vand.u32 4294901760, %v306_v50  ;;  %v398_v56 = vand.u32 4294901760, %v13426_v1  ;;  %v265_v2 = vmul.f32 %v13037_v48, %v13190_v8 }
  0xa9   :  { %v13432_v57 = vpack.c.bf16 %v826_v49, %v823_v32  ;;  %v913_v6 = vsub.f32 %v13423_v45, %v912_v51  ;;  %v13437_v60 = vsub.f32 %v820_v0, %v826_v49  ;;  %v264_v61 = vmul.f32 %v13039_v54, %v13195_v9 }
  0xaa   :  { %v13440_v63 = vpack.c.bf16 %v312_v55, %v309_v42  ;;  %v399_v5 = vsub.f32 %v13426_v1, %v398_v56  ;;  %v13445_v7 = vsub.f32 %v306_v50, %v312_v55  ;;  %v300_v8 = vsel %vm86_vm0, %v265_v2, 0  ;;  %v102_v50 = vpop.xlane.xlu0 %101 }
  0xab   :  { %v13041_v10 = vpop.eup %13040  ;;  %11902 = vmatprep.subr.bf16.mxu1 %v13432_v57  ;;  %v919_v11 = vand.u32 4294901760, %v13437_v60  ;;  %v297_v14 = vsel %vm86_vm0, %v264_v61, 0  ;;  %v13451_v15 = vand.u32 4294901760, %v300_v8  ;;  %v914_v42 = vand.u32 4294901760, %v913_v6 }
  0xac   :  { %v13043_v9 = vpop.eup %13042  ;;  %11878 = vmatprep.subr.bf16.mxu0 %v13440_v63  ;;  %11904 = vmatpush3.bf16.xpose.msra.mxu1 %v13432_v57  ;;  %v405_v18 = vand.u32 4294901760, %v13445_v7  ;;  %v13456_v19 = vand.u32 4294901760, %v297_v14  ;;  %v267_v32 = vmul.f32 %v13041_v10, %v13208_v16  ;;  %v400_v33 = vand.u32 4294901760, %v399_v5 }
  0xad   :  { %11880 = vmatpush3.bf16.xpose.msra.mxu0 %v13440_v63  ;;  %v920_v25 = vsub.f32 %v13437_v60, %v919_v11  ;;  %v13463_v26 = vsub.f32 %v300_v8, %v13451_v15  ;;  %v266_v27 = vmul.f32 %v13043_v9, %v13213_v17  ;;  %v237_v61 = vadd.f32 1e-26, %v201_v24  ;;  %v207_v9 = vpop.xlane.xlu1 %206 }
  0xae   :  { %v406_v37 = vsub.f32 %v13445_v7, %v405_v18  ;;  %v13471_v43 = vsub.f32 %v297_v14, %v13456_v19  ;;  %v814_v49 = vsel %vm86_vm0, %v267_v32, 0 }
  0xaf   :  { %v921_v44 = vand.u32 4294901760, %v920_v25  ;;  %v387_v0 = vand.u32 4294901760, %v13463_v26  ;;  %v811_v48 = vsel %vm86_vm0, %v266_v27, 0  ;;  %v13479_v55 = vand.u32 4294901760, %v814_v49 }
  0xb0   :  { %v407_v17 = vand.u32 4294901760, %v406_v37  ;;  %v377_v16 = vand.u32 4294901760, %v13471_v43  ;;  %v13477_v54 = vand.u32 4294901760, %v811_v48  ;;  %v236_v27 = vadd.f32 1e-26, %v13419_v36 }
  0xb1   :  { %v11905_v2 = vpack.c.bf16 %v921_v44, %v914_v42  ;;  %v388_v6 = vsub.f32 %v13463_v26, %v387_v0  ;;  %v13491_v14 = vsub.f32 %v814_v49, %v13479_v55  ;;  %v140_v37 = vadd.f32 1e-26, %v102_v50  ;;  %v108_v42 = vpop.xlane.xlu0 %107 }
  0xb2   :  { %v11881_v5 = vpack.c.bf16 %v407_v17, %v400_v33  ;;  %v378_v8 = vsub.f32 %v13471_v43, %v377_v16  ;;  %v13488_v10 = vsub.f32 %v811_v48, %v13477_v54  ;;  %13044 = vrsqrt.f32 %v237_v61 }
  0xb3   :  { %11906 = vmatprep.subr.bf16.mxu1 %v11905_v2  ;;  %v389_v25 = vand.u32 4294901760, %v388_v6  ;;  %v901_v33 = vand.u32 4294901760, %v13491_v14  ;;  %v239_v49 = vadd.f32 1e-26, %v207_v9  ;;  %v11885_v36 = vpack.c.bf16 %v13445_v7, %v13426_v1 }
  0xb4   :  { %11882 = vmatprep.subr.bf16.mxu0 %v11881_v5  ;;  %v379_v32 = vand.u32 4294901760, %v378_v8  ;;  %v891_v24 = vand.u32 4294901760, %v13488_v10  ;;  %13046 = vrsqrt.f32 %v236_v27  ;;  %v238_v17 = vadd.f32 1e-26, %v204_v62  ;;  %v105_v8 = vpop.xlane.xlu1 %104 }
  0xb5   :  { %v902_v48 = vsub.f32 %v13491_v14, %v901_v33  ;;  %13048 = vrsqrt.f32 %v140_v37  ;;  %v11909_v61 = vpack.c.bf16 %v13437_v60, %v13423_v45  ;;  %v141_v62 = vadd.f32 1e-26, %v105_v8 }
  0xb6   :  { %11077 = vmatprep.mubr.f32.mxu0 %v379_v32  ;;  %v892_v44 = vsub.f32 %v13488_v10, %v891_v24  ;;  %v142_v32 = vadd.f32 1e-26, %v108_v42  ;;  %13050 = vrsqrt.f32 %v239_v49 }
  0xb7   :  { %11078 = vmatmul.mubr.f32.vlgmr.msra.gmra.mrb[0].mxu0 %v389_v25  ;;  %v903_v6 = vand.u32 4294901760, %v902_v48  ;;  %13052 = vrsqrt.f32 %v238_v17  ;;  %v11893_v17 = vpack.c.bf16 %v405_v18, %v398_v56 }
  0xb8   :  { %11884 = vmatpush3.bf16.xpose.msra.mxu0 %v11881_v5  ;;  %11084 = vmatprep.mubr.f32.mxu0 %v13456_v19  ;;  %v893_v50 = vand.u32 4294901760, %v892_v44  ;;  %13054 = vrsqrt.f32 %v142_v32  ;;  %v111_v5 = vpop.xlane.xlu1 %110 }
  0xb9   :  { %11886 = vmatprep.subr.bf16.mxu0 %v11885_v36  ;;  %13056 = vrsqrt.f32 %v141_v62  ;;  %v143_v27 = vadd.f32 1e-26, %v111_v5 }
  0xba   :  { %11119 = vmatprep.mubr.f32.mxu1 %v893_v50 }
  0xbb   :  { %11120 = vmatmul.mubr.f32.vlgmr.msra.gmra.mrb[0].mxu1 %v903_v6  ;;  %13058 = vrsqrt.f32 %v143_v27 }
  0xbc   :  { %11908 = vmatpush3.bf16.xpose.msra.mxu1 %v11905_v2  ;;  %11126 = vmatprep.mubr.f32.mxu1 %v13477_v54  ;;  %v13045_v9 = vpop.eup %13044 }
  0xbd   :  { %11910 = vmatprep.subr.bf16.mxu1 %v11909_v61  ;;  %v285_v42 = vmul.f32 %v13045_v9, %v13224_v22  ;;  %v210_v9 = vpop.xlane.xlu0 %209 }
  0xbe   :  { %v13047_v25 = vpop.eup %13046 }
  0xbf   :  { %11085 = vmatmul.mubr.f32.vlgmr.msra.gmra.mrb[0].mxu0 %v13451_v15  ;;  %v13049_v37 = vpop.eup %13048  ;;  %v284_v44 = vmul.f32 %v13047_v25, %v13229_v23  ;;  %v1334_v22 = vsel %vm86_vm0, %v285_v42, 0 }
  0xc0   :  { %11888 = vmatpush3.bf16.xpose.msra.mxu0 %v11885_v36  ;;  %11091 = vmatprep.mubr.f32.mxu0 %v13471_v43  ;;  %v13051_v2 = vpop.eup %13050  ;;  %v268_v49 = vmul.f32 %v13049_v37, %v13256_v34  ;;  %v1340_v56 = vand.u32 4294901760, %v1334_v22 }
  0xc1   :  { %11890 = vmatprep.subr.bf16.mxu0 %v13440_v63  ;;  %v13053_v48 = vpop.eup %13052  ;;  %v1331_v23 = vsel %vm86_vm0, %v284_v44, 0  ;;  %v287_v50 = vmul.f32 %v13051_v2, %v13240_v28  ;;  %v11917_v28 = vpack.c.bf16 %v919_v11, %v912_v51 }
  0xc2   :  { %v13055_v36 = vpop.eup %13054  ;;  %v286_v6 = vmul.f32 %v13053_v48, %v13245_v29  ;;  %v1325_v34 = vsel %vm86_vm0, %v268_v49, 0  ;;  %v1337_v18 = vand.u32 4294901760, %v1331_v23  ;;  %v13549_v11 = vsub.f32 %v1334_v22, %v1340_v56 }
  0xc3   :  { %11127 = vmatmul.mubr.f32.vlgmr.msra.gmra.mrb[0].mxu1 %v13479_v55  ;;  %v270_v1 = vmul.f32 %v13055_v36, %v13272_v40  ;;  %v13057_v7 = vpop.eup %13056  ;;  %v1848_v29 = vsel %vm86_vm0, %v287_v50, 0  ;;  %v13541_v40 = vand.u32 4294901760, %v1325_v34 }
  0xc4   :  { %11912 = vmatpush3.bf16.xpose.msra.mxu1 %v11909_v61  ;;  %11133 = vmatprep.mubr.f32.mxu1 %v13488_v10  ;;  %v1845_v43 = vsel %vm86_vm0, %v286_v6, 0  ;;  %v269_v8 = vmul.f32 %v13057_v7, %v13261_v35  ;;  %v1854_v32 = vand.u32 4294901760, %v1848_v29  ;;  %v13547_v51 = vsub.f32 %v1331_v23, %v1337_v18  ;;  %v216_v23 = vpop.xlane.xlu0 %215  ;;  %v213_v7 = vpop.xlane.xlu1 %212 }
  0xc5   :  { %11914 = vmatprep.subr.bf16.mxu1 %v13432_v57  ;;  %v13059_v45 = vpop.eup %13058  ;;  %v1851_v60 = vand.u32 4294901760, %v1845_v43  ;;  %v13553_v10 = vsub.f32 %v1325_v34, %v13541_v40  ;;  %v13573_v27 = vpack.c.bf16 %v1340_v56, %v1337_v18 }
  0xc6   :  { %v271_v35 = vmul.f32 %v13059_v45, %v13277_v41  ;;  %v1328_v61 = vsel %vm86_vm0, %v269_v8, 0  ;;  %v13566_v5 = vsub.f32 %v1848_v29, %v1854_v32  ;;  %v241_v45 = vadd.f32 1e-26, %v213_v7 }
  0xc7   :  { %11092 = vmatmul.mubr.f32.vlgmr.msra.gmra.mrb[0].mxu0 %v13463_v26  ;;  %v1426_v26 = vand.u32 4294901760, %v13547_v51  ;;  %v13564_v62 = vsub.f32 %v1845_v43, %v1851_v60  ;;  %v1405_v25 = vand.u32 4294901760, %v13553_v10  ;;  %v13594_v36 = vpack.c.bf16 %v1854_v32, %v1851_v60 }
  0xc8   :  { %11892 = vmatpush3.bf16.xpose.msra.mxu0 %v13440_v63  ;;  %11098 = vmatprep.mubr.f32.mxu0 %v377_v16  ;;  %v1839_v16 = vsel %vm86_vm0, %v270_v1, 0  ;;  %v1947_v44 = vand.u32 4294901760, %v13566_v5  ;;  %v114_v43 = vpop.xlane.xlu0 %113  ;;  %v219_v32 = vpop.xlane.xlu1 %218  ;;  %v240_v60 = vadd.f32 1e-26, %v210_v9  ;;  %13060 = vrsqrt.f32 %v241_v45 }
  0xc9   :  { %11894 = vmatprep.subr.bf16.mxu0 %v11893_v17  ;;  %v1427_v37 = vsub.f32 %v13547_v51, %v1426_v26  ;;  %v1940_v42 = vand.u32 4294901760, %v13564_v62  ;;  %v1406_v48 = vsub.f32 %v13553_v10, %v1405_v25 }
  0xca   :  { %v1948_v6 = vsub.f32 %v13566_v5, %v1947_v44  ;;  %13062 = vrsqrt.f32 %v240_v60 }
  0xcb   :  { %11134 = vmatmul.mubr.f32.vlgmr.msra.gmra.mrb[0].mxu1 %v13491_v14  ;;  %v13576_v14 = vand.u32 4294901760, %v1328_v61  ;;  %v1941_v50 = vsub.f32 %v13564_v62, %v1940_v42  ;;  %v1407_v34 = vand.u32 4294901760, %v1406_v48  ;;  %v11933_v48 = vpack.c.bf16 %v13549_v11, %v13547_v51 }
  0xcc   :  { %11916 = vmatpush3.bf16.xpose.msra.mxu1 %v13432_v57  ;;  %11140 = vmatprep.mubr.f32.mxu1 %v891_v24  ;;  %v13555_v24 = vand.u32 4294901760, %v1839_v16  ;;  %v117_v9 = vpop.xlane.xlu1 %116 }
  0xcd   :  { %11918 = vmatprep.subr.bf16.mxu1 %v11917_v28  ;;  %v1942_v29 = vand.u32 4294901760, %v1941_v50  ;;  %v11957_v50 = vpack.c.bf16 %v13566_v5, %v13564_v62 }
  0xce   :  { %v13571_v41 = vsub.f32 %v1839_v16, %v13555_v24 }
  0xcf   :  { %11099 = vmatmul.mubr.f32.vlgmr.msra.gmra.mrb[0].mxu0 %v387_v0  ;;  %v1433_v0 = vand.u32 4294901760, %v13549_v11 }
  0xd0   :  { %11896 = vmatpush3.bf16.xpose.msra.mxu0 %v11893_v17  ;;  %11105 = vmatprep.mubr.f32.mxu0 %v13456_v19  ;;  %v1919_v49 = vand.u32 4294901760, %v13571_v41  ;;  %v13598_v17 = vsub.f32 %v1328_v61, %v13576_v14 }
  0xd1   :  { %11898 = vmatprep.subr.bf16.mxu0 %v13440_v63  ;;  %v1434_v2 = vsub.f32 %v13549_v11, %v1433_v0 }
  0xd2   :  { %v1920_v1 = vsub.f32 %v13571_v41, %v1919_v49  ;;  %v1415_v56 = vand.u32 4294901760, %v13598_v17 }
  0xd3   :  { %11141 = vmatmul.mubr.f32.vlgmr.msra.gmra.mrb[0].mxu1 %v901_v33  ;;  %v1842_v33 = vsel %vm86_vm0, %v271_v35, 0  ;;  %v144_v35 = vadd.f32 1e-26, %v114_v43 }
  0xd4   :  { %11920 = vmatpush3.bf16.xpose.msra.mxu1 %v11917_v28  ;;  %11147 = vmatprep.mubr.f32.mxu1 %v13477_v54  ;;  %v13600_v22 = vand.u32 4294901760, %v1842_v33  ;;  %v1416_v16 = vsub.f32 %v13598_v17, %v1415_v56 }
  0xd5   :  { %11922 = vmatprep.subr.bf16.mxu1 %v13432_v57  ;;  %13064 = vrsqrt.f32 %v144_v35 }
  0xd6   :  { %v13617_v18 = vsub.f32 %v1842_v33, %v13600_v22  ;;  %v1417_v61 = vand.u32 4294901760, %v1416_v16 }
  0xd7   :  { %11106 = vmatmul.mubr.f32.vlgmr.msra.gmra.mrb[0].mxu0 %v13451_v15 }
  0xd8   :  { %11900 = vmatpush3.bf16.xpose.msra.mxu0 %v13440_v63  ;;  %11112 = vmatprep.mubr.f32.mxu0 %v13456_v19  ;;  %v1428_v63 = vand.u32 4294901760, %v1427_v37  ;;  %v1435_v19 = vand.u32 4294901760, %v1434_v2  ;;  %v1929_v8 = vand.u32 4294901760, %v13617_v18  ;;  %v120_v37 = vpop.xlane.xlu0 %119  ;;  %v243_v2 = vadd.f32 1e-26, %v219_v32 }
  0xd9   :  { %11926 = vmatprep.subr.bf16.mxu0 %v13573_v27  ;;  %v11941_v32 = vpack.c.bf16 %v1433_v0, %v1426_v26 }
  0xda   :  { %v11929_v28 = vpack.c.bf16 %v1435_v19, %v1428_v63  ;;  %v1930_v33 = vsub.f32 %v13617_v18, %v1929_v8  ;;  %v146_v63 = vadd.f32 1e-26, %v120_v37  ;;  %13066 = vrsqrt.f32 %v243_v2 }
  0xdb   :  { %11148 = vmatmul.mubr.f32.vlgmr.msra.gmra.mrb[0].mxu1 %v13479_v55 }
  0xdc   :  { %11924 = vmatpush3.bf16.xpose.msra.mxu1 %v13432_v57  ;;  %11154 = vmatprep.mubr.f32.mxu1 %v13477_v54  ;;  %v1949_v57 = vand.u32 4294901760, %v1948_v6  ;;  %v1921_v54 = vand.u32 4294901760, %v1920_v1  ;;  %v1931_v19 = vand.u32 4294901760, %v1930_v33  ;;  %v123_v6 = vpop.xlane.xlu1 %122 }
  0xdd   :  { %11950 = vmatprep.subr.bf16.mxu1 %v13594_v36  ;;  %v147_v7 = vadd.f32 1e-26, %v123_v6 }
  0xdf   :  { %11113 = vmatmul.mubr.f32.vlgmr.msra.gmra.mrb[0].mxu0 %v13451_v15  ;;  %v11953_v15 = vpack.c.bf16 %v1949_v57, %v1942_v29 }
  0xe0   :  { %11928 = vmatpush3.bf16.xpose.msra.mxu0 %v13573_v27  ;;  %11161 = vmatprep.mubr.f32.mxu0 %v1407_v34  ;;  %v13061_v34 = vpop.eup %13060 }
  0xe1   :  { %11930 = vmatprep.subr.bf16.mxu0 %v11929_v28  ;;  %v13063_v1 = vpop.eup %13062  ;;  %v289_v57 = vmul.f32 %v13061_v34, %v13288_v46 }
  0xe2   :  { %v288_v43 = vmul.f32 %v13063_v1, %v13293_v47 }
  0xe3   :  { %11155 = vmatmul.mubr.f32.vlgmr.msra.gmra.mrb[0].mxu1 %v13479_v55  ;;  %v242_v55 = vadd.f32 1e-26, %v216_v23  ;;  %v145_v23 = vadd.f32 1e-26, %v117_v9  ;;  %v2362_v46 = vsel %vm86_vm0, %v289_v57, 0 }
  0xe4   :  { %11952 = vmatpush3.bf16.xpose.msra.mxu1 %v13594_v36  ;;  %11203 = vmatprep.mubr.f32.mxu1 %v1921_v54  ;;  %v2359_v47 = vsel %vm86_vm0, %v288_v43, 0  ;;  %v2368_v26 = vand.u32 4294901760, %v2362_v46 }
  0xe5   :  { %11954 = vmatprep.subr.bf16.mxu1 %v11953_v15  ;;  %13068 = vrsqrt.f32 %v242_v55  ;;  %v2365_v0 = vand.u32 4294901760, %v2359_v47 }
  0xe6   :  { %13070 = vrsqrt.f32 %v146_v63 }
  0xe7   :  { %11162 = vmatmul.mubr.f32.vlgmr.msra.gmra.mrb[2].mxu0 %v1417_v61  ;;  %13072 = vrsqrt.f32 %v145_v23  ;;  %v13701_v55 = vpack.c.bf16 %v2368_v26, %v2365_v0 }
  0xe8   :  { %11932 = vmatpush3.bf16.xpose.msra.mxu0 %v11929_v28  ;;  %11168 = vmatprep.mubr.f32.mxu0 %v13541_v40  ;;  %v13065_v28 = vpop.eup %13064  ;;  %13074 = vrsqrt.f32 %v147_v7 }
  0xe9   :  { %11934 = vmatprep.subr.bf16.mxu0 %v11933_v48  ;;  %v13067_v29 = vpop.eup %13066  ;;  %v272_v16 = vmul.f32 %v13065_v28, %v13320_v58 }
  0xeb   :  { %11204 = vmatmul.mubr.f32.vlgmr.msra.gmra.mrb[2].mxu1 %v1931_v19  ;;  %v2353_v58 = vsel %vm86_vm0, %v272_v16, 0 }
  0xec   :  { %11956 = vmatpush3.bf16.xpose.msra.mxu1 %v11953_v15  ;;  %11210 = vmatprep.mubr.f32.mxu1 %v13555_v24  ;;  %v291_v15 = vmul.f32 %v13067_v29, %v13304_v52  ;;  %v11965_v52 = vpack.c.bf16 %v1947_v44, %v1940_v42  ;;  %v13675_v42 = vsub.f32 %v2359_v47, %v2365_v0 }
  0xed   :  { %11958 = vmatprep.subr.bf16.mxu1 %v11957_v50  ;;  %v13677_v44 = vsub.f32 %v2362_v46, %v2368_v26 }
  0xef   :  { %11169 = vmatmul.mubr.f32.vlgmr.msra.gmra.mrb[2].mxu0 %v13576_v14  ;;  %v13069_v54 = vpop.eup %13068 }
  0xf0   :  { %11936 = vmatpush3.bf16.xpose.msra.mxu0 %v11933_v48  ;;  %11175 = vmatprep.mubr.f32.mxu0 %v13553_v10  ;;  %v13071_v45 = vpop.eup %13070  ;;  %v290_v60 = vmul.f32 %v13069_v54, %v13309_v53  ;;  %v2876_v53 = vsel %vm86_vm0, %v291_v15, 0 }
  0xf1   :  { %11938 = vmatprep.subr.bf16.mxu0 %v13573_v27  ;;  %v274_v51 = vmul.f32 %v13071_v45, %v13336_v3  ;;  %v13073_v11 = vpop.eup %13072  ;;  %v13669_v3 = vand.u32 4294901760, %v2353_v58  ;;  %v2882_v61 = vand.u32 4294901760, %v2876_v53  ;;  %v225_v45 = vpop.xlane.xlu1 %224 }
  0xf2   :  { %v2873_v10 = vsel %vm86_vm0, %v290_v60, 0  ;;  %v273_v35 = vmul.f32 %v13073_v11, %v13325_v59  ;;  %v13075_v62 = vpop.eup %13074  ;;  %v245_v0 = vadd.f32 1e-26, %v225_v45 }
  0xf3   :  { %11211 = vmatmul.mubr.f32.vlgmr.msra.gmra.mrb[2].mxu1 %v13600_v22  ;;  %v2879_v5 = vand.u32 4294901760, %v2873_v10  ;;  %v275_v59 = vmul.f32 %v13075_v62, %v13341_v4  ;;  %v13694_v2 = vsub.f32 %v2876_v53, %v2882_v61  ;;  %v11981_v62 = vpack.c.bf16 %v13677_v44, %v13675_v42 }
  0xf4   :  { %11960 = vmatpush3.bf16.xpose.msra.mxu1 %v11957_v50  ;;  %11217 = vmatprep.mubr.f32.mxu1 %v13571_v41  ;;  %v13681_v41 = vsub.f32 %v2353_v58, %v13669_v3  ;;  %v2356_v33 = vsel %vm86_vm0, %v273_v35, 0 }
  0xf5   :  { %11962 = vmatprep.subr.bf16.mxu1 %v13594_v36  ;;  %v13692_v37 = vsub.f32 %v2873_v10, %v2879_v5  ;;  %v2870_v9 = vsel %vm86_vm0, %v275_v59, 0  ;;  %v2975_v23 = vand.u32 4294901760, %v13694_v2  ;;  %v13722_v1 = vpack.c.bf16 %v2882_v61, %v2879_v5  ;;  %v228_v26 = vpop.xlane.xlu1 %227 }
  0xf6   :  { %v2433_v48 = vand.u32 4294901760, %v13681_v41  ;;  %v13728_v28 = vand.u32 4294901760, %v2870_v9  ;;  %v246_v35 = vadd.f32 1e-26, %v228_v26 }
  0xf7   :  { %11176 = vmatmul.mubr.f32.vlgmr.msra.gmra.mrb[2].mxu0 %v13598_v17  ;;  %v2454_v17 = vand.u32 4294901760, %v13675_v42  ;;  %v2968_v50 = vand.u32 4294901760, %v13692_v37  ;;  %v2976_v57 = vsub.f32 %v13694_v2, %v2975_v23 }
  0xf8   :  { %11940 = vmatpush3.bf16.xpose.msra.mxu0 %v13573_v27  ;;  %11182 = vmatprep.mubr.f32.mxu0 %v1405_v25  ;;  %v2867_v25 = vsel %vm86_vm0, %v274_v51, 0  ;;  %v2434_v6 = vsub.f32 %v13681_v41, %v2433_v48  ;;  %v13745_v46 = vsub.f32 %v2870_v9, %v13728_v28 }
  0xf9   :  { %11942 = vmatprep.subr.bf16.mxu0 %v11941_v32  ;;  %v2455_v63 = vsub.f32 %v13675_v42, %v2454_v17  ;;  %v129_v61 = vpop.xlane.xlu1 %128 }
  0xfa   :  { %v2435_v54 = vand.u32 4294901760, %v2434_v6  ;;  %v2957_v58 = vand.u32 4294901760, %v13745_v46 }
  0xfb   :  { %11218 = vmatmul.mubr.f32.vlgmr.msra.gmra.mrb[2].mxu1 %v13617_v18  ;;  %v13704_v18 = vand.u32 4294901760, %v2356_v33 }
  0xfc   :  { %11964 = vmatpush3.bf16.xpose.msra.mxu1 %v13594_v36  ;;  %11224 = vmatprep.mubr.f32.mxu1 %v1919_v49  ;;  %v13683_v49 = vand.u32 4294901760, %v2867_v25  ;;  %v2958_v53 = vsub.f32 %v13745_v46, %v2957_v58 }
  0xfd   :  { %11966 = vmatprep.subr.bf16.mxu1 %v11965_v52  ;;  %v13726_v7 = vsub.f32 %v2356_v33, %v13704_v18  ;;  %v12005_v33 = vpack.c.bf16 %v13694_v2, %v13692_v37  ;;  %v135_v9 = vpop.xlane.xlu1 %134 }
  0xfe   :  { %v13699_v4 = vsub.f32 %v2867_v25, %v13683_v49  ;;  %v2959_v59 = vand.u32 4294901760, %v2958_v53  ;;  %v151_v6 = vadd.f32 1e-26, %v135_v9 }
  0xff   :  { %11183 = vmatmul.mubr.f32.vlgmr.msra.gmra.mrb[2].mxu0 %v1415_v56  ;;  %v2461_v56 = vand.u32 4294901760, %v13677_v44 }
 0x100   :  { %11944 = vmatpush3.bf16.xpose.msra.mxu0 %v11941_v32  ;;  %11189 = vmatprep.mubr.f32.mxu0 %v13541_v40  ;;  %v2947_v34 = vand.u32 4294901760, %v13699_v4  ;;  %v2443_v32 = vand.u32 4294901760, %v13726_v7 }
 0x101   :  { %11946 = vmatprep.subr.bf16.mxu0 %v13573_v27  ;;  %v2462_v19 = vsub.f32 %v13677_v44, %v2461_v56 }
 0x102   :  { %v2948_v16 = vsub.f32 %v13699_v4, %v2947_v34  ;;  %v2444_v60 = vsub.f32 %v13726_v7, %v2443_v32 }
 0x103   :  { %11225 = vmatmul.mubr.f32.vlgmr.msra.gmra.mrb[2].mxu1 %v1929_v8  ;;  %v222_v8 = vpop.xlane.xlu0 %221  ;;  %v2463_v29 = vand.u32 4294901760, %v2462_v19 }
 0x104   :  { %11968 = vmatpush3.bf16.xpose.msra.mxu1 %v11965_v52  ;;  %11231 = vmatprep.mubr.f32.mxu1 %v13555_v24  ;;  %v244_v11 = vadd.f32 1e-26, %v222_v8  ;;  %v2445_v52 = vand.u32 4294901760, %v2444_v60  ;;  %v149_v8 = vadd.f32 1e-26, %v129_v61 }
 0x105   :  { %11970 = vmatprep.subr.bf16.mxu1 %v13594_v36 }
 0x106   :  { %13076 = vrsqrt.f32 %v244_v11 }
 0x107   :  { %11190 = vmatmul.mubr.f32.vlgmr.msra.gmra.mrb[2].mxu0 %v13576_v14  ;;  %v126_v43 = vpop.xlane.xlu0 %125  ;;  %13078 = vrsqrt.f32 %v245_v0 }
 0x108   :  { %11948 = vmatpush3.bf16.xpose.msra.mxu0 %v13573_v27  ;;  %11196 = vmatprep.mubr.f32.mxu0 %v13541_v40  ;;  %v2456_v27 = vand.u32 4294901760, %v2455_v63  ;;  %v2969_v40 = vsub.f32 %v13692_v37, %v2968_v50  ;;  %v148_v10 = vadd.f32 1e-26, %v126_v43 }
 0x109   :  { %11974 = vmatprep.subr.bf16.mxu0 %v13701_v55 }
 0x10a   :  { %v11977_v47 = vpack.c.bf16 %v2463_v29, %v2456_v27  ;;  %v2970_v15 = vand.u32 4294901760, %v2969_v40  ;;  %13080 = vrsqrt.f32 %v148_v10 }
 0x10b   :  { %11232 = vmatmul.mubr.f32.vlgmr.msra.gmra.mrb[2].mxu1 %v13600_v22  ;;  %v231_v51 = vpop.xlane.xlu0 %230  ;;  %13082 = vrsqrt.f32 %v246_v35 }
 0x10c   :  { %11972 = vmatpush3.bf16.xpose.msra.mxu1 %v13594_v36  ;;  %11238 = vmatprep.mubr.f32.mxu1 %v13555_v24  ;;  %v2977_v36 = vand.u32 4294901760, %v2976_v57  ;;  %v2949_v24 = vand.u32 4294901760, %v2948_v16  ;;  %v11989_v16 = vpack.c.bf16 %v2461_v56, %v2454_v17 }
 0x10d   :  { %11998 = vmatprep.subr.bf16.mxu1 %v13722_v1 }
 0x10f   :  { %11197 = vmatmul.mubr.f32.vlgmr.msra.gmra.mrb[2].mxu0 %v13576_v14  ;;  %v12001_v14 = vpack.c.bf16 %v2977_v36, %v2970_v15  ;;  %v132_v25 = vpop.xlane.xlu0 %131 }
 0x110   :  { %11976 = vmatpush3.bf16.xpose.msra.mxu0 %v13701_v55  ;;  %11245 = vmatprep.mubr.f32.mxu0 %v2435_v54  ;;  %v150_v5 = vadd.f32 1e-26, %v132_v25  ;;  %v13077_v63 = vpop.eup %13076 }
 0x111   :  { %11978 = vmatprep.subr.bf16.mxu0 %v11977_v47  ;;  %v13079_v19 = vpop.eup %13078  ;;  %v292_v40 = vmul.f32 %v13077_v63, %v13352_v12 }
 0x112   :  { %v293_v57 = vmul.f32 %v13079_v19, %v13357_v13 }
 0x113   :  { %11239 = vmatmul.mubr.f32.vlgmr.msra.gmra.mrb[2].mxu1 %v13600_v22  ;;  %v247_v22 = vadd.f32 1e-26, %v231_v51  ;;  %v3387_v12 = vsel %vm86_vm0, %v292_v40, 0 }
 0x114   :  { %12000 = vmatpush3.bf16.xpose.msra.mxu1 %v13722_v1  ;;  %11287 = vmatprep.mubr.f32.mxu1 %v2949_v24  ;;  %v13081_v27 = vpop.eup %13080  ;;  %v3390_v13 = vsel %vm86_vm0, %v293_v57, 0  ;;  %v3393_v17 = vand.u32 4294901760, %v3387_v12 }
 0x115   :  { %12002 = vmatprep.subr.bf16.mxu1 %v12001_v14  ;;  %13084 = vrsqrt.f32 %v247_v22  ;;  %v13083_v29 = vpop.eup %13082  ;;  %v276_v45 = vmul.f32 %v13081_v27, %v13368_v20  ;;  %v3396_v56 = vand.u32 4294901760, %v3390_v13  ;;  %v12013_v20 = vpack.c.bf16 %v2975_v23, %v2968_v50 }
 0x116   :  { %13086 = vrsqrt.f32 %v150_v5  ;;  %v13803_v36 = vsub.f32 %v3387_v12, %v3393_v17 }
 0x117   :  { %11246 = vmatmul.mubr.f32.vlgmr.msra.gmra.mrb[4].mxu0 %v2445_v52  ;;  %13088 = vrsqrt.f32 %v149_v8  ;;  %v13805_v24 = vsub.f32 %v3390_v13, %v3396_v56  ;;  %v13828_v26 = vpack.c.bf16 %v3396_v56, %v3393_v17 }
 0x118   :  { %11980 = vmatpush3.bf16.xpose.msra.mxu0 %v11977_v47  ;;  %11252 = vmatprep.mubr.f32.mxu0 %v13669_v3  ;;  %13090 = vrsqrt.f32 %v151_v6  ;;  %v294_v47 = vmul.f32 %v13083_v29, %v13373_v21  ;;  %v3381_v21 = vsel %vm86_vm0, %v276_v45, 0 }
 0x119   :  { %11982 = vmatprep.subr.bf16.mxu0 %v11981_v62  ;;  %v13799_v37 = vand.u32 4294901760, %v3381_v21 }
 0x11b   :  { %11288 = vmatmul.mubr.f32.vlgmr.msra.gmra.mrb[4].mxu1 %v2959_v59 }
 0x11c   :  { %12004 = vmatpush3.bf16.xpose.msra.mxu1 %v12001_v14  ;;  %11294 = vmatprep.mubr.f32.mxu1 %v13683_v49 }
 0x11d   :  { %12006 = vmatprep.subr.bf16.mxu1 %v12005_v33 }
 0x11f   :  { %11253 = vmatmul.mubr.f32.vlgmr.msra.gmra.mrb[4].mxu0 %v13704_v18  ;;  %v13085_v43 = vpop.eup %13084 }
 0x120   :  { %11984 = vmatpush3.bf16.xpose.msra.mxu0 %v11981_v62  ;;  %11259 = vmatprep.mubr.f32.mxu0 %v13681_v41  ;;  %v13087_v54 = vpop.eup %13086  ;;  %v295_v15 = vmul.f32 %v13085_v43, %v13384_v30  ;;  %v3901_v30 = vsel %vm86_vm0, %v294_v47, 0 }
 0x121   :  { %11986 = vmatprep.subr.bf16.mxu0 %v13701_v55  ;;  %v278_v42 = vmul.f32 %v13087_v54, %v13400_v38  ;;  %v13089_v44 = vpop.eup %13088  ;;  %v3907_v50 = vand.u32 4294901760, %v3901_v30 }
 0x122   :  { %v3904_v41 = vsel %vm86_vm0, %v295_v15, 0  ;;  %v13091_v2 = vpop.eup %13090 }
 0x123   :  { %11295 = vmatmul.mubr.f32.vlgmr.msra.gmra.mrb[4].mxu1 %v13728_v28  ;;  %v3895_v38 = vsel %vm86_vm0, %v278_v42, 0  ;;  %v3910_v23 = vand.u32 4294901760, %v3904_v41  ;;  %v13820_v51 = vsub.f32 %v3901_v30, %v3907_v50 }
 0x124   :  { %12008 = vmatpush3.bf16.xpose.msra.mxu1 %v12005_v33  ;;  %11301 = vmatprep.mubr.f32.mxu1 %v13699_v4  ;;  %v13808_v4 = vand.u32 4294901760, %v3895_v38 }
 0x125   :  { %12010 = vmatprep.subr.bf16.mxu1 %v13722_v1  ;;  %v13822_v11 = vsub.f32 %v3904_v41, %v3910_v23  ;;  %v3996_v53 = vand.u32 4294901760, %v13820_v51  ;;  %v13847_v35 = vpack.c.bf16 %v3910_v23, %v3907_v50  ;;  %v13924_v50 = vld [vmem:[%s16891_s2] sm:$0xff]  ;;  %v13929_v23 = vld [vmem:[%s16891_s2 + $0x8] sm:$0xff] }
 0x127   :  { %11260 = vmatmul.mubr.f32.vlgmr.msra.gmra.mrb[4].mxu0 %v13726_v7  ;;  %v3482_v7 = vand.u32 4294901760, %v13803_v36  ;;  %v4003_v10 = vand.u32 4294901760, %v13822_v11 }
 0x128   :  { %11988 = vmatpush3.bf16.xpose.msra.mxu0 %v13701_v55  ;;  %11266 = vmatprep.mubr.f32.mxu0 %v2433_v48  ;;  %v277_v48 = vmul.f32 %v13089_v44, %v13389_v31  ;;  %v279_v31 = vmul.f32 %v13091_v2, %v13405_v39  ;;  %v13826_v39 = vsub.f32 %v3895_v38, %v13808_v4 }
 0x129   :  { %11990 = vmatprep.subr.bf16.mxu0 %v11989_v16  ;;  %v3483_v0 = vsub.f32 %v13803_v36, %v3482_v7  ;;  %v4004_v59 = vsub.f32 %v13822_v11, %v4003_v10  ;;  %v12061_v45 = vpack.c.bf16 %v4003_v10, %v3996_v53 }
 0x12a   :  { %v3384_v60 = vsel %vm86_vm0, %v277_v48, 0  ;;  %v3898_v14 = vsel %vm86_vm0, %v279_v31, 0  ;;  %v3975_v25 = vand.u32 4294901760, %v13826_v39  ;;  %v13942_v31 = vld [vmem:[%s16891_s2 + $0x18] sm:$0xff] }
 0x12b   :  { %11302 = vmatmul.mubr.f32.vlgmr.msra.gmra.mrb[4].mxu1 %v13745_v46  ;;  %v13831_v46 = vand.u32 4294901760, %v3384_v60  ;;  %v13851_v22 = vand.u32 4294901760, %v3898_v14  ;;  %v3484_v5 = vand.u32 4294901760, %v3483_v0  ;;  %v4005_v27 = vand.u32 4294901760, %v4004_v59 }
 0x12c   :  { %12012 = vmatpush3.bf16.xpose.msra.mxu1 %v13722_v1  ;;  %11308 = vmatprep.mubr.f32.mxu1 %v2947_v34  ;;  %v13813_v34 = vsub.f32 %v3381_v21, %v13799_v37  ;;  %v3976_v33 = vsub.f32 %v13826_v39, %v3975_v25 }
 0x12d   :  { %12014 = vmatprep.subr.bf16.mxu1 %v12013_v20  ;;  %v3470_v62 = vsub.f32 %v3384_v60, %v13831_v46  ;;  %v3984_v9 = vsub.f32 %v3898_v14, %v13851_v22 }
 0x12e   :  { %v3977_v29 = vand.u32 4294901760, %v3976_v33 }
 0x12f   :  { %11267 = vmatmul.mubr.f32.vlgmr.msra.gmra.mrb[4].mxu0 %v2443_v32  ;;  %v3489_v32 = vand.u32 4294901760, %v13805_v24  ;;  %v3471_v8 = vand.u32 4294901760, %v3470_v62 }
 0x130   :  { %11992 = vmatpush3.bf16.xpose.msra.mxu0 %v11989_v16  ;;  %11273 = vmatprep.mubr.f32.mxu0 %v13669_v3 }
 0x131   :  { %11994 = vmatprep.subr.bf16.mxu0 %v13701_v55  ;;  %v3490_v52 = vsub.f32 %v13805_v24, %v3489_v32  ;;  %v12037_v16 = vpack.c.bf16 %v3489_v32, %v3482_v7  ;;  %v4587_v32 = vand.u32 4294901760, %v13942_v31 }
 0x133   :  { %11309 = vmatmul.mubr.f32.vlgmr.msra.gmra.mrb[4].mxu1 %v2957_v58  ;;  %v3461_v58 = vand.u32 4294901760, %v13813_v34 }
 0x134   :  { %12016 = vmatpush3.bf16.xpose.msra.mxu1 %v12013_v20  ;;  %11315 = vmatprep.mubr.f32.mxu1 %v13683_v49 }
 0x135   :  { %12018 = vmatprep.subr.bf16.mxu1 %v13722_v1  ;;  %v3462_v61 = vsub.f32 %v13813_v34, %v3461_v58 }
 0x137   :  { %11274 = vmatmul.mubr.f32.vlgmr.msra.gmra.mrb[4].mxu0 %v13704_v18  ;;  %v3463_v63 = vand.u32 4294901760, %v3462_v61 }
 0x138   :  { %11996 = vmatpush3.bf16.xpose.msra.mxu0 %v13701_v55  ;;  %11280 = vmatprep.mubr.f32.mxu0 %v13669_v3  ;;  %v3491_v55 = vand.u32 4294901760, %v3490_v52  ;;  %v3997_v3 = vsub.f32 %v13820_v51, %v3996_v53 }
 0x139   :  { %12022 = vmatprep.subr.bf16.mxu0 %v13828_v26 }
 0x13a   :  { %v12025_v19 = vpack.c.bf16 %v3491_v55, %v3484_v5  ;;  %v3998_v6 = vand.u32 4294901760, %v3997_v3 }
 0x13b   :  { %11316 = vmatmul.mubr.f32.vlgmr.msra.gmra.mrb[4].mxu1 %v13728_v28 }
 0x13c   :  { %12020 = vmatpush3.bf16.xpose.msra.mxu1 %v13722_v1  ;;  %11322 = vmatprep.mubr.f32.mxu1 %v13683_v49  ;;  %v3472_v1 = vsub.f32 %v3470_v62, %v3471_v8  ;;  %v3985_v49 = vand.u32 4294901760, %v3984_v9  ;;  %v12049_v40 = vpack.c.bf16 %v4005_v27, %v3998_v6 }
 0x13d   :  { %12046 = vmatprep.subr.bf16.mxu1 %v13847_v35 }
 0x13e   :  { %v3473_v57 = vand.u32 4294901760, %v3472_v1  ;;  %v3986_v43 = vsub.f32 %v3984_v9, %v3985_v49 }
 0x13f   :  { %11281 = vmatmul.mubr.f32.vlgmr.msra.gmra.mrb[4].mxu0 %v13704_v18  ;;  %v12029_v18 = vpack.c.bf16 %v13805_v24, %v13803_v36  ;;  %v4578_v36 = vand.u32 4294901760, %v13924_v50  ;;  %v4581_v24 = vand.u32 4294901760, %v13929_v23 }
 0x140   :  { %12024 = vmatpush3.bf16.xpose.msra.mxu0 %v13828_v26  ;;  %11329 = vmatprep.mubr.f32.mxu0 %v3463_v63  ;;  %v3987_v54 = vand.u32 4294901760, %v3986_v43 }
 0x141   :  { %12026 = vmatprep.subr.bf16.mxu0 %v12025_v19  ;;  %v13953_v60 = vpack.c.bf16 %v4581_v24, %v4578_v36 }
 0x143   :  { %11323 = vmatmul.mubr.f32.vlgmr.msra.gmra.mrb[4].mxu1 %v13728_v28  ;;  %v12053_v28 = vpack.c.bf16 %v13822_v11, %v13820_v51  ;;  %v13960_v51 = vld [vmem:[%s16891_s2 + $0x28] sm:$0xff] }
 0x144   :  { %12048 = vmatpush3.bf16.xpose.msra.mxu1 %v13847_v35  ;;  %11371 = vmatprep.mubr.f32.mxu1 %v3977_v29 }
 0x145   :  { %12050 = vmatprep.subr.bf16.mxu1 %v12049_v40 }
 0x147   :  { %11330 = vmatmul.mubr.f32.vlgmr.msra.gmra.mrb[6].mxu0 %v3473_v57 }
 0x148   :  { %12028 = vmatpush3.bf16.xpose.msra.mxu0 %v12025_v19  ;;  %11336 = vmatprep.mubr.f32.mxu0 %v13799_v37 }
 0x149   :  { %12030 = vmatprep.subr.bf16.mxu0 %v12029_v18 }
 0x14b   :  { %11372 = vmatmul.mubr.f32.vlgmr.msra.gmra.mrb[6].mxu1 %v3987_v54 }
 0x14c   :  { %12052 = vmatpush3.bf16.xpose.msra.mxu1 %v12049_v40  ;;  %11378 = vmatprep.mubr.f32.mxu1 %v13808_v4 }
 0x14d   :  { %12054 = vmatprep.subr.bf16.mxu1 %v12053_v28 }
 0x14f   :  { %11337 = vmatmul.mubr.f32.vlgmr.msra.gmra.mrb[6].mxu0 %v13831_v46 }
 0x150   :  { %12032 = vmatpush3.bf16.xpose.msra.mxu0 %v12029_v18  ;;  %11343 = vmatprep.mubr.f32.mxu0 %v13813_v34  ;;  %v13947_v34 = vld [vmem:[%s16891_s2 + $0x20] sm:$0xff] }
 0x151   :  { %12034 = vmatprep.subr.bf16.mxu0 %v13828_v26  ;;  %v4590_v11 = vand.u32 4294901760, %v13947_v34 }
 0x153   :  { %11379 = vmatmul.mubr.f32.vlgmr.msra.gmra.mrb[6].mxu1 %v13851_v22 }
 0x154   :  { %12056 = vmatpush3.bf16.xpose.msra.mxu1 %v12053_v28  ;;  %11385 = vmatprep.mubr.f32.mxu1 %v13826_v39  ;;  %v4593_v39 = vand.u32 4294901760, %v13960_v51 }
 0x155   :  { %12058 = vmatprep.subr.bf16.mxu1 %v13847_v35 }
 0x157   :  { %11344 = vmatmul.mubr.f32.vlgmr.msra.gmra.mrb[6].mxu0 %v3470_v62 }
 0x158   :  { %12036 = vmatpush3.bf16.xpose.msra.mxu0 %v13828_v26  ;;  %11350 = vmatprep.mubr.f32.mxu0 %v3461_v58 }
 0x159   :  { %12038 = vmatprep.subr.bf16.mxu0 %v12037_v16 }
 0x15b   :  { %11386 = vmatmul.mubr.f32.vlgmr.msra.gmra.mrb[6].mxu1 %v3984_v9 }
 0x15c   :  { %12060 = vmatpush3.bf16.xpose.msra.mxu1 %v13847_v35  ;;  %11392 = vmatprep.mubr.f32.mxu1 %v3975_v25 }
 0x15d   :  { %12062 = vmatprep.subr.bf16.mxu1 %v12061_v45 }
 0x15f   :  { %11351 = vmatmul.mubr.f32.vlgmr.msra.gmra.mrb[6].mxu0 %v3471_v8 }
 0x160   :  { %12040 = vmatpush3.bf16.xpose.msra.mxu0 %v12037_v16  ;;  %11357 = vmatprep.mubr.f32.mxu0 %v13799_v37 }
 0x161   :  { %12042 = vmatprep.subr.bf16.mxu0 %v13828_v26 }
 0x163   :  { %11393 = vmatmul.mubr.f32.vlgmr.msra.gmra.mrb[6].mxu1 %v3985_v49 }
 0x164   :  { %12064 = vmatpush3.bf16.xpose.msra.mxu1 %v12061_v45  ;;  %11399 = vmatprep.mubr.f32.mxu1 %v13808_v4 }
 0x165   :  { %12066 = vmatprep.subr.bf16.mxu1 %v13847_v35 }
 0x167   :  { %11358 = vmatmul.mubr.f32.vlgmr.msra.gmra.mrb[6].mxu0 %v13831_v46 }
 0x168   :  { %12044 = vmatpush3.bf16.xpose.msra.mxu0 %v13828_v26  ;;  %11364 = vmatprep.mubr.f32.mxu0 %v13799_v37 }
 0x169   :  { %12070 = vmatprep.subr.bf16.mxu0 %v13953_v60 }
 0x16b   :  { %11400 = vmatmul.mubr.f32.vlgmr.msra.gmra.mrb[6].mxu1 %v13851_v22 }
 0x16c   :  { %12068 = vmatpush3.bf16.xpose.msra.mxu1 %v13847_v35  ;;  %11406 = vmatprep.mubr.f32.mxu1 %v13808_v4  ;;  %v13937_v4 = vld [vmem:[%s16891_s2 + $0x10] sm:$0xff]  ;;  %s13095_s2 = smov 127  }
 0x16d   :  { %v4584_v7 = vand.u32 4294901760, %v13937_v4 }
 0x16f   :  { %11365 = vmatmul.mubr.f32.vlgmr.msra.gmra.mrb[6].mxu0 %v13831_v46  ;;  %v13970_v26 = vpack.c.bf16 %v4587_v32, %v4584_v7  ;;  %v13978_v46 = vpack.c.bf16 %v4593_v39, %v4590_v11 }
 0x170   :  { %12072 = vmatpush3.bf16.msra.mxu0 %v13953_v60 }
 0x171   :  { %12074 = vmatprep.subr.bf16.mxu0 %v13970_v26 }
 0x173   :  { %11407 = vmatmul.mubr.f32.vlgmr.msra.gmra.mrb[6].mxu1 %v13851_v22 }
 0x174   :  { %12076 = vmatpush3.bf16.msra.mxu0 %v13970_v26 }
 0x175   :  { %12078 = vmatprep.subr.bf16.mxu0 %v13978_v46 }
 0x178   :  { %12080 = vmatpush3.bf16.msra.mxu0 %v13978_v46 }
 0x1b2   :  { %v11114_v12 = vpop.f32.mrb[0].mxu0 }
 0x1b3   :  { %v4426_v13 = vrot.slane %v11114_v12, 1  ;;  %v4475_v47 = vrot.slane %v11114_v12, 2  ;;  %v13908_v15 = vpop.f32.mrb[1].mxu0 }
 0x1b4   :  { %v4425_v42 = vrot.slane %v13908_v15, 1  ;;  %v4474_v44 = vrot.slane %v13908_v15, 2 }
 0x1b6   :  { %v11156_v17 = vpop.f32.mrb[0].mxu1  ;;  %v4427_v56 = vsel %vm4424_vm2, %v4425_v42, %v4426_v13  ;;  %v4476_v20 = vsel %vm4473_vm3, %v4474_v44, %v4475_v47 }
 0x1b7   :  { %v4429_v21 = vrot.slane %v11156_v17, 1  ;;  %v4478_v30 = vrot.slane %v11156_v17, 2  ;;  %4449 = vrot.lane.b32.xlu0 %v4427_v56, %s13092_s0  ;;  %v13915_v41 = vpop.f32.mrb[1].mxu1 }
 0x1b8   :  { %v4428_v38 = vrot.slane %v13915_v41, 1  ;;  %v4477_v48 = vrot.slane %v13915_v41, 2 }
 0x1ba   :  { %v4430_v37 = vsel %vm4424_vm2, %v4428_v38, %v4429_v21  ;;  %v4479_v2 = vsel %vm4473_vm3, %v4477_v48, %v4478_v30 }
 0x1bb   :  { %4451 = vrot.lane.b32.xlu1 %v4430_v37, %s13092_s0 }
 0x1bf   :  { %4498 = vrot.lane.b32.xlu1 %v4476_v20, %s13093_s16 }
 0x1c3   :  { %4500 = vrot.lane.b32.xlu1 %v4479_v2, %s13093_s16 }
 0x1e2   :  { %v11198_v58 = vpop.f32.mrb[2].mxu0 }
 0x1e3   :  { %v4432_v14 = vrot.slane %v11198_v58, 1  ;;  %v4481_v0 = vrot.slane %v11198_v58, 2  ;;  %v13984_v52 = vpop.f32.mrb[3].mxu0 }
 0x1e4   :  { %v4431_v53 = vrot.slane %v13984_v52, 1  ;;  %v4480_v10 = vrot.slane %v13984_v52, 2 }
 0x1e6   :  { %v11240_v25 = vpop.f32.mrb[2].mxu1  ;;  %v4433_v35 = vsel %vm4424_vm2, %v4431_v53, %v4432_v14  ;;  %v4482_v62 = vsel %vm4473_vm3, %v4480_v10, %v4481_v0 }
 0x1e7   :  { %v4435_v22 = vrot.slane %v11240_v25, 1  ;;  %v4484_v61 = vrot.slane %v11240_v25, 2  ;;  %4453 = vrot.lane.b32.xlu0 %v4433_v35, %s13092_s0  ;;  %v13991_v5 = vpop.f32.mrb[3].mxu1 }
 0x1e8   :  { %v4434_v55 = vrot.slane %v13991_v5, 1  ;;  %v4483_v3 = vrot.slane %v13991_v5, 2 }
 0x1ea   :  { %v4436_v59 = vsel %vm4424_vm2, %v4434_v55, %v4435_v22  ;;  %v4485_v33 = vsel %vm4473_vm3, %v4483_v3, %v4484_v61  ;;  %v14049_v61 = vsub.f32 %v13924_v50, %v4578_v36  ;;  %v14054_v55 = vsub.f32 %v13929_v23, %v4581_v24 }
 0x1eb   :  { %4502 = vrot.lane.b32.xlu0 %v4482_v62, %s13093_s16  ;;  %4455 = vrot.lane.b32.xlu1 %v4436_v59, %s13092_s0  ;;  %v14066_v23 = vsub.f32 %v13937_v4, %v4584_v7  ;;  %v14071_v36 = vsub.f32 %v13942_v31, %v4587_v32 }
 0x1ed   :  { %v4745_v4 = vand.u32 4294901760, %v14066_v23  ;;  %v4752_v7 = vand.u32 4294901760, %v14071_v36 }
 0x1ef   :  { %4504 = vrot.lane.b32.xlu1 %v4485_v33, %s13093_s16 }
 0x212   :  { %v11282_v8 = vpop.f32.mrb[4].mxu0 }
 0x213   :  { %v4438_v9 = vrot.slane %v11282_v8, 1  ;;  %v4487_v63 = vrot.slane %v11282_v8, 2  ;;  %v14000_v19 = vpop.f32.mrb[5].mxu0  ;;  %v4731_v8 = vand.u32 4294901760, %v14049_v61 }
 0x214   :  { %v4437_v6 = vrot.slane %v14000_v19, 1  ;;  %v4486_v27 = vrot.slane %v14000_v19, 2 }
 0x216   :  { %v11324_v29 = vpop.f32.mrb[4].mxu1  ;;  %v4439_v1 = vsel %vm4424_vm2, %v4437_v6, %v4438_v9  ;;  %v4488_v49 = vsel %vm4473_vm3, %v4486_v27, %v4487_v63  ;;  %v4738_v9 = vand.u32 4294901760, %v14054_v55 }
 0x217   :  { %v4441_v40 = vrot.slane %v11324_v29, 1  ;;  %v4490_v57 = vrot.slane %v11324_v29, 2  ;;  %4457 = vrot.lane.b32.xlu0 %v4439_v1, %s13092_s0  ;;  %v14007_v43 = vpop.f32.mrb[5].mxu1  ;;  %v4732_v29 = vsub.f32 %v14049_v61, %v4731_v8 }
 0x218   :  { %v4440_v18 = vrot.slane %v14007_v43, 1  ;;  %v4489_v54 = vrot.slane %v14007_v43, 2  ;;  %v4739_v1 = vsub.f32 %v14054_v55, %v4738_v9 }
 0x219   :  { %v4733_v32 = vand.u32 4294901760, %v4732_v29  ;;  %v14139_v29 = vpack.c.bf16 %v4752_v7, %v4745_v4 }
 0x21a   :  { %v4442_v28 = vsel %vm4424_vm2, %v4440_v18, %v4441_v40  ;;  %v4491_v16 = vsel %vm4473_vm3, %v4489_v54, %v4490_v57  ;;  %v4740_v40 = vand.u32 4294901760, %v4739_v1  ;;  %v4746_v57 = vsub.f32 %v14066_v23, %v4745_v4 }
 0x21b   :  { %4506 = vrot.lane.b32.xlu0 %v4488_v49, %s13093_s16  ;;  %4459 = vrot.lane.b32.xlu1 %v4442_v28, %s13092_s0  ;;  %v4753_v18 = vsub.f32 %v14071_v36, %v4752_v7  ;;  %v4758_v54 = vsub.f32 %v13947_v34, %v4590_v11  ;;  %v14098_v11 = vpack.c.bf16 %v14054_v55, %v14049_v61 }
 0x21c   :  { %v12081_v28 = vpack.c.bf16 %v4740_v40, %v4733_v32 }
 0x21e   :  { %12082 = vmatprep.subr.bf16.mxu0 %v12081_v28 }
 0x21f   :  { %4508 = vrot.lane.b32.xlu1 %v4491_v16, %s13093_s16  ;;  %v4765_v16 = vsub.f32 %v13960_v51, %v4593_v39  ;;  %v14102_v51 = vpack.c.bf16 %v14071_v36, %v14066_v23 }
 0x229   :  { %v4450_v12 = vpop.permute.xlu0 %4449 }
 0x22a   :  { %v4523_v13 = vsel %vm4522_vm4, %v13908_v15, %v4450_v12  ;;  %v4754_v12 = vand.u32 4294901760, %v4753_v18 }
 0x22d   :  { %v4452_v45 = vpop.permute.xlu1 %4451 }
 0x22e   :  { %v4524_v56 = vsel %vm4522_vm4, %v13915_v41, %v4452_v45  ;;  %v4747_v45 = vand.u32 4294901760, %v4746_v57 }
 0x231   :  { %v4499_v47 = vpop.permute.xlu1 %4498 }
 0x232   :  { %v4531_v42 = vsel %vm86_vm0, %v4523_v13, %v4499_v47  ;;  %v4759_v13 = vand.u32 4294901760, %v4758_v54  ;;  %v4766_v47 = vand.u32 4294901760, %v4765_v16 }
 0x233   :  { %v4554_v44 = vsel %vm4552_vm5, %v4531_v42, 0  ;;  %v12085_v42 = vpack.c.bf16 %v4754_v12, %v4747_v45 }
 0x234   :  { %v14020_v17 = vand.u32 4294901760, %v4554_v44  ;;  %v14141_v1 = vpack.c.bf16 %v4766_v47, %v4759_v13 }
 0x235   :  { %v4501_v20 = vpop.permute.xlu1 %4500 }
 0x236   :  { %v14025_v21 = vsub.f32 %v4554_v44, %v14020_v17  ;;  %v4532_v30 = vsel %vm86_vm0, %v4524_v56, %v4501_v20  ;;  %v4760_v44 = vsub.f32 %v4758_v54, %v4759_v13  ;;  %v4767_v56 = vsub.f32 %v4765_v16, %v4766_v47 }
 0x237   :  { %v4557_v38 = vsel %vm4552_vm5, %v4532_v30, 0  ;;  %v13094_v47 = vmov 0.0  }
 0x238   :  { %v14029_v48 = vand.u32 4294901760, %v4557_v38  ;;  %v4650_v15 = vand.u32 4294901760, %v14025_v21  ;;  %v4761_v20 = vand.u32 4294901760, %v4760_v44  ;;  %v4768_v30 = vand.u32 4294901760, %v4767_v56 }
 0x23a   :  { %v14033_v37 = vsub.f32 %v4557_v38, %v14029_v48  ;;  %v4651_v2 = vsub.f32 %v14025_v21, %v4650_v15  ;;  %v12089_v34 = vpack.c.bf16 %v4768_v30, %v4761_v20  ;;  %v14105_v38 = vpack.c.bf16 %v4765_v16, %v4758_v54 }
 0x23c   :  { %v4660_v41 = vand.u32 4294901760, %v14033_v37  ;;  %v4652_v58 = vand.u32 4294901760, %v4651_v2 }
 0x23e   :  { %11421 = vmatprep.mubr.f32.mxu0 %v4652_v58  ;;  %v4661_v14 = vsub.f32 %v14033_v37, %v4660_v41 }
 0x240   :  { %v4662_v0 = vand.u32 4294901760, %v4661_v14 }
 0x242   :  { %v11366_v53 = vpop.f32.mrb[6].mxu0  ;;  %11422 = vmatmul.mubr.f32.vlgmr.msra.gmra.mrb[8].mxu0 %v4662_v0 }
 0x243   :  { %v4444_v10 = vrot.slane %v11366_v53, 1  ;;  %v4493_v25 = vrot.slane %v11366_v53, 2  ;;  %v14042_v35 = vpop.f32.mrb[7].mxu0  ;;  %12084 = vmatpush3.bf16.msra.mxu0 %v12081_v28 }
 0x244   :  { %v4443_v62 = vrot.slane %v14042_v35, 1  ;;  %v4492_v22 = vrot.slane %v14042_v35, 2  ;;  %12086 = vmatprep.subr.bf16.mxu0 %v12085_v42 }
 0x246   :  { %v11408_v3 = vpop.f32.mrb[6].mxu1  ;;  %v4445_v59 = vsel %vm4424_vm2, %v4443_v62, %v4444_v10  ;;  %v4494_v33 = vsel %vm4473_vm3, %v4492_v22, %v4493_v25 }
 0x247   :  { %v4447_v63 = vrot.slane %v11408_v3, 1  ;;  %v4496_v6 = vrot.slane %v11408_v3, 2  ;;  %4461 = vrot.lane.b32.xlu0 %v4445_v59, %s13092_s0  ;;  %v14061_v50 = vpop.f32.mrb[7].mxu1  ;;  %12088 = vmatpush3.bf16.msra.mxu0 %v12085_v42 }
 0x248   :  { %v4446_v24 = vrot.slane %v14061_v50, 1  ;;  %v4495_v27 = vrot.slane %v14061_v50, 2  ;;  %12090 = vmatprep.subr.bf16.mxu0 %v12089_v34 }
 0x24a   :  { %v4448_v49 = vsel %vm4424_vm2, %v4446_v24, %v4447_v63  ;;  %v4497_v31 = vsel %vm4473_vm3, %v4495_v27, %v4496_v6  ;;  %v14137_v27 = vpack.c.bf16 %v4738_v9, %v4731_v8 }
 0x24b   :  { %4510 = vrot.lane.b32.xlu0 %v4494_v33, %s13093_s16  ;;  %4463 = vrot.lane.b32.xlu1 %v4448_v49, %s13092_s0 }
 0x24c   :  { %12092 = vmatpush3.bf16.msra.mxu0 %v12089_v34 }
 0x24d   :  { %12094 = vmatprep.subr.bf16.mxu0 %v14098_v11 }
 0x24f   :  { %4512 = vrot.lane.b32.xlu1 %v4497_v31, %s13093_s16 }
 0x253   :  { %5408 = vrot.lane.b32.xlu1 %v13094_v47, %s13095_s2 }
 0x257   :  { %5435 = vrot.lane.b32.xlu1 %v13094_v47, %s13096_s17 }
 0x259   :  { %v4454_v39 = vpop.permute.xlu0 %4453 }
 0x25a   :  { %v4525_v2 = vsel %vm4522_vm4, %v13984_v52, %v4454_v39 }
 0x25d   :  { %v4456_v58 = vpop.permute.xlu1 %4455  ;;  %v4503_v14 = vpop.permute.xlu0 %4502 }
 0x25e   :  { %v4533_v0 = vsel %vm86_vm0, %v4525_v2, %v4503_v14  ;;  %v4526_v25 = vsel %vm4522_vm4, %v13991_v5, %v4456_v58 }
 0x25f   :  { %v4560_v53 = vsel %vm4552_vm5, %v4533_v0, 0 }
 0x260   :  { %v14111_v10 = vand.u32 4294901760, %v4560_v53 }
 0x261   :  { %v4505_v62 = vpop.permute.xlu1 %4504 }
 0x262   :  { %v14116_v22 = vsub.f32 %v4560_v53, %v14111_v10  ;;  %v4534_v3 = vsel %vm86_vm0, %v4526_v25, %v4505_v62 }
 0x263   :  { %v4563_v59 = vsel %vm4552_vm5, %v4534_v3, 0 }
 0x264   :  { %v14120_v52 = vand.u32 4294901760, %v4563_v59  ;;  %v4670_v33 = vand.u32 4294901760, %v14116_v22 }
 0x266   :  { %v14124_v63 = vsub.f32 %v4563_v59, %v14120_v52  ;;  %v4671_v6 = vsub.f32 %v14116_v22, %v4670_v33 }
 0x268   :  { %v4672_v5 = vand.u32 4294901760, %v4671_v6  ;;  %v4680_v23 = vand.u32 4294901760, %v14124_v63 }
 0x26a   :  { %11424 = vmatprep.mubr.f32.mxu0 %v4672_v5  ;;  %v4681_v36 = vsub.f32 %v14124_v63, %v4680_v23 }
 0x26c   :  { %v4682_v24 = vand.u32 4294901760, %v4681_v36 }
 0x26e   :  { %11425 = vmatmul.mubr.f32.gmra.mrb[10].mxu0 %v4682_v24 }
 0x289   :  { %v4458_v49 = vpop.permute.xlu0 %4457 }
 0x28a   :  { %v4527_v31 = vsel %vm4522_vm4, %v14000_v19, %v4458_v49 }
 0x28d   :  { %v4460_v32 = vpop.permute.xlu1 %4459  ;;  %v4507_v40 = vpop.permute.xlu0 %4506 }
 0x28e   :  { %v4535_v57 = vsel %vm86_vm0, %v4527_v31, %v4507_v40  ;;  %v4528_v61 = vsel %vm4522_vm4, %v14007_v43, %v4460_v32  ;;  %v16905_v32 = vmov 0.0|0.0   ;;  %v5555_v40 = vld [vmem:[%s16893_s4] sm:$0xff] }
 0x28f   :  { %v4566_v18 = vsel %vm4552_vm5, %v4535_v57, 0  ;;  %12141 = vmatprep.subr.bf16.mxu1 %v16905_v32  ;;  %v5556_v57 = vld [vmem:[%s16893_s4 + $0x8] sm:$0xff] }
 0x290   :  { %v14147_v54 = vand.u32 4294901760, %v4566_v18 }
 0x291   :  { %v4509_v55 = vpop.permute.xlu1 %4508 }
 0x292   :  { %v14152_v8 = vsub.f32 %v4566_v18, %v14147_v54  ;;  %v4536_v9 = vsel %vm86_vm0, %v4528_v61, %v4509_v55  ;;  %v5557_v18 = vld [vmem:[%s16893_s4 + $0x10] sm:$0xff]  ;;  %v5606_v61 = vand.u32 4294901760, %v5556_v57  ;;  %v5558_v55 = vld [vmem:[%s16893_s4 + $0x18] sm:$0xff] }
 0x293   :  { %v4569_v4 = vsel %vm4552_vm5, %v4536_v9, 0  ;;  %v5559_v9 = vld [vmem:[%s16893_s4 + $0x20] sm:$0xff] }
 0x294   :  { %v14156_v19 = vand.u32 4294901760, %v4569_v4  ;;  %v4690_v7 = vand.u32 4294901760, %v14152_v8  ;;  %v14333_v47 = vsub.f32 %v5556_v57, %v5606_v61 }
 0x296   :  { %v14160_v28 = vsub.f32 %v4569_v4, %v14156_v19  ;;  %v4691_v16 = vsub.f32 %v14152_v8, %v4690_v7  ;;  %v5560_v4 = vld [vmem:[%s16893_s4 + $0x28] sm:$0xff] }
 0x298   :  { %v4692_v43 = vand.u32 4294901760, %v4691_v16  ;;  %v4700_v45 = vand.u32 4294901760, %v14160_v28  ;;  %v5561_v16 = vld [vmem:[%s16893_s4 + $0x30] sm:$0xff] }
 0x29a   :  { %11427 = vmatprep.mubr.f32.mxu0 %v4692_v43  ;;  %v4701_v12 = vsub.f32 %v14160_v28, %v4700_v45  ;;  %v5562_v43 = vld [vmem:[%s16893_s4 + $0x38] sm:$0xff] }
 0x29c   :  { %v4702_v13 = vand.u32 4294901760, %v4701_v12 }
 0x29e   :  { %11428 = vmatmul.mubr.f32.gmra.mrb[12].mxu0 %v4702_v13 }
 0x2b9   :  { %v4462_v42 = vpop.permute.xlu0 %4461 }
 0x2ba   :  { %v4529_v44 = vsel %vm4522_vm4, %v14042_v35, %v4462_v42 }
 0x2bd   :  { %v4464_v56 = vpop.permute.xlu1 %4463  ;;  %v4511_v20 = vpop.permute.xlu0 %4510 }
 0x2be   :  { %v4537_v30 = vsel %vm86_vm0, %v4529_v44, %v4511_v20  ;;  %v4530_v2 = vsel %vm4522_vm4, %v14061_v50, %v4464_v56  ;;  %v5564_v44 = vld [vmem:[%s16893_s4 + $0x48] sm:$0xff]  ;;  %v5565_v56 = vld [vmem:[%s16893_s4 + $0x50] sm:$0xff]  ;;  %v5566_v20 = vld [vmem:[%s16893_s4 + $0x58] sm:$0xff] }
 0x2bf   :  { %v4572_v34 = vsel %vm4552_vm5, %v4537_v30, 0 }
 0x2c0   :  { %v14175_v39 = vand.u32 4294901760, %v4572_v34 }
 0x2c1   :  { %v4513_v58 = vpop.permute.xlu1 %4512 }
 0x2c2   :  { %v4709_v14 = vsub.f32 %v4572_v34, %v14175_v39  ;;  %v4538_v0 = vsel %vm86_vm0, %v4530_v2, %v4513_v58  ;;  %v5567_v2 = vld [vmem:[%s16893_s4 + $0x60] sm:$0xff]  ;;  %vm8528_vm0 = vcmask 818176  }
 0x2c3   :  { %v4575_v53 = vsel %vm4552_vm5, %v4538_v0, 0  ;;  %v5624_v0 = vand.u32 4294901760, %v5562_v43 }
 0x2c4   :  { %v14182_v25 = vand.u32 4294901760, %v4575_v53  ;;  %v4710_v35 = vand.u32 4294901760, %v4709_v14 }
 0x2c6   :  { %v4719_v62 = vsub.f32 %v4575_v53, %v14182_v25  ;;  %v4711_v3 = vsub.f32 %v4709_v14, %v4710_v35 }
 0x2c8   :  { %v4712_v59 = vand.u32 4294901760, %v4711_v3  ;;  %v4720_v6 = vand.u32 4294901760, %v4719_v62  ;;  %v5568_v3 = vld [vmem:[%s16893_s4 + $0x68] sm:$0xff] }
 0x2ca   :  { %11430 = vmatprep.mubr.f32.mxu0 %v4712_v59  ;;  %v4721_v5 = vsub.f32 %v4719_v62, %v4720_v6  ;;  %v5569_v59 = vld [vmem:[%s16893_s4 + $0x70] sm:$0xff] }
 0x2cc   :  { %v4722_v36 = vand.u32 4294901760, %v4721_v5  ;;  %v14369_v5 = vsub.f32 %v5562_v43, %v5624_v0 }
 0x2ce   :  { %11431 = vmatmul.mubr.f32.gmra.mrb[14].mxu0 %v4722_v36 }
 0x2cf   :  { %11445 = vmatprep.mubr.f32.mxu0 %v14020_v17 }
 0x2d2   :  { %11446 = vmatmul.mubr.f32.vlgmr.msra.gmra.mrb[8].mxu0 %v14029_v48 }
 0x2d3   :  { %11448 = vmatprep.mubr.f32.mxu0 %v14111_v10  ;;  %12096 = vmatpush3.bf16.msra.mxu0 %v14098_v11 }
 0x2d4   :  { %12098 = vmatprep.subr.bf16.mxu0 %v14102_v51 }
 0x2d6   :  { %11449 = vmatmul.mubr.f32.gmra.mrb[10].mxu0 %v14120_v52 }
 0x2d7   :  { %11451 = vmatprep.mubr.f32.mxu0 %v14147_v54  ;;  %12100 = vmatpush3.bf16.msra.mxu0 %v14102_v51 }
 0x2d8   :  { %12102 = vmatprep.subr.bf16.mxu0 %v14105_v38 }
 0x2da   :  { %11452 = vmatmul.mubr.f32.gmra.mrb[12].mxu0 %v14156_v19 }
 0x2db   :  { %11454 = vmatprep.mubr.f32.mxu0 %v14175_v39  ;;  %12104 = vmatpush3.bf16.msra.mxu0 %v14105_v38 }
 0x2dc   :  { %12106 = vmatprep.subr.bf16.mxu0 %v13953_v60 }
 0x2de   :  { %11455 = vmatmul.mubr.f32.gmra.mrb[14].mxu0 %v14182_v25 }
 0x2df   :  { %11469 = vmatprep.mubr.f32.mxu0 %v14025_v21 }
 0x2e2   :  { %11470 = vmatmul.mubr.f32.vlgmr.msra.gmra.mrb[8].mxu0 %v14033_v37 }
 0x2e3   :  { %11472 = vmatprep.mubr.f32.mxu0 %v14116_v22  ;;  %12108 = vmatpush3.bf16.msra.mxu0 %v13953_v60 }
 0x2e4   :  { %12110 = vmatprep.subr.bf16.mxu0 %v13970_v26 }
 0x2e6   :  { %11473 = vmatmul.mubr.f32.gmra.mrb[10].mxu0 %v14124_v63 }
 0x2e7   :  { %11475 = vmatprep.mubr.f32.mxu0 %v14152_v8  ;;  %12112 = vmatpush3.bf16.msra.mxu0 %v13970_v26  ;;  %v5609_v8 = vand.u32 4294901760, %v5557_v18 }
 0x2e8   :  { %12114 = vmatprep.subr.bf16.mxu0 %v13978_v46 }
 0x2e9   :  { %v14335_v42 = vsub.f32 %v5557_v18, %v5609_v8 }
 0x2ea   :  { %11476 = vmatmul.mubr.f32.gmra.mrb[12].mxu0 %v14160_v28  ;;  %v5618_v28 = vand.u32 4294901760, %v5560_v4 }
 0x2eb   :  { %11478 = vmatprep.mubr.f32.mxu0 %v4709_v14  ;;  %12116 = vmatpush3.bf16.msra.mxu0 %v13978_v46  ;;  %v5621_v14 = vand.u32 4294901760, %v5561_v16 }
 0x2ec   :  { %12118 = vmatprep.subr.bf16.mxu0 %v14137_v27  ;;  %v14356_v58 = vsub.f32 %v5560_v4, %v5618_v28 }
 0x2ee   :  { %11479 = vmatmul.mubr.f32.gmra.mrb[14].mxu0 %v4719_v62  ;;  %v5636_v62 = vand.u32 4294901760, %v5566_v20 }
 0x2ef   :  { %11493 = vmatprep.mubr.f32.mxu0 %v4650_v15 }
 0x2f2   :  { %11494 = vmatmul.mubr.f32.vlgmr.msra.gmra.mrb[8].mxu0 %v4660_v41 }
 0x2f3   :  { %11496 = vmatprep.mubr.f32.mxu0 %v4670_v33  ;;  %12120 = vmatpush3.bf16.msra.mxu0 %v14137_v27 }
 0x2f4   :  { %12122 = vmatprep.subr.bf16.mxu0 %v14139_v29 }
 0x2f6   :  { %11497 = vmatmul.mubr.f32.gmra.mrb[10].mxu0 %v4680_v23 }
 0x2f7   :  { %11499 = vmatprep.mubr.f32.mxu0 %v4690_v7  ;;  %12124 = vmatpush3.bf16.msra.mxu0 %v14139_v29  ;;  %v5615_v7 = vand.u32 4294901760, %v5559_v9 }
 0x2f8   :  { %12126 = vmatprep.subr.bf16.mxu0 %v14141_v1 }
 0x2fa   :  { %11500 = vmatmul.mubr.f32.gmra.mrb[12].mxu0 %v4700_v45  ;;  %v5563_v45 = vld [vmem:[%s16893_s4 + $0x40] sm:$0xff] }
 0x2fb   :  { %11502 = vmatprep.mubr.f32.mxu0 %v4710_v35  ;;  %12128 = vmatpush3.bf16.msra.mxu0 %v14141_v1  ;;  %v5627_v53 = vand.u32 4294901760, %v5563_v45  ;;  %v5633_v35 = vand.u32 4294901760, %v5565_v56 }
 0x2fc   :  { %12130 = vmatprep.subr.bf16.mxu0 %v13953_v60 }
 0x2fd   :  { %v14371_v36 = vsub.f32 %v5563_v45, %v5627_v53 }
 0x2fe   :  { %11503 = vmatmul.mubr.f32.gmra.mrb[14].mxu0 %v4720_v6  ;;  %v14367_v6 = vsub.f32 %v5561_v16, %v5621_v14 }
 0x2ff   :  { %11517 = vmatprep.mubr.f32.mxu0 %v14020_v17 }
 0x302   :  { %11518 = vmatmul.mubr.f32.vlgmr.msra.gmra.mrb[8].mxu0 %v14029_v48 }
 0x303   :  { %11520 = vmatprep.mubr.f32.mxu0 %v14111_v10  ;;  %12132 = vmatpush3.bf16.msra.mxu0 %v13953_v60  ;;  %v10271_v60 = vld [vmem:[%s16892_s3] ss:$0 sm:$0xff] }
 0x304   :  { %12134 = vmatprep.subr.bf16.mxu0 %v13970_v26 }
 0x306   :  { %11521 = vmatmul.mubr.f32.gmra.mrb[10].mxu0 %v14120_v52 }
 0x307   :  { %11523 = vmatprep.mubr.f32.mxu0 %v14147_v54  ;;  %12136 = vmatpush3.bf16.msra.mxu0 %v13970_v26 }
 0x308   :  { %12138 = vmatprep.subr.bf16.mxu0 %v13978_v46 }
 0x30a   :  { %11524 = vmatmul.mubr.f32.gmra.mrb[12].mxu0 %v14156_v19 }
 0x30b   :  { %11526 = vmatprep.mubr.f32.mxu0 %v14175_v39  ;;  %12140 = vmatpush3.bf16.msra.mxu0 %v13978_v46 }
 0x30e   :  { %11527 = vmatmul.mubr.f32.gmra.mrb[14].mxu0 %v14182_v25 }
 0x30f   :  { %11541 = vmatprep.mubr.f32.mxu0 %v14020_v17 }
 0x312   :  { %11542 = vmatmul.mubr.f32.vlgmr.msra.gmra.mrb[8].mxu0 %v14029_v48 }
 0x313   :  { %11544 = vmatprep.mubr.f32.mxu0 %v14111_v10 }
 0x316   :  { %11545 = vmatmul.mubr.f32.gmra.mrb[10].mxu0 %v14120_v52 }
 0x317   :  { %11547 = vmatprep.mubr.f32.mxu0 %v14147_v54  ;;  %v5603_v54 = vand.u32 4294901760, %v5555_v40 }
 0x319   :  { %v14329_v12 = vpack.c.bf16 %v5606_v61, %v5603_v54  ;;  %v14331_v13 = vsub.f32 %v5555_v40, %v5603_v54 }
 0x31a   :  { %11548 = vmatmul.mubr.f32.gmra.mrb[12].mxu0 %v14156_v19  ;;  %v5612_v19 = vand.u32 4294901760, %v5558_v55 }
 0x31b   :  { %11550 = vmatprep.mubr.f32.mxu0 %v14175_v39  ;;  %17131 = vst [vmem:[#allocation2_spill] sm:$0xff] %v14329_v12  ;;  %v14350_v39 = vsub.f32 %v5559_v9, %v5615_v7  ;;  %12143 = vmatpush1.bf16.msra.mxu1 %v14329_v12 }
 0x31c   :  { %v14346_v30 = vpack.c.bf16 %v5612_v19, %v5609_v8  ;;  %v14348_v34 = vsub.f32 %v5558_v55, %v5612_v19  ;;  %12144 = vmatprep.subr.bf16.mxu1 %v16905_v32  ;;  %v14409_v55 = vpack.c.bf16 %v5624_v0, %v5621_v14 }
 0x31e   :  { %11551 = vmatmul.mubr.f32.gmra.mrb[14].mxu0 %v14182_v25  ;;  %17132 = vst [vmem:[#allocation3_spill] sm:$0xff] %v14346_v30  ;;  %v5630_v25 = vand.u32 4294901760, %v5564_v44  ;;  %17135 = vst [vmem:[#allocation6_spill] sm:$0xff] %v14409_v55 }
 0x31f   :  { %12146 = vmatpush1.bf16.msra.mxu1 %v14346_v30 }
 0x320   :  { %12147 = vmatprep.subr.bf16.mxu1 %v16905_v32  ;;  %v14419_v19 = vpack.c.bf16 %v5630_v25, %v5627_v53 }
 0x322   :  { %17139 = vst [vmem:[#allocation10_spill] sm:$0xff] %v14419_v19 }
 0x3e5   :  { %v11543_v26 = vpop.f32.mrb[8].mxu0 }
 0x3e6   :  { %v12717_v46 = vadd.f32 %v11543_v26, %v10271_v60  ;;  %v5343_v17 = vpop.f32.mrb[9].mxu0  ;;  %v5570_v26 = vld [vmem:[%s16893_s4 + $0x78] sm:$0xff] }
 0x3e7   :  { %v12718_v21 = vadd.f32 %v10271_v60, %v5343_v17  ;;  %v5572_v17 = vld [vmem:[%s16893_s4 + $0x88] sm:$0xff] }
 0x3e8   :  { %v14255_v48 = vmax.f32 %v12717_v46, 0.0  ;;  %v5571_v46 = vld [vmem:[%s16893_s4 + $0x80] sm:$0xff] }
 0x3e9   :  { %v14257_v15 = vmax.f32 %v12718_v21, 0.0  ;;  %v11546_v37 = vpop.f32.mrb[10].mxu0  ;;  %v14382_v21 = vpack.c.bf16 %v5618_v28, %v5615_v7  ;;  %v14423_v7 = vpack.c.bf16 %v5636_v62, %v5633_v35 }
 0x3ea   :  { %5437 = vrot.lane.b32.xlu1 %v14255_v48, %s13096_s17  ;;  %v5355_v41 = vpop.f32.mrb[11].mxu0  ;;  %v12719_v11 = vadd.f32 %v11546_v37, %v10271_v60  ;;  %v14384_v37 = vsub.f32 %v5564_v44, %v5630_v25  ;;  %v5409_v44 = vpop.permute.xlu1 %5408 }
 0x3eb   :  { %v12720_v50 = vadd.f32 %v10271_v60, %v5355_v41  ;;  %5406 = vrot.lane.b32.xlu0 %v14257_v15, %s13095_s2  ;;  %17133 = vst [vmem:[#allocation4_spill] sm:$0xff] %v14382_v21  ;;  %v14386_v41 = vsub.f32 %v5565_v56, %v5633_v35  ;;  %12149 = vmatpush1.bf16.msra.mxu1 %v14382_v21  ;;  %17140 = vst [vmem:[#allocation11_spill] sm:$0xff] %v14423_v7  ;;  %v5575_v35 = vld [vmem:[%s16893_s4 + $0xa0] sm:$0xff] }
 0x3ec   :  { %v14269_v22 = vmax.f32 %v12719_v11, 0.0  ;;  %v5574_v11 = vld [vmem:[%s16893_s4 + $0x98] sm:$0xff]  ;;  %12150 = vmatprep.subr.bf16.mxu1 %v16905_v32 }
 0x3ed   :  { %v14263_v51 = vmax.f32 %v12720_v50, 0.0  ;;  %v11549_v38 = vpop.f32.mrb[12].mxu0  ;;  %v5573_v50 = vld [vmem:[%s16893_s4 + $0x90] sm:$0xff]  ;;  %v5660_v18 = vand.u32 4294901760, %v5574_v11 }
 0x3ee   :  { %v5367_v10 = vpop.f32.mrb[13].mxu0  ;;  %v12721_v23 = vadd.f32 %v11549_v38, %v10271_v60  ;;  %v14395_v38 = vsub.f32 %v5566_v20, %v5636_v62  ;;  %v5657_v57 = vand.u32 4294901760, %v5573_v50  ;;  %v5436_v56 = vpop.permute.xlu1 %5435  ;;  %v5576_v62 = vld [vmem:[%s16893_s4 + $0xa8] sm:$0xff] }
 0x3ef   :  { %5439 = vrot.lane.b32.xlu1 %v14263_v51, %s13096_s17  ;;  %5433 = vrot.lane.b32.xlu0 %v14257_v15, %s13096_s17  ;;  %v12722_v52 = vadd.f32 %v10271_v60, %v5367_v10  ;;  %v5642_v10 = vand.u32 4294901760, %v5568_v3  ;;  %v14415_v4 = vsub.f32 %v5574_v11, %v5660_v18  ;;  %v5462_v20 = vsel %vm5460_vm6, %v5409_v44, %v5436_v56 }
 0x3f0   :  { %v14281_v27 = vmax.f32 %v12721_v23, 0.0  ;;  %v5651_v23 = vand.u32 4294901760, %v5571_v46  ;;  %v14413_v9 = vsub.f32 %v5573_v50, %v5657_v57  ;;  %12152 = vmatpush1.bf16.msra.mxu1 %v14409_v55  ;;  %v14439_v45 = vpack.c.bf16 %v5660_v18, %v5657_v57 }
 0x3f1   :  { %v11552_v33 = vpop.f32.mrb[14].mxu0  ;;  %v14275_v24 = vmax.f32 %v12722_v52, 0.0  ;;  %17138 = vst [vmem:[#allocation9_spill] sm:$0xff] %v14415_v4  ;;  %12153 = vmatprep.subr.bf16.mxu1 %v16905_v32  ;;  %v5471_v0 = vmax.f32 %v5462_v20, 0.0 }
 0x3f2   :  { %v5379_v63 = vpop.f32.mrb[15].mxu0  ;;  %v12723_v1 = vadd.f32 %v11552_v33, %v10271_v60  ;;  %v5645_v33 = vand.u32 4294901760, %v5569_v59  ;;  %v14406_v61 = vsub.f32 %v5571_v46, %v5651_v23  ;;  %17137 = vst [vmem:[#allocation8_spill] sm:$0xff] %v14413_v9  ;;  %17144 = vst [vmem:[#allocation15_spill] sm:$0xff] %v14439_v45  ;;  %v5577_v46 = vld [vmem:[%s16893_s4 + $0xb0] sm:$0xff] }
 0x3f3   :  { %5441 = vrot.lane.b32.xlu1 %v14269_v22, %s13096_s17  ;;  %5410 = vrot.lane.b32.xlu0 %v14255_v48, %s13095_s2  ;;  %v12724_v29 = vadd.f32 %v10271_v60, %v5379_v63  ;;  %v5639_v60 = vand.u32 4294901760, %v5567_v2  ;;  %v5648_v63 = vand.u32 4294901760, %v5570_v26  ;;  %v14460_v50 = vrot.slane %v5471_v0, 2 }
 0x3f4   :  { %v14293_v31 = vmax.f32 %v12723_v1, 0.0  ;;  %v14400_v1 = vsub.f32 %v5568_v3, %v5642_v10  ;;  %v14402_v40 = vsub.f32 %v5569_v59, %v5645_v33  ;;  %17134 = vst [vmem:[#allocation5_spill] sm:$0xff] %v14406_v61  ;;  %12155 = vmatpush1.bf16.msra.mxu1 %v14419_v19  ;;  %v14451_v3 = vrot.slane %v5471_v0, 1 }
 0x3f5   :  { %v14287_v49 = vmax.f32 %v12724_v29, 0.0  ;;  %v14397_v52 = vsub.f32 %v5567_v2, %v5639_v60  ;;  %v5654_v29 = vand.u32 4294901760, %v5572_v17  ;;  %v14404_v54 = vsub.f32 %v5570_v26, %v5648_v63  ;;  %12156 = vmatprep.subr.bf16.mxu1 %v16905_v32 }
 0x3f6   :  { %v14427_v28 = vpack.c.bf16 %v5642_v10, %v5639_v60  ;;  %v14431_v16 = vpack.c.bf16 %v5648_v63, %v5645_v33  ;;  %v5663_v60 = vand.u32 4294901760, %v5575_v35  ;;  %v5666_v26 = vand.u32 4294901760, %v5576_v62 }
 0x3f7   :  { %5443 = vrot.lane.b32.xlu1 %v14275_v24, %s13096_s17  ;;  %5412 = vrot.lane.b32.xlu0 %v14263_v51, %s13095_s2  ;;  %v14411_v8 = vsub.f32 %v5572_v17, %v5654_v29  ;;  %v14435_v43 = vpack.c.bf16 %v5654_v29, %v5651_v23  ;;  %v5578_v17 = vld [vmem:[%s16893_s4 + $0xb8] sm:$0xff]  ;;  %v5669_v10 = vand.u32 4294901760, %v5577_v46  ;;  %s13098_s4 = smov 64  }
 0x3f8   :  { %12158 = vmatpush1.bf16.msra.mxu1 %v14423_v7  ;;  %17141 = vst [vmem:[#allocation12_spill] sm:$0xff] %v14427_v28  ;;  %17142 = vst [vmem:[#allocation13_spill] sm:$0xff] %v14431_v16  ;;  %v5672_v33 = vand.u32 4294901760, %v5578_v17  ;;  %v14465_v63 = vpack.c.bf16 %v5666_v26, %v5663_v60  ;;  %v14467_v23 = vsub.f32 %v5575_v35, %v5663_v60  ;;  %v16901_v35 = vand.u32 4294901760, %v14333_v47 }
 0x3f9   :  { %17136 = vst [vmem:[#allocation7_spill] sm:$0xff] %v14411_v8  ;;  %12159 = vmatprep.subr.bf16.mxu1 %v16905_v32  ;;  %17143 = vst [vmem:[#allocation14_spill] sm:$0xff] %v14435_v43  ;;  %v14469_v29 = vsub.f32 %v5576_v62, %v5666_v26 }
 0x3fa   :  { %17145 = vst [vmem:[#allocation16_spill] sm:$0xff] %v14465_v63  ;;  %17146 = vst [vmem:[#allocation17_spill] sm:$0xff] %v14467_v23  ;;  %v14473_v20 = vpack.c.bf16 %v5672_v33, %v5669_v10  ;;  %v14479_v0 = vsub.f32 %v5578_v17, %v5672_v33 }
 0x3fb   :  { %5445 = vrot.lane.b32.xlu1 %v14281_v27, %s13096_s17  ;;  %5414 = vrot.lane.b32.xlu0 %v14269_v22, %s13095_s2  ;;  %17147 = vst [vmem:[#allocation18_spill] sm:$0xff] %v14469_v29 }
 0x3fc   :  { %12161 = vmatpush1.bf16.msra.mxu1 %v14427_v28  ;;  %17148 = vst [vmem:[#allocation19_spill] sm:$0xff] %v14473_v20  ;;  %17150 = vst [vmem:[#allocation21_spill] sm:$0xff] %v14479_v0 }
 0x3fd   :  { %12162 = vmatprep.subr.bf16.mxu1 %v16905_v32 }
 0x3ff   :  { %5447 = vrot.lane.b32.xlu1 %v14287_v49, %s13096_s17  ;;  %5416 = vrot.lane.b32.xlu0 %v14275_v24, %s13095_s2 }
 0x400   :  { %12164 = vmatpush1.bf16.msra.mxu1 %v14431_v16 }
 0x401   :  { %12165 = vmatprep.subr.bf16.mxu1 %v16905_v32 }
 0x403   :  { %5449 = vrot.lane.b32.xlu1 %v14293_v31, %s13096_s17  ;;  %5418 = vrot.lane.b32.xlu0 %v14281_v27, %s13095_s2 }
 0x404   :  { %12167 = vmatpush1.bf16.msra.mxu1 %v14435_v43 }
 0x405   :  { %12168 = vmatprep.subr.bf16.mxu1 %v16905_v32 }
 0x407   :  { %5420 = vrot.lane.b32.xlu0 %v14287_v49, %s13095_s2 }
 0x408   :  { %12170 = vmatpush1.bf16.msra.mxu1 %v14439_v45  ;;  %v16935_v45 = vand.u32 4294901760, %v14415_v4 }
 0x409   :  { %12171 = vmatprep.subr.bf16.mxu1 %v16905_v32 }
 0x40b   :  { %5422 = vrot.lane.b32.xlu0 %v14293_v31, %s13095_s2 }
 0x40c   :  { %12173 = vmatpush1.bf16.msra.mxu1 %v14465_v63 }
 0x40d   :  { %12174 = vmatprep.subr.bf16.mxu1 %v16905_v32 }
 0x410   :  { %12176 = vmatpush1.bf16.msra.mxu1 %v14473_v20 }
 0x411   :  { %12177 = vmatprep.subr.bf16.mxu1 %v16905_v32 }
 0x45c   :  { %v5438_v2 = vpop.permute.xlu1 %5437 }
 0x45d   :  { %v5407_v14 = vpop.permute.xlu0 %5406 }
 0x461   :  { %v5440_v53 = vpop.permute.xlu1 %5439  ;;  %v5434_v25 = vpop.permute.xlu0 %5433 }
 0x462   :  { %v5461_v59 = vsel %vm5460_vm6, %v5407_v14, %v5434_v25  ;;  %v14475_v14 = vsub.f32 %v5577_v46, %v5669_v10  ;;  %v16903_v25 = vand.u32 4294901760, %v14331_v13 }
 0x463   :  { %v14463_v11 = vmax.f32 %v14257_v15, %v5461_v59 }
 0x464   :  { %17149 = vst [vmem:[#allocation20_spill] sm:$0xff] %v14475_v14  ;;  %v5815_v26 = vsub.f32 %v14331_v13, %v16903_v25 }
 0x465   :  { %v5529_v57 = vrot.slane %v14463_v11, 2  ;;  %v5442_v18 = vpop.permute.xlu1 %5441  ;;  %v5411_v44 = vpop.permute.xlu0 %5410  ;;  %v5488_v56 = vrot.slane %v14463_v11, 1 }
 0x466   :  { %v5463_v15 = vsel %vm5460_vm6, %v5411_v44, %v5438_v2 }
 0x467   :  { %v14484_v62 = vmax.f32 %v14255_v48, %v5463_v15  ;;  %v5490_v59 = vsel %vm4424_vm2, %v5488_v56, %v14451_v3  ;;  %v5531_v60 = vsel %vm4473_vm3, %v5529_v57, %v14460_v50  ;;  %v5822_v48 = vsub.f32 %v14333_v47, %v16901_v35 }
 0x468   :  { %5505 = vrot.lane.b32.xlu0 %v5490_v59, %s13098_s4  ;;  %v5586_v2 = vsel %vm5546_vm7, %v5531_v60, 0  ;;  %v5816_v57 = vand.u32 4294901760, %v5815_v26  ;;  %v16902_v56 = vand.u32 4294901760, %v14335_v42 }
 0x469   :  { %v5413_v46 = vpop.permute.xlu0 %5412  ;;  %v5491_v17 = vrot.slane %v14484_v62, 1  ;;  %v14500_v10 = vand.u32 4294901760, %v5586_v2  ;;  %v5823_v44 = vand.u32 4294901760, %v5822_v48  ;;  %v5444_v15 = vpop.permute.xlu1 %5443  ;;  %v16904_v48 = vand.u32 4294901760, %v14348_v34 }
 0x46a   :  { %v5464_v33 = vsel %vm5460_vm6, %v5413_v46, %v5440_v53  ;;  %v5829_v26 = vsub.f32 %v14335_v42, %v16902_v56 }
 0x46b   :  { %v14506_v59 = vmax.f32 %v14263_v51, %v5464_v33  ;;  %v5492_v60 = vsel %vm4424_vm2, %v5491_v17, %v14451_v3  ;;  %v14511_v35 = vsub.f32 %v5586_v2, %v14500_v10  ;;  %v14515_v53 = vpack.c.bf16 %v5823_v44, %v5816_v57 }
 0x46c   :  { %5507 = vrot.lane.b32.xlu1 %v5492_v60, %s13098_s4  ;;  %v5830_v33 = vand.u32 4294901760, %v5829_v26  ;;  %v5836_v60 = vsub.f32 %v14348_v34, %v16904_v48  ;;  %v16910_v57 = vand.u32 4294901760, %v14350_v39 }
 0x46d   :  { %v5415_v51 = vpop.permute.xlu0 %5414  ;;  %v5493_v46 = vrot.slane %v14506_v59, 1  ;;  %v16909_v17 = vand.u32 4294901760, %v14511_v35  ;;  %v5446_v48 = vpop.permute.xlu1 %5445 }
 0x46e   :  { %v5465_v2 = vsel %vm5460_vm6, %v5415_v51, %v5442_v18  ;;  %v5837_v18 = vand.u32 4294901760, %v5836_v60  ;;  %v5843_v26 = vsub.f32 %v14350_v39, %v16910_v57  ;;  %v16911_v51 = vand.u32 4294901760, %v14356_v58 }
 0x46f   :  { %v14529_v44 = vmax.f32 %v14269_v22, %v5465_v2  ;;  %v5494_v56 = vsel %vm4424_vm2, %v5493_v46, %v14451_v3  ;;  %v5693_v25 = vsub.f32 %v14511_v35, %v16909_v17  ;;  %v16912_v57 = vand.u32 4294901760, %v14367_v6 }
 0x470   :  { %5509 = vrot.lane.b32.xlu0 %v5494_v56, %s13098_s4  ;;  %v14543_v20 = vpack.c.bf16 %v5837_v18, %v5830_v33  ;;  %v5844_v60 = vand.u32 4294901760, %v5843_v26 }
 0x471   :  { %v5417_v32 = vpop.permute.xlu0 %5416  ;;  %v5694_v22 = vand.u32 4294901760, %v5693_v25  ;;  %v5495_v2 = vrot.slane %v14529_v44, 1  ;;  %v5850_v25 = vsub.f32 %v14356_v58, %v16911_v51 }
 0x472   :  { %v5466_v46 = vsel %vm5460_vm6, %v5417_v32, %v5444_v15  ;;  %v16920_v32 = vand.u32 4294901760, %v14369_v5 }
 0x473   :  { %v14546_v17 = vmax.f32 %v14275_v24, %v5466_v46  ;;  %5695 = vmatprep.mubr.f32.mxu1 %v5694_v22  ;;  %v5496_v56 = vsel %vm4424_vm2, %v5495_v2, %v14451_v3  ;;  %v5851_v18 = vand.u32 4294901760, %v5850_v25  ;;  %v5857_v22 = vsub.f32 %v14367_v6, %v16912_v57  ;;  %v5448_v2 = vpop.permute.xlu1 %5447 }
 0x474   :  { %5511 = vrot.lane.b32.xlu1 %v5496_v56, %s13098_s4 }
 0x475   :  { %v5419_v15 = vpop.permute.xlu0 %5418  ;;  %v5497_v33 = vrot.slane %v14546_v17, 1  ;;  %v14567_v56 = vpack.c.bf16 %v5851_v18, %v5844_v60  ;;  %v5858_v51 = vand.u32 4294901760, %v5857_v22  ;;  %v16917_v22 = vand.u32 4294901760, %v14384_v37 }
 0x476   :  { %v5467_v24 = vsel %vm5460_vm6, %v5419_v15, %v5446_v48  ;;  %v5864_v48 = vsub.f32 %v14369_v5, %v16920_v32 }
 0x477   :  { %v14562_v26 = vmax.f32 %v14281_v27, %v5467_v24  ;;  %v5498_v46 = vsel %vm4424_vm2, %v5497_v33, %v14451_v3  ;;  %v16915_v27 = vand.u32 4294901760, %v14371_v36 }
 0x478   :  { %5513 = vrot.lane.b32.xlu0 %v5498_v46, %s13098_s4  ;;  %v5865_v63 = vand.u32 4294901760, %v5864_v48 }
 0x479   :  { %v5421_v25 = vpop.permute.xlu0 %5420  ;;  %v5499_v15 = vrot.slane %v14562_v26, 1  ;;  %v5871_v18 = vsub.f32 %v14371_v36, %v16915_v27  ;;  %v5540_v19 = vrot.slane %v14562_v26, 2 }
 0x47a   :  { %v5468_v57 = vsel %vm5460_vm6, %v5421_v25, %v5448_v2  ;;  %v14581_v33 = vpack.c.bf16 %v5865_v63, %v5858_v51  ;;  %v5450_v2 = vpop.permute.xlu1 %5449  ;;  %v5878_v25 = vsub.f32 %v14384_v37, %v16917_v22 }
 0x47b   :  { %v14576_v24 = vmax.f32 %v14287_v49, %v5468_v57  ;;  %v5500_v60 = vsel %vm4424_vm2, %v5499_v15, %v14451_v3  ;;  %v5872_v57 = vand.u32 4294901760, %v5871_v18 }
 0x47c   :  { %5515 = vrot.lane.b32.xlu1 %v5500_v60, %s13098_s4  ;;  %v5879_v15 = vand.u32 4294901760, %v5878_v25  ;;  %v16916_v60 = vand.u32 4294901760, %v14386_v41 }
 0x47d   :  { %v5423_v46 = vpop.permute.xlu0 %5422  ;;  %v5501_v48 = vrot.slane %v14576_v24, 1 }
 0x47e   :  { %v5469_v49 = vsel %vm5460_vm6, %v5423_v46, %v5450_v2  ;;  %v16919_v2 = vand.u32 4294901760, %v14395_v38  ;;  %v14601_v18 = vpack.c.bf16 %v5879_v15, %v5872_v57  ;;  %v5885_v46 = vsub.f32 %v14386_v41, %v16916_v60 }
 0x47f   :  { %v14593_v63 = vmax.f32 %v14293_v31, %v5469_v49  ;;  %v5502_v51 = vsel %vm4424_vm2, %v5501_v48, %v14451_v3  ;;  %v16918_v49 = vand.u32 4294901760, %v14397_v52  ;;  %v16922_v15 = vand.u32 4294901760, %v14400_v1 }
 0x480   :  { %5517 = vrot.lane.b32.xlu0 %v5502_v51, %s13098_s4  ;;  %v5892_v48 = vsub.f32 %v14395_v38, %v16919_v2  ;;  %v5886_v25 = vand.u32 4294901760, %v5885_v46  ;;  %v16921_v60 = vand.u32 4294901760, %v14402_v40  ;;  %v16931_v2 = vand.u32 4294901760, %v14411_v8 }
 0x481   :  { %v5503_v27 = vrot.slane %v14593_v63, 1  ;;  %v5899_v57 = vsub.f32 %v14397_v52, %v16918_v49  ;;  %v16930_v49 = vand.u32 4294901760, %v14406_v61 }
 0x482   :  { %v5893_v51 = vand.u32 4294901760, %v5892_v48  ;;  %v5913_v46 = vsub.f32 %v14402_v40, %v16921_v60 }
 0x483   :  { %v5504_v31 = vsel %vm4424_vm2, %v5503_v27, %v14451_v3  ;;  %v5900_v3 = vand.u32 4294901760, %v5899_v57  ;;  %v5906_v27 = vsub.f32 %v14400_v1, %v16922_v15  ;;  %v5927_v60 = vsub.f32 %v14406_v61, %v16930_v49 }
 0x484   :  { %5519 = vrot.lane.b32.xlu1 %v5504_v31, %s13098_s4  ;;  %v14618_v22 = vpack.c.bf16 %v5893_v51, %v5886_v25  ;;  %v16925_v31 = vand.u32 4294901760, %v14404_v54  ;;  %v5914_v32 = vand.u32 4294901760, %v5913_v46  ;;  %v16932_v51 = vand.u32 4294901760, %v14413_v9 }
 0x485   :  { %v5907_v48 = vand.u32 4294901760, %v5906_v27  ;;  %v5934_v27 = vsub.f32 %v14411_v8, %v16931_v2  ;;  %v5948_v49 = vsub.f32 %v14415_v4, %v16935_v45  ;;  %v16937_v2 = vand.u32 4294901760, %v14469_v29 }
 0x486   :  { %v5920_v25 = vsub.f32 %v14404_v54, %v16925_v31  ;;  %v5941_v46 = vsub.f32 %v14413_v9, %v16932_v51  ;;  %v5928_v31 = vand.u32 4294901760, %v5927_v60  ;;  %vm10258_vm2 = vcmask 7168  }
 0x487   :  { %v14633_v57 = vpack.c.bf16 %v5907_v48, %v5900_v3  ;;  %v5935_v43 = vand.u32 4294901760, %v5934_v27  ;;  %v16936_v3 = vand.u32 4294901760, %v14467_v23  ;;  %v5949_v28 = vand.u32 4294901760, %v5948_v49 }
 0x488   :  { %v5921_v15 = vand.u32 4294901760, %v5920_v25  ;;  %v5942_v16 = vand.u32 4294901760, %v5941_v46  ;;  %v5962_v60 = vsub.f32 %v14469_v29, %v16937_v2 }
 0x489   :  { %v14652_v25 = vpack.c.bf16 %v5935_v43, %v5928_v31  ;;  %v5955_v51 = vsub.f32 %v14467_v23, %v16936_v3 }
 0x48a   :  { %v14646_v48 = vpack.c.bf16 %v5921_v15, %v5914_v32  ;;  %v16941_v32 = vand.u32 4294901760, %v14475_v14  ;;  %v16940_v15 = vand.u32 4294901760, %v14479_v0  ;;  %v14662_v46 = vpack.c.bf16 %v5949_v28, %v5942_v16 }
 0x48b   :  { %v5956_v27 = vand.u32 4294901760, %v5955_v51  ;;  %v5963_v45 = vand.u32 4294901760, %v5962_v60  ;;  %v5538_v16 = vrot.slane %v14546_v17, 2 }
 0x48c   :  { %v5969_v43 = vsub.f32 %v14475_v14, %v16941_v32  ;;  %v5976_v49 = vsub.f32 %v14479_v0, %v16940_v15 }
 0x48d   :  { %v14670_v31 = vpack.c.bf16 %v5963_v45, %v5956_v27  ;;  %v5532_v27 = vrot.slane %v14484_v62, 2  ;;  %v5534_v45 = vrot.slane %v14506_v59, 2 }
 0x48e   :  { %v5970_v3 = vand.u32 4294901760, %v5969_v43  ;;  %v5977_v2 = vand.u32 4294901760, %v5976_v49 }
 0x48f   :  { %v5535_v49 = vsel %vm4473_vm3, %v5534_v45, %v14460_v50 }
 0x490   :  { %v14672_v7 = vpack.c.bf16 %v5977_v2, %v5970_v3  ;;  %v5533_v2 = vsel %vm4473_vm3, %v5532_v27, %v14460_v50  ;;  %v5536_v3 = vrot.slane %v14529_v44, 2  ;;  %v5590_v15 = vsel %vm5546_vm7, %v5535_v49, 0 }
 0x491   :  { %v5588_v43 = vsel %vm5546_vm7, %v5533_v2, 0  ;;  %v14715_v27 = vand.u32 4294901760, %v5590_v15  ;;  %v5539_v49 = vsel %vm4473_vm3, %v5538_v16, %v14460_v50 }
 0x492   :  { %v14706_v60 = vand.u32 4294901760, %v5588_v43  ;;  %v5537_v32 = vsel %vm4473_vm3, %v5536_v3, %v14460_v50  ;;  %v5594_v12 = vsel %vm5546_vm7, %v5539_v49, 0 }
 0x493   :  { %v5592_v51 = vsel %vm5546_vm7, %v5537_v32, 0  ;;  %v14729_v21 = vsub.f32 %v5590_v15, %v14715_v27  ;;  %v14750_v23 = vand.u32 4294901760, %v5594_v12 }
 0x494   :  { %v14713_v28 = vsub.f32 %v5588_v43, %v14706_v60  ;;  %v14725_v3 = vand.u32 4294901760, %v5592_v51 }
 0x495   :  { %17152 = vst [vmem:[#allocation23_spill] sm:$0xff] %v14729_v21  ;;  %v14772_v61 = vsub.f32 %v5594_v12, %v14750_v23 }
 0x496   :  { %17151 = vst [vmem:[#allocation22_spill] sm:$0xff] %v14713_v28  ;;  %v14744_v15 = vsub.f32 %v5592_v51, %v14725_v3  ;;  %v5544_v51 = vrot.slane %v14593_v63, 2 }
 0x497   :  { %17157 = vst [vmem:[#allocation26_spill] sm:$0xff] %v14772_v61 }
 0x498   :  { %17154 = vst [vmem:[#allocation25_spill] sm:$0xff] %v14744_v15  ;;  %v5545_v12 = vsel %vm4473_vm3, %v5544_v51, %v14460_v50 }
 0x4da   :  { %v5506_v2 = vpop.permute.xlu0 %5505 }
 0x4db   :  { %v5547_v45 = vsel %vm5546_vm7, %v14463_v11, %v5506_v2  ;;  %v5542_v11 = vrot.slane %v14576_v24, 2  ;;  %v5541_v2 = vsel %vm4473_vm3, %v5540_v19, %v14460_v50 }
 0x4dc   :  { %v14723_v55 = vand.u32 4294901760, %v5547_v45  ;;  %v5596_v29 = vsel %vm5546_vm7, %v5541_v2, 0 }
 0x4dd   :  { %v14774_v8 = vand.u32 4294901760, %v5596_v29 }
 0x4de   :  { %v14732_v32 = vsub.f32 %v5547_v45, %v14723_v55  ;;  %v5508_v30 = vpop.permute.xlu1 %5507  ;;  %v17155_v45 = vand.u32 4294901760, %v14713_v28 }
 0x4df   :  { %v5548_v16 = vsel %vm5546_vm7, %v14484_v62, %v5508_v30 }
 0x4e0   :  { %17153 = vst [vmem:[#allocation24_spill] sm:$0xff] %v14732_v32  ;;  %v16966_v14 = vand.u32 4294901760, %v14732_v32  ;;  %v14741_v43 = vand.u32 4294901760, %v5548_v16  ;;  %v5708_v0 = vsub.f32 %v14713_v28, %v17155_v45  ;;  %v5543_v45 = vsel %vm4473_vm3, %v5542_v11, %v14460_v50 }
 0x4e2   :  { %v5699_v30 = vsub.f32 %v14732_v32, %v16966_v14  ;;  %v14756_v19 = vsub.f32 %v5548_v16, %v14741_v43  ;;  %v5510_v62 = vpop.permute.xlu0 %5509  ;;  %v5709_v16 = vand.u32 4294901760, %v5708_v0  ;;  %v17156_v32 = vand.u32 4294901760, %v14729_v21 }
 0x4e3   :  { %v5549_v9 = vsel %vm5546_vm7, %v14506_v59, %v5510_v62  ;;  %v5598_v0 = vsel %vm5546_vm7, %v5543_v45, 0 }
 0x4e4   :  { %v14764_v49 = vand.u32 4294901760, %v5549_v9  ;;  %v5700_v28 = vand.u32 4294901760, %v5699_v30  ;;  %v16973_v4 = vand.u32 4294901760, %v14756_v19  ;;  %v5723_v2 = vsub.f32 %v14729_v21, %v17156_v32 }
 0x4e6   :  { %v14777_v59 = vsub.f32 %v5549_v9, %v14764_v49  ;;  %v5512_v11 = vpop.permute.xlu1 %5511  ;;  %5701 = vmatmul.mubr.f32.vlgmr.msra.gmra.mrb[8].mxu1 %v5700_v28  ;;  %v5714_v30 = vsub.f32 %v14756_v19, %v16973_v4  ;;  %v17158_v9 = vmov 0.0|0.0   ;;  %v17159_v4 = vand.u32 4294901760, %v14744_v15 }
 0x4e7   :  { %v5550_v62 = vsel %vm5546_vm7, %v14529_v44, %v5512_v11  ;;  %12179 = vmatpush1.bf16.msra.mxu1 %v14515_v53  ;;  %5710 = vmatprep.mubr.f32.mxu1 %v5709_v16  ;;  %v5724_v21 = vand.u32 4294901760, %v5723_v2  ;;  %v16979_v44 = vand.u32 4294901760, %v14772_v61  ;;  %v14797_v53 = vsub.f32 %v5596_v29, %v14774_v8 }
 0x4e8   :  { %v14788_v32 = vand.u32 4294901760, %v5550_v62  ;;  %12180 = vmatprep.subr.bf16.mxu1 %v17158_v9  ;;  %v5715_v28 = vand.u32 4294901760, %v5714_v30  ;;  %v16976_v14 = vand.u32 4294901760, %v14777_v59  ;;  %v5738_v45 = vsub.f32 %v14744_v15, %v17159_v4 }
 0x4e9   :  { %v14799_v16 = vand.u32 4294901760, %v5598_v0  ;;  %v5600_v30 = vsel %vm5546_vm7, %v5545_v12, 0  ;;  %v16983_v12 = vand.u32 4294901760, %v14797_v53 }
 0x4ea   :  { %v14802_v50 = vsub.f32 %v5550_v62, %v14788_v32  ;;  %5716 = vmatmul.mubr.f32.gmra.mrb[10].mxu1 %v5715_v28  ;;  %v5514_v51 = vpop.permute.xlu0 %5513  ;;  %v5729_v11 = vsub.f32 %v14777_v59, %v16976_v14  ;;  %v5739_v62 = vand.u32 4294901760, %v5738_v45  ;;  %v5753_v14 = vsub.f32 %v14772_v61, %v16979_v44 }
 0x4eb   :  { %17160 = vst [vmem:[#allocation27_spill] sm:$0xff] %v14799_v16  ;;  %12182 = vmatpush1.bf16.msra.mxu1 %v14543_v20  ;;  %v5551_v4 = vsel %vm5546_vm7, %v14546_v17, %v5514_v51  ;;  %5725 = vmatprep.mubr.f32.mxu1 %v5724_v21  ;;  %v14820_v20 = vsub.f32 %v5598_v0, %v14799_v16  ;;  %v14822_v15 = vand.u32 4294901760, %v5600_v30 }
 0x4ec   :  { %v14811_v29 = vand.u32 4294901760, %v5551_v4  ;;  %12183 = vmatprep.subr.bf16.mxu1 %v17158_v9  ;;  %v5730_v2 = vand.u32 4294901760, %v5729_v11  ;;  %v16980_v28 = vand.u32 4294901760, %v14802_v50  ;;  %v5754_v44 = vand.u32 4294901760, %v5753_v14 }
 0x4ed   :  { %17161 = vst [vmem:[#allocation28_spill] sm:$0xff] %v14822_v15  ;;  %v14842_v61 = vsub.f32 %v5600_v30, %v14822_v15 }
 0x4ee   :  { %v14825_v21 = vsub.f32 %v5551_v4, %v14811_v29  ;;  %v5516_v17 = vpop.permute.xlu1 %5515  ;;  %5731 = vmatmul.mubr.f32.gmra.mrb[12].mxu1 %v5730_v2  ;;  %v5744_v45 = vsub.f32 %v14802_v50, %v16980_v28  ;;  %v5768_v2 = vsub.f32 %v14797_v53, %v16983_v12  ;;  %v16985_v28 = vand.u32 4294901760, %v14820_v20 }
 0x4ef   :  { %v5552_v51 = vsel %vm5546_vm7, %v14562_v26, %v5516_v17  ;;  %12185 = vmatpush1.bf16.msra.mxu1 %v14567_v56  ;;  %5740 = vmatprep.mubr.f32.mxu1 %v5739_v62  ;;  %v16987_v12 = vand.u32 4294901760, %v14842_v61 }
 0x4f0   :  { %v14833_v11 = vand.u32 4294901760, %v5552_v51  ;;  %12186 = vmatprep.subr.bf16.mxu1 %v17158_v9  ;;  %v5745_v0 = vand.u32 4294901760, %v5744_v45  ;;  %v16984_v4 = vand.u32 4294901760, %v14825_v21 }
 0x4f2   :  { %17162 = vst [vmem:[#allocation29_spill] sm:$0xff] %v14833_v11  ;;  %v14845_v26 = vsub.f32 %v5552_v51, %v14833_v11  ;;  %5746 = vmatmul.mubr.f32.gmra.mrb[14].mxu1 %v5745_v0  ;;  %v5518_v56 = vpop.permute.xlu0 %5517  ;;  %v5759_v62 = vsub.f32 %v14825_v21, %v16984_v4  ;;  %v5769_v51 = vand.u32 4294901760, %v5768_v2  ;;  %v5783_v0 = vsub.f32 %v14820_v20, %v16985_v28 }
 0x4f3   :  { %12188 = vmatpush1.bf16.msra.mxu1 %v14581_v33  ;;  %v5553_v14 = vsel %vm5546_vm7, %v14576_v24, %v5518_v56  ;;  %5755 = vmatprep.mubr.f32.mxu1 %v5754_v44 }
 0x4f4   :  { %v14853_v17 = vand.u32 4294901760, %v5553_v14  ;;  %12189 = vmatprep.subr.bf16.mxu1 %v17158_v9  ;;  %v5760_v30 = vand.u32 4294901760, %v5759_v62  ;;  %v16989_v45 = vand.u32 4294901760, %v14845_v26 }
 0x4f6   :  { %17163 = vst [vmem:[#allocation30_spill] sm:$0xff] %v14853_v17  ;;  %v14862_v33 = vsub.f32 %v5553_v14, %v14853_v17  ;;  %v5520_v4 = vpop.permute.xlu1 %5519  ;;  %5761 = vmatmul.mubr.f32.gmra.mrb[16].mxu1 %v5760_v30  ;;  %v5774_v24 = vsub.f32 %v14845_v26, %v16989_v45  ;;  %v5784_v14 = vand.u32 4294901760, %v5783_v0  ;;  %v5798_v30 = vsub.f32 %v14842_v61, %v16987_v12  ;;  %v17194_v12 = vld [vmem:[#allocation10_spill] sm:$0xff]  ;;  %v17196_v45 = vld [vmem:[#allocation12_spill] sm:$0xff] }
 0x4f7   :  { %v5554_v44 = vsel %vm5546_vm7, %v14593_v63, %v5520_v4  ;;  %12191 = vmatpush1.bf16.msra.mxu1 %v14601_v18  ;;  %5770 = vmatprep.mubr.f32.mxu1 %v5769_v51 }
 0x4f8   :  { %v14870_v2 = vand.u32 4294901760, %v5554_v44  ;;  %12192 = vmatprep.subr.bf16.mxu1 %v17158_v9  ;;  %v5775_v56 = vand.u32 4294901760, %v5774_v24  ;;  %v16988_v62 = vand.u32 4294901760, %v14862_v33  ;;  %v5799_v51 = vand.u32 4294901760, %v5798_v30 }
 0x4fa   :  { %17164 = vst [vmem:[#allocation31_spill] sm:$0xff] %v14870_v2  ;;  %v14878_v28 = vsub.f32 %v5554_v44, %v14870_v2  ;;  %5776 = vmatmul.mubr.f32.gmra.mrb[18].mxu1 %v5775_v56  ;;  %v5789_v63 = vsub.f32 %v14862_v33, %v16988_v62  ;;  %v17172_v44 = vpack.c.bf16 %v14404_v54, %v14402_v40  ;;  %v17173_v56 = vld [vmem:[#allocation7_spill] sm:$0xff] }
 0x4fb   :  { %12194 = vmatpush1.bf16.msra.mxu1 %v14618_v22  ;;  %5785 = vmatprep.mubr.f32.mxu1 %v5784_v14  ;;  %v17165_v22 = vpack.c.bf16 %v14333_v47, %v14331_v13  ;;  %v17174_v14 = vld [vmem:[#allocation5_spill] sm:$0xff]  ;;  %v17195_v62 = vld [vmem:[#allocation11_spill] sm:$0xff] }
 0x4fc   :  { %12195 = vmatprep.subr.bf16.mxu1 %v17158_v9  ;;  %v5790_v18 = vand.u32 4294901760, %v5789_v63  ;;  %v16986_v4 = vand.u32 4294901760, %v14878_v28  ;;  %v17175_v30 = vpack.c.bf16 %v17173_v56, %v17174_v14  ;;  %v17176_v63 = vld [vmem:[#allocation9_spill] sm:$0xff] }
 0x4fe   :  { %5791 = vmatmul.mubr.f32.gmra.mrb[20].mxu1 %v5790_v18  ;;  %v5804_v0 = vsub.f32 %v14878_v28, %v16986_v4  ;;  %v17177_v18 = vld [vmem:[#allocation8_spill] sm:$0xff]  ;;  %v17193_v4 = vld [vmem:[#allocation6_spill] sm:$0xff] }
 0x4ff   :  { %12197 = vmatpush1.bf16.msra.mxu1 %v14633_v57  ;;  %5800 = vmatprep.mubr.f32.mxu1 %v5799_v51  ;;  %v17166_v57 = vpack.c.bf16 %v14348_v34, %v14335_v42  ;;  %v17178_v51 = vpack.c.bf16 %v17176_v63, %v17177_v18 }
 0x500   :  { %12198 = vmatprep.subr.bf16.mxu1 %v17158_v9  ;;  %v5805_v24 = vand.u32 4294901760, %v5804_v0  ;;  %v17179_v0 = vld [vmem:[#allocation18_spill] sm:$0xff] }
 0x502   :  { %5806 = vmatmul.mubr.f32.gmra.mrb[22].mxu1 %v5805_v24  ;;  %v17180_v24 = vld [vmem:[#allocation17_spill] sm:$0xff] }
 0x503   :  { %12200 = vmatpush1.bf16.msra.mxu1 %v14646_v48  ;;  %5996 = vmatprep.mubr.f32.mxu1 %v14500_v10  ;;  %v17168_v48 = vpack.c.bf16 %v14369_v5, %v14367_v6 }
 0x504   :  { %12201 = vmatprep.subr.bf16.mxu1 %v17158_v9 }
 0x507   :  { %12203 = vmatpush1.bf16.msra.mxu1 %v14652_v25  ;;  %v17169_v25 = vpack.c.bf16 %v14384_v37, %v14371_v36 }
 0x508   :  { %12204 = vmatprep.subr.bf16.mxu1 %v17158_v9 }
 0x50b   :  { %12206 = vmatpush1.bf16.msra.mxu1 %v14662_v46  ;;  %v17170_v46 = vpack.c.bf16 %v14395_v38, %v14386_v41 }
 0x50c   :  { %12207 = vmatprep.subr.bf16.mxu1 %v17158_v9 }
 0x50f   :  { %12209 = vmatpush1.bf16.msra.mxu1 %v14670_v31  ;;  %v17171_v31 = vpack.c.bf16 %v14400_v1, %v14397_v52 }
 0x510   :  { %12210 = vmatprep.subr.bf16.mxu1 %v17158_v9 }
 0x513   :  { %12212 = vmatpush1.bf16.msra.mxu1 %v14672_v7  ;;  %v17167_v7 = vpack.c.bf16 %v14356_v58, %v14350_v39 }
 0x514   :  { %12213 = vmatprep.subr.bf16.mxu1 %v17158_v9 }
 0x516   :  { %5998 = vmatmul.mubr.f32.vlgmr.msra.gmra.mrb[8].mxu1 %v14723_v55 }
 0x517   :  { %6003 = vmatprep.mubr.f32.mxu1 %v14706_v60  ;;  %12215 = vmatpush1.bf16.msra.mxu1 %v17165_v22  ;;  %v17181_v22 = vpack.c.bf16 %v17179_v0, %v17180_v24 }
 0x518   :  { %12216 = vmatprep.subr.bf16.mxu1 %v17158_v9 }
 0x51a   :  { %6005 = vmatmul.mubr.f32.gmra.mrb[10].mxu1 %v14741_v43 }
 0x51b   :  { %6010 = vmatprep.mubr.f32.mxu1 %v14715_v27  ;;  %12218 = vmatpush1.bf16.msra.mxu1 %v17166_v57  ;;  %v17182_v57 = vld [vmem:[#allocation21_spill] sm:$0xff] }
 0x51c   :  { %12219 = vmatprep.subr.bf16.mxu1 %v17158_v9 }
 0x51e   :  { %6012 = vmatmul.mubr.f32.gmra.mrb[12].mxu1 %v14764_v49 }
 0x51f   :  { %6017 = vmatprep.mubr.f32.mxu1 %v14725_v3  ;;  %12221 = vmatpush1.bf16.msra.mxu1 %v17167_v7  ;;  %v17183_v7 = vld [vmem:[#allocation20_spill] sm:$0xff] }
 0x520   :  { %12222 = vmatprep.subr.bf16.mxu1 %v17158_v9 }
 0x522   :  { %6019 = vmatmul.mubr.f32.gmra.mrb[14].mxu1 %v14788_v32 }
 0x523   :  { %6024 = vmatprep.mubr.f32.mxu1 %v14750_v23  ;;  %12224 = vmatpush1.bf16.msra.mxu1 %v17168_v48  ;;  %v17184_v48 = vpack.c.bf16 %v17182_v57, %v17183_v7 }
 0x524   :  { %12225 = vmatprep.subr.bf16.mxu1 %v17158_v9 }
 0x526   :  { %6026 = vmatmul.mubr.f32.gmra.mrb[16].mxu1 %v14811_v29 }
 0x527   :  { %6031 = vmatprep.mubr.f32.mxu1 %v14774_v8  ;;  %12227 = vmatpush1.bf16.msra.mxu1 %v17169_v25  ;;  %v17185_v25 = vld [vmem:[#allocation24_spill] sm:$0xff] }
 0x528   :  { %12228 = vmatprep.subr.bf16.mxu1 %v17158_v9 }
 0x52a   :  { %6033 = vmatmul.mubr.f32.gmra.mrb[18].mxu1 %v14833_v11  ;;  %v17208_v11 = vand.u32 4294901760, %v14348_v34 }
 0x52b   :  { %6038 = vmatprep.mubr.f32.mxu1 %v14799_v16  ;;  %12230 = vmatpush1.bf16.msra.mxu1 %v17170_v46  ;;  %v17186_v46 = vld [vmem:[#allocation22_spill] sm:$0xff]  ;;  %v17202_v16 = vld [vmem:[#allocation19_spill] sm:$0xff] }
 0x52c   :  { %12231 = vmatprep.subr.bf16.mxu1 %v17158_v9 }
 0x52e   :  { %6040 = vmatmul.mubr.f32.gmra.mrb[20].mxu1 %v14853_v17  ;;  %v17199_v17 = vld [vmem:[#allocation14_spill] sm:$0xff] }
 0x52f   :  { %6045 = vmatprep.mubr.f32.mxu1 %v14822_v15  ;;  %12233 = vmatpush1.bf16.msra.mxu1 %v17171_v31  ;;  %v17187_v31 = vld [vmem:[#allocation2_spill] sm:$0xff]  ;;  %v17198_v15 = vand.u32 4294901760, %v14511_v35 }
 0x530   :  { %12234 = vmatprep.subr.bf16.mxu1 %v17158_v9 }
 0x532   :  { %6047 = vmatmul.mubr.f32.gmra.mrb[22].mxu1 %v14870_v2  ;;  %v17197_v2 = vld [vmem:[#allocation13_spill] sm:$0xff] }
 0x533   :  { %12236 = vmatpush1.bf16.msra.mxu1 %v17172_v44  ;;  %6166 = vmatprep.mubr.f32.mxu1 %v14511_v35  ;;  %v17188_v44 = vld [vmem:[#allocation23_spill] sm:$0xff]  ;;  %v17204_v35 = vand.u32 4294901760, %v14333_v47 }
 0x534   :  { %12237 = vmatprep.subr.bf16.mxu1 %v17158_v9  ;;  %v17210_v47 = vand.u32 4294901760, %v17188_v44 }
 0x537   :  { %12239 = vmatpush1.bf16.msra.mxu1 %v17175_v30  ;;  %v17189_v30 = vld [vmem:[#allocation3_spill] sm:$0xff] }
 0x538   :  { %12240 = vmatprep.subr.bf16.mxu1 %v17158_v9 }
 0x53b   :  { %12242 = vmatpush1.bf16.msra.mxu1 %v17178_v51  ;;  %v17190_v51 = vld [vmem:[#allocation25_spill] sm:$0xff] }
 0x53c   :  { %12243 = vmatprep.subr.bf16.mxu1 %v17158_v9  ;;  %v17214_v34 = vand.u32 4294901760, %v17190_v51 }
 0x53f   :  { %12245 = vmatpush1.bf16.msra.mxu1 %v17181_v22  ;;  %v17191_v22 = vld [vmem:[#allocation4_spill] sm:$0xff] }
 0x540   :  { %12246 = vmatprep.subr.bf16.mxu1 %v17158_v9 }
 0x543   :  { %12248 = vmatpush1.bf16.msra.mxu1 %v17184_v48  ;;  %v17192_v48 = vld [vmem:[#allocation26_spill] sm:$0xff] }
 0x544   :  { %12249 = vmatprep.subr.bf16.mxu1 %v17158_v9 }
 0x546   :  { %6169 = vmatmul.mubr.f32.vlgmr.msra.gmra.mrb[8].mxu1 %v17185_v25 }
 0x547   :  { %6175 = vmatprep.mubr.f32.mxu1 %v17186_v46  ;;  %12251 = vmatpush1.bf16.msra.mxu1 %v17187_v31 }
 0x548   :  { %12252 = vmatprep.subr.bf16.mxu1 %v17158_v9 }
 0x54a   :  { %6178 = vmatmul.mubr.f32.gmra.mrb[10].mxu1 %v14756_v19 }
 0x54b   :  { %6184 = vmatprep.mubr.f32.mxu1 %v17188_v44  ;;  %12254 = vmatpush1.bf16.msra.mxu1 %v17189_v30 }
 0x54c   :  { %12255 = vmatprep.subr.bf16.mxu1 %v17158_v9 }
 0x54e   :  { %6187 = vmatmul.mubr.f32.gmra.mrb[12].mxu1 %v14777_v59 }
 0x54f   :  { %6193 = vmatprep.mubr.f32.mxu1 %v17190_v51  ;;  %12257 = vmatpush1.bf16.msra.mxu1 %v17191_v22 }
 0x550   :  { %12258 = vmatprep.subr.bf16.mxu1 %v17158_v9 }
 0x552   :  { %6196 = vmatmul.mubr.f32.gmra.mrb[14].mxu1 %v14802_v50 }
 0x553   :  { %6202 = vmatprep.mubr.f32.mxu1 %v17192_v48  ;;  %12260 = vmatpush1.bf16.msra.mxu1 %v17193_v4 }
 0x554   :  { %12261 = vmatprep.subr.bf16.mxu1 %v17158_v9 }
 0x556   :  { %6205 = vmatmul.mubr.f32.gmra.mrb[16].mxu1 %v14825_v21 }
 0x557   :  { %6211 = vmatprep.mubr.f32.mxu1 %v14797_v53  ;;  %12263 = vmatpush1.bf16.msra.mxu1 %v17194_v12 }
 0x558   :  { %12264 = vmatprep.subr.bf16.mxu1 %v17158_v9 }
 0x55a   :  { %6214 = vmatmul.mubr.f32.gmra.mrb[18].mxu1 %v14845_v26 }
 0x55b   :  { %6220 = vmatprep.mubr.f32.mxu1 %v14820_v20  ;;  %12266 = vmatpush1.bf16.msra.mxu1 %v17195_v62  ;;  %v17200_v62 = vld [vmem:[#allocation15_spill] sm:$0xff] }
 0x55c   :  { %12267 = vmatprep.subr.bf16.mxu1 %v17158_v9 }
 0x55e   :  { %6223 = vmatmul.mubr.f32.gmra.mrb[20].mxu1 %v14862_v33 }
 0x55f   :  { %6229 = vmatprep.mubr.f32.mxu1 %v14842_v61  ;;  %12269 = vmatpush1.bf16.msra.mxu1 %v17196_v45  ;;  %v17201_v45 = vld [vmem:[#allocation16_spill] sm:$0xff] }
 0x560   :  { %12270 = vmatprep.subr.bf16.mxu1 %v17158_v9 }
 0x562   :  { %6232 = vmatmul.mubr.f32.gmra.mrb[22].mxu1 %v14878_v28 }
 0x563   :  { %12272 = vmatpush1.bf16.msra.mxu1 %v17197_v2  ;;  %6328 = vmatprep.mubr.f32.mxu1 %v17198_v15  ;;  %v17203_v2 = vand.u32 4294901760, %v14331_v13  ;;  %v17209_v13 = vand.u32 4294901760, %v14756_v19  ;;  %v17215_v19 = vand.u32 4294901760, %v14367_v6  ;;  %v17221_v6 = vand.u32 4294901760, %v14825_v21 }
 0x564   :  { %12273 = vmatprep.subr.bf16.mxu1 %v17158_v9  ;;  %v17227_v21 = vand.u32 4294901760, %v14397_v52  ;;  %v17233_v52 = vand.u32 4294901760, %v14878_v28  ;;  %v17238_v28 = vand.u32 4294901760, %v17180_v24  ;;  %v17245_v24 = vld [vmem:[#allocation11_spill] sm:$0xff] }
 0x565   :  { %v12286_v15 = vpack.c.bf16 %v17204_v35, %v17203_v2  ;;  %v17212_v2 = vand.u32 4294901760, %v14356_v58  ;;  %v17218_v58 = vand.u32 4294901760, %v17192_v48 }
 0x567   :  { %12275 = vmatpush1.bf16.msra.mxu1 %v17199_v17  ;;  %v17205_v17 = vand.u32 4294901760, %v17185_v25 }
 0x568   :  { %12276 = vmatprep.subr.bf16.mxu1 %v17158_v9 }
 0x56b   :  { %12278 = vmatpush1.bf16.msra.mxu1 %v17200_v62  ;;  %v17206_v62 = vand.u32 4294901760, %v17186_v46  ;;  %v17224_v46 = vand.u32 4294901760, %v14395_v38  ;;  %v17230_v38 = vand.u32 4294901760, %v14842_v61 }
 0x56c   :  { %12279 = vmatprep.subr.bf16.mxu1 %v17158_v9 }
 0x56f   :  { %12281 = vmatpush1.bf16.msra.mxu1 %v17201_v45  ;;  %v17207_v45 = vand.u32 4294901760, %v14335_v42  ;;  %v17213_v42 = vand.u32 4294901760, %v14777_v59  ;;  %v17219_v59 = vand.u32 4294901760, %v14371_v36  ;;  %v17225_v36 = vand.u32 4294901760, %v14845_v26 }
 0x570   :  { %12282 = vmatprep.subr.bf16.mxu1 %v17158_v9  ;;  %v17231_v26 = vand.u32 4294901760, %v14402_v40  ;;  %v17236_v40 = vand.u32 4294901760, %v17177_v18  ;;  %v17243_v18 = vld [vmem:[#allocation29_spill] sm:$0xff] }
 0x571   :  { %v12289_v12 = vpack.c.bf16 %v17208_v11, %v17207_v45  ;;  %v17216_v11 = vand.u32 4294901760, %v14369_v5  ;;  %v17222_v5 = vand.u32 4294901760, %v14797_v53  ;;  %v17228_v53 = vand.u32 4294901760, %v14400_v1 }
 0x572   :  { %v17234_v1 = vand.u32 4294901760, %v17174_v14  ;;  %v17241_v14 = vand.u32 4294901760, %v17182_v57  ;;  %v17246_v57 = vld [vmem:[#allocation30_spill] sm:$0xff] }
 0x573   :  { %12284 = vmatpush1.bf16.msra.mxu1 %v17202_v16  ;;  %v12295_v45 = vpack.c.bf16 %v17216_v11, %v17215_v19  ;;  %v12304_v51 = vpack.c.bf16 %v17228_v53, %v17227_v21 }
 0x574   :  { %12285 = vmatprep.subr.bf16.mxu1 %v17158_v9 }
 0x576   :  { %6332 = vmatmul.mubr.f32.vlgmr.msra.gmra.mrb[8].mxu1 %v17205_v17  ;;  %v17211_v17 = vand.u32 4294901760, %v14350_v39  ;;  %v17217_v39 = vand.u32 4294901760, %v14802_v50  ;;  %v17223_v50 = vand.u32 4294901760, %v14386_v41  ;;  %v17229_v41 = vand.u32 4294901760, %v14862_v33 }
 0x577   :  { %6339 = vmatprep.mubr.f32.mxu1 %v17206_v62  ;;  %12287 = vmatpush1.bf16.msra.mxu1 %v12286_v15  ;;  %v17235_v33 = vand.u32 4294901760, %v17173_v56  ;;  %v17239_v15 = vand.u32 4294901760, %v17179_v0  ;;  %v17240_v56 = vand.u32 4294901760, %v17183_v7  ;;  %v17244_v0 = vld [vmem:[#allocation27_spill] sm:$0xff]  ;;  %v17248_v7 = vld [vmem:[#allocation12_spill] sm:$0xff] }
 0x578   :  { %12288 = vmatprep.subr.bf16.mxu1 %v17158_v9  ;;  %v12292_v62 = vpack.c.bf16 %v17212_v2, %v17211_v17  ;;  %v12301_v44 = vpack.c.bf16 %v17224_v46, %v17223_v50  ;;  %v17252_v17 = vld [vmem:[#allocation15_spill] sm:$0xff]  ;;  %v17253_v2 = vld [vmem:[#allocation16_spill] sm:$0xff] }
 0x579   :  { %v12310_v61 = vpack.c.bf16 %v17235_v33, %v17234_v1 }
 0x57a   :  { %6343 = vmatmul.mubr.f32.gmra.mrb[10].mxu1 %v17209_v13  ;;  %v12316_v13 = vpack.c.bf16 %v17239_v15, %v17238_v28 }
 0x57b   :  { %6350 = vmatprep.mubr.f32.mxu1 %v17210_v47  ;;  %12290 = vmatpush1.bf16.msra.mxu1 %v12289_v12  ;;  %v17220_v12 = vand.u32 4294901760, %v14384_v37  ;;  %v17226_v37 = vand.u32 4294901760, %v14820_v20  ;;  %v17232_v20 = vand.u32 4294901760, %v14404_v54  ;;  %v17237_v54 = vand.u32 4294901760, %v17176_v63  ;;  %v17242_v63 = vld [vmem:[#allocation10_spill] sm:$0xff] }
 0x57c   :  { %12291 = vmatprep.subr.bf16.mxu1 %v17158_v9  ;;  %v12319_v47 = vpack.c.bf16 %v17241_v14, %v17240_v56 }
 0x57d   :  { %v12298_v25 = vpack.c.bf16 %v17220_v12, %v17219_v59  ;;  %v12307_v48 = vpack.c.bf16 %v17232_v20, %v17231_v26  ;;  %v12313_v35 = vpack.c.bf16 %v17237_v54, %v17236_v40 }
 0x57e   :  { %6354 = vmatmul.mubr.f32.gmra.mrb[12].mxu1 %v17213_v42 }
 0x57f   :  { %6361 = vmatprep.mubr.f32.mxu1 %v17214_v34  ;;  %12293 = vmatpush1.bf16.msra.mxu1 %v12292_v62 }
 0x580   :  { %12294 = vmatprep.subr.bf16.mxu1 %v17158_v9 }
 0x582   :  { %6365 = vmatmul.mubr.f32.gmra.mrb[14].mxu1 %v17217_v39 }
 0x583   :  { %6372 = vmatprep.mubr.f32.mxu1 %v17218_v58  ;;  %12296 = vmatpush1.bf16.msra.mxu1 %v12295_v45 }
 0x584   :  { %12297 = vmatprep.subr.bf16.mxu1 %v17158_v9 }
 0x586   :  { %6376 = vmatmul.mubr.f32.gmra.mrb[16].mxu1 %v17221_v6 }
 0x587   :  { %6383 = vmatprep.mubr.f32.mxu1 %v17222_v5  ;;  %12299 = vmatpush1.bf16.msra.mxu1 %v12298_v25 }
 0x588   :  { %12300 = vmatprep.subr.bf16.mxu1 %v17158_v9 }
 0x58a   :  { %6387 = vmatmul.mubr.f32.gmra.mrb[18].mxu1 %v17225_v36 }
 0x58b   :  { %6394 = vmatprep.mubr.f32.mxu1 %v17226_v37  ;;  %12302 = vmatpush1.bf16.msra.mxu1 %v12301_v44 }
 0x58c   :  { %12303 = vmatprep.subr.bf16.mxu1 %v17158_v9 }
 0x58e   :  { %6398 = vmatmul.mubr.f32.gmra.mrb[20].mxu1 %v17229_v41 }
 0x58f   :  { %6405 = vmatprep.mubr.f32.mxu1 %v17230_v38  ;;  %12305 = vmatpush1.bf16.msra.mxu1 %v12304_v51 }
 0x590   :  { %12306 = vmatprep.subr.bf16.mxu1 %v17158_v9 }
 0x592   :  { %6409 = vmatmul.mubr.f32.gmra.mrb[22].mxu1 %v17233_v52 }
 0x593   :  { %12308 = vmatpush1.bf16.msra.mxu1 %v12307_v48  ;;  %6551 = vmatprep.mubr.f32.mxu1 %v14500_v10 }
 0x594   :  { %12309 = vmatprep.subr.bf16.mxu1 %v17158_v9 }
 0x597   :  { %12311 = vmatpush1.bf16.msra.mxu1 %v12310_v61 }
 0x598   :  { %12312 = vmatprep.subr.bf16.mxu1 %v17158_v9 }
 0x59b   :  { %12314 = vmatpush1.bf16.msra.mxu1 %v12313_v35 }
 0x59c   :  { %12315 = vmatprep.subr.bf16.mxu1 %v17158_v9 }
 0x59f   :  { %12317 = vmatpush1.bf16.msra.mxu1 %v12316_v13 }
 0x5a0   :  { %12318 = vmatprep.subr.bf16.mxu1 %v17158_v9 }
 0x5a3   :  { %12320 = vmatpush1.bf16.msra.mxu1 %v12319_v47 }
 0x5a4   :  { %12321 = vmatprep.subr.bf16.mxu1 %v17158_v9 }
 0x5a6   :  { %6553 = vmatmul.mubr.f32.vlgmr.msra.gmra.mrb[8].mxu1 %v14723_v55 }
 0x5a7   :  { %6558 = vmatprep.mubr.f32.mxu1 %v14706_v60  ;;  %12323 = vmatpush1.bf16.msra.mxu1 %v17187_v31  ;;  %v17249_v31 = vld [vmem:[#allocation31_spill] sm:$0xff] }
 0x5a8   :  { %12324 = vmatprep.subr.bf16.mxu1 %v17158_v9 }
 0x5aa   :  { %6560 = vmatmul.mubr.f32.gmra.mrb[10].mxu1 %v14741_v43 }
 0x5ab   :  { %6565 = vmatprep.mubr.f32.mxu1 %v14715_v27  ;;  %12326 = vmatpush1.bf16.msra.mxu1 %v17189_v30  ;;  %v17250_v30 = vld [vmem:[#allocation13_spill] sm:$0xff] }
 0x5ac   :  { %12327 = vmatprep.subr.bf16.mxu1 %v17158_v9 }
 0x5ae   :  { %6567 = vmatmul.mubr.f32.gmra.mrb[12].mxu1 %v14764_v49 }
 0x5af   :  { %6572 = vmatprep.mubr.f32.mxu1 %v14725_v3  ;;  %12329 = vmatpush1.bf16.msra.mxu1 %v17191_v22  ;;  %v17251_v22 = vld [vmem:[#allocation14_spill] sm:$0xff] }
 0x5b0   :  { %12330 = vmatprep.subr.bf16.mxu1 %v17158_v9 }
 0x5b2   :  { %6574 = vmatmul.mubr.f32.gmra.mrb[14].mxu1 %v14788_v32 }
 0x5b3   :  { %6579 = vmatprep.mubr.f32.mxu1 %v14750_v23  ;;  %12332 = vmatpush1.bf16.msra.mxu1 %v17193_v4  ;;  %v17247_v4 = vld [vmem:[#allocation28_spill] sm:$0xff] }
 0x5b4   :  { %12333 = vmatprep.subr.bf16.mxu1 %v17158_v9 }
 0x5b6   :  { %6581 = vmatmul.mubr.f32.gmra.mrb[16].mxu1 %v14811_v29 }
 0x5b7   :  { %6586 = vmatprep.mubr.f32.mxu1 %v14774_v8  ;;  %12335 = vmatpush1.bf16.msra.mxu1 %v17242_v63 }
 0x5b8   :  { %12336 = vmatprep.subr.bf16.mxu1 %v17158_v9 }
 0x5ba   :  { %6588 = vmatmul.mubr.f32.gmra.mrb[18].mxu1 %v17243_v18 }
 0x5bb   :  { %6593 = vmatprep.mubr.f32.mxu1 %v17244_v0  ;;  %12338 = vmatpush1.bf16.msra.mxu1 %v17245_v24 }
 0x5bc   :  { %12339 = vmatprep.subr.bf16.mxu1 %v17158_v9 }
 0x5be   :  { %6595 = vmatmul.mubr.f32.gmra.mrb[20].mxu1 %v17246_v57 }
 0x5bf   :  { %6600 = vmatprep.mubr.f32.mxu1 %v17247_v4  ;;  %12341 = vmatpush1.bf16.msra.mxu1 %v17248_v7 }
 0x5c0   :  { %12342 = vmatprep.subr.bf16.mxu1 %v17158_v9 }
 0x5c2   :  { %6602 = vmatmul.mubr.f32.gmra.mrb[22].mxu1 %v17249_v31 }
 0x5c3   :  { %12344 = vmatpush1.bf16.msra.mxu1 %v17250_v30  ;;  %6696 = vmatprep.mubr.f32.mxu1 %v14500_v10 }
 0x5c4   :  { %12345 = vmatprep.subr.bf16.mxu1 %v17158_v9 }
 0x5c7   :  { %12347 = vmatpush1.bf16.msra.mxu1 %v17251_v22 }
 0x5c8   :  { %12348 = vmatprep.subr.bf16.mxu1 %v17158_v9 }
 0x5cb   :  { %12350 = vmatpush1.bf16.msra.mxu1 %v17252_v17 }
 0x5cc   :  { %12351 = vmatprep.subr.bf16.mxu1 %v17158_v9 }
 0x5cf   :  { %12353 = vmatpush1.bf16.msra.mxu1 %v17253_v2 }
 0x5d0   :  { %12354 = vmatprep.subr.bf16.mxu1 %v17158_v9 }
 0x5d3   :  { %12356 = vmatpush1.bf16.msra.mxu1 %v17202_v16 }
 0x5d6   :  { %6698 = vmatmul.mubr.f32.vlgmr.msra.gmra.mrb[8].mxu1 %v14723_v55  ;;  %v15155_v55 = vld [vmem:[%s16894_s5] ss:$0 sm:$0xff] }
 0x5d7   :  { %6703 = vmatprep.mubr.f32.mxu1 %v14706_v60 }
 0x5da   :  { %6705 = vmatmul.mubr.f32.gmra.mrb[10].mxu1 %v14741_v43 }
 0x5db   :  { %6710 = vmatprep.mubr.f32.mxu1 %v14715_v27 }
 0x5de   :  { %6712 = vmatmul.mubr.f32.gmra.mrb[12].mxu1 %v14764_v49 }
 0x5df   :  { %6717 = vmatprep.mubr.f32.mxu1 %v14725_v3 }
 0x5e2   :  { %6719 = vmatmul.mubr.f32.gmra.mrb[14].mxu1 %v14788_v32 }
 0x5e3   :  { %6724 = vmatprep.mubr.f32.mxu1 %v14750_v23 }
 0x5e6   :  { %6726 = vmatmul.mubr.f32.gmra.mrb[16].mxu1 %v14811_v29 }
 0x5e7   :  { %6731 = vmatprep.mubr.f32.mxu1 %v14774_v8 }
 0x5ea   :  { %6733 = vmatmul.mubr.f32.gmra.mrb[18].mxu1 %v17243_v18 }
 0x5eb   :  { %6738 = vmatprep.mubr.f32.mxu1 %v17244_v0 }
 0x5ee   :  { %6740 = vmatmul.mubr.f32.gmra.mrb[20].mxu1 %v17246_v57 }
 0x5ef   :  { %6745 = vmatprep.mubr.f32.mxu1 %v17247_v4 }
 0x5f2   :  { %6747 = vmatmul.mubr.f32.gmra.mrb[22].mxu1 %v17249_v31 }
 0x6a9   :  { %v6699_v23 = vpop.f32.mrb[8].mxu1 }
 0x6aa   :  { %v12725_v10 = vadd.f32 %v15155_v55, %v6699_v23  ;;  %v6701_v60 = vpop.f32.mrb[9].mxu1 }
 0x6ac   :  { %v6752_v8 = vmax.f32 %v12725_v10, 0.0 }
 0x6ad   :  { %v6706_v27 = vpop.f32.mrb[10].mxu1 }
 0x6ae   :  { %v6761_v3 = vsel %vm6760_vm8, %v6752_v8, -inf  ;;  %v6818_v43 = vsel %vm6817_vm9, %v6752_v8, -inf  ;;  %v6875_v49 = vsel %vm6874_vm10, %v6752_v8, -inf  ;;  %v6932_v32 = vsel %vm6931_vm11, %v6752_v8, -inf  ;;  %v6708_v9 = vpop.f32.mrb[11].mxu1 }
 0x6af   :  { %v6762_v16 = vrot.slane %v6761_v3, 4  ;;  %v6819_v29 = vrot.slane %v6818_v43, 4  ;;  %v6876_v62 = vrot.slane %v6875_v49, 4  ;;  %v6933_v42 = vrot.slane %v6932_v32, 4 }
 0x6b0   :  { %v12726_v34 = vadd.f32 %v15155_v55, %v6706_v27 }
 0x6b1   :  { %v6763_v19 = vmax.f32 %v6761_v3, %v6762_v16  ;;  %v6820_v11 = vmax.f32 %v6818_v43, %v6819_v29  ;;  %v15163_v45 = vmax.f32 %v6875_v49, %v6876_v62  ;;  %v15165_v39 = vmax.f32 %v6932_v32, %v6933_v42  ;;  %v6713_v58 = vpop.f32.mrb[12].mxu1 }
 0x6b2   :  { %v6753_v59 = vmax.f32 %v12726_v34, 0.0  ;;  %v12727_v12 = vadd.f32 %v15155_v55, %v6713_v58  ;;  %v6715_v25 = vpop.f32.mrb[13].mxu1 }
 0x6b3   :  { %v6764_v6 = vrot.slane %v6763_v19, 2  ;;  %v6821_v5 = vrot.slane %v6820_v11, 2  ;;  %v6878_v50 = vrot.slane %v15163_v45, 2  ;;  %v6935_v46 = vrot.slane %v15165_v39, 2 }
 0x6b4   :  { %v6768_v44 = vsel %vm6760_vm8, %v6753_v59, -inf  ;;  %v6825_v36 = vsel %vm6817_vm9, %v6753_v59, -inf  ;;  %v6882_v37 = vsel %vm6874_vm10, %v6753_v59, -inf  ;;  %v6939_v21 = vsel %vm6931_vm11, %v6753_v59, -inf }
 0x6b5   :  { %v6765_v53 = vmax.f32 %v6763_v19, %v6764_v6  ;;  %v6822_v51 = vmax.f32 %v6820_v11, %v6821_v5  ;;  %v6769_v41 = vrot.slane %v6768_v44, 4  ;;  %v6826_v38 = vrot.slane %v6825_v36, 4  ;;  %v6720_v26 = vpop.f32.mrb[14].mxu1 }
 0x6b6   :  { %v6883_v20 = vrot.slane %v6882_v37, 4  ;;  %v6940_v48 = vrot.slane %v6939_v21, 4  ;;  %v6754_v52 = vmax.f32 %v12727_v12, 0.0  ;;  %v12728_v1 = vadd.f32 %v15155_v55, %v6720_v26  ;;  %v6722_v33 = vpop.f32.mrb[15].mxu1 }
 0x6b7   :  { %v6770_v61 = vmax.f32 %v6768_v44, %v6769_v41  ;;  %v6827_v40 = vmax.f32 %v6825_v36, %v6826_v38  ;;  %v6766_v54 = vrot.slane %v6765_v53, 1  ;;  %v6823_v35 = vrot.slane %v6822_v51, 1 }
 0x6b8   :  { %v15175_v28 = vmax.f32 %v6882_v37, %v6883_v20  ;;  %v15177_v15 = vmax.f32 %v6939_v21, %v6940_v48  ;;  %v6775_v13 = vsel %vm6760_vm8, %v6754_v52, -inf  ;;  %v6832_v56 = vsel %vm6817_vm9, %v6754_v52, -inf }
 0x6b9   :  { %v6771_v14 = vrot.slane %v6770_v61, 2  ;;  %v6828_v47 = vrot.slane %v6827_v40, 2  ;;  %v6776_v63 = vrot.slane %v6775_v13, 4  ;;  %v6833_v18 = vrot.slane %v6832_v56, 4  ;;  %v6727_v0 = vpop.f32.mrb[16].mxu1 }
 0x6ba   :  { %v6885_v24 = vrot.slane %v15175_v28, 2  ;;  %v6889_v57 = vsel %vm6874_vm10, %v6754_v52, -inf  ;;  %v6946_v4 = vsel %vm6931_vm11, %v6754_v52, -inf  ;;  %v6755_v7 = vmax.f32 %v12728_v1, 0.0  ;;  %v6729_v31 = vpop.f32.mrb[17].mxu1 }
 0x6bb   :  { %v15184_v30 = vmax.f32 %v6770_v61, %v6771_v14  ;;  %v15186_v22 = vmax.f32 %v6827_v40, %v6828_v47  ;;  %v6777_v17 = vmax.f32 %v6775_v13, %v6776_v63  ;;  %v6834_v2 = vmax.f32 %v6832_v56, %v6833_v18 }
 0x6bc   :  { %v6890_v23 = vrot.slane %v6889_v57, 4  ;;  %v6947_v10 = vrot.slane %v6946_v4, 4  ;;  %v6782_v60 = vsel %vm6760_vm8, %v6755_v7, -inf  ;;  %v6839_v8 = vsel %vm6817_vm9, %v6755_v7, -inf }
 0x6bd   :  { %v6778_v27 = vrot.slane %v6777_v17, 2  ;;  %v6835_v3 = vrot.slane %v6834_v2, 2  ;;  %v6783_v43 = vrot.slane %v6782_v60, 4  ;;  %v6840_v49 = vrot.slane %v6839_v8, 4  ;;  %v6734_v32 = vpop.f32.mrb[18].mxu1 }
 0x6be   :  { %v15190_v9 = vmax.f32 %v6889_v57, %v6890_v23  ;;  %v15192_v16 = vmax.f32 %v6946_v4, %v6947_v10  ;;  %v6896_v29 = vsel %vm6874_vm10, %v6755_v7, -inf  ;;  %v6953_v62 = vsel %vm6931_vm11, %v6755_v7, -inf  ;;  %v6736_v42 = vpop.f32.mrb[19].mxu1 }
 0x6bf   :  { %v15196_v34 = vmax.f32 %v6777_v17, %v6778_v27  ;;  %v15198_v19 = vmax.f32 %v6834_v2, %v6835_v3  ;;  %v6784_v11 = vmax.f32 %v6782_v60, %v6783_v43  ;;  %v6841_v58 = vmax.f32 %v6839_v8, %v6840_v49 }
 0x6c0   :  { %v6892_v59 = vrot.slane %v15190_v9, 2  ;;  %v6897_v12 = vrot.slane %v6896_v29, 4  ;;  %v6954_v25 = vrot.slane %v6953_v62, 4  ;;  %v12729_v6 = vadd.f32 %v15155_v55, %v6727_v0 }
 0x6c1   :  { %v6785_v5 = vrot.slane %v6784_v11, 2  ;;  %v6842_v44 = vrot.slane %v6841_v58, 2  ;;  %v12730_v36 = vadd.f32 %v15155_v55, %v6734_v32  ;;  %v6767_v37 = vmax.f32 %v6765_v53, %v6766_v54  ;;  %v6741_v21 = vpop.f32.mrb[20].mxu1 }
 0x6c2   :  { %v15203_v41 = vmax.f32 %v6896_v29, %v6897_v12  ;;  %v15205_v38 = vmax.f32 %v6953_v62, %v6954_v25  ;;  %v6756_v26 = vmax.f32 %v12729_v6, 0.0  ;;  %v6824_v20 = vmax.f32 %v6822_v51, %v6823_v35  ;;  %v6743_v48 = vpop.f32.mrb[21].mxu1 }
 0x6c3   :  { %v15207_v52 = vmax.f32 %v6784_v11, %v6785_v5  ;;  %v15209_v1 = vmax.f32 %v6841_v58, %v6842_v44  ;;  %v6757_v33 = vmax.f32 %v12730_v36, 0.0  ;;  %v6879_v61 = vmax.f32 %v15163_v45, %v6878_v50 }
 0x6c4   :  { %v6899_v53 = vrot.slane %v15203_v41, 2  ;;  %v6789_v40 = vsel %vm6760_vm8, %v6756_v26, -inf  ;;  %v6846_v54 = vsel %vm6817_vm9, %v6756_v26, -inf  ;;  %v6903_v51 = vsel %vm6874_vm10, %v6756_v26, -inf }
 0x6c5   :  { %v6790_v35 = vrot.slane %v6789_v40, 4  ;;  %v6847_v13 = vrot.slane %v6846_v54, 4  ;;  %v6904_v56 = vrot.slane %v6903_v51, 4  ;;  %v6960_v14 = vsel %vm6931_vm11, %v6756_v26, -inf  ;;  %v6748_v47 = vpop.f32.mrb[22].mxu1 }
 0x6c6   :  { %v6961_v63 = vrot.slane %v6960_v14, 4  ;;  %v6796_v18 = vsel %vm6760_vm8, %v6757_v33, -inf  ;;  %v6853_v45 = vsel %vm6817_vm9, %v6757_v33, -inf  ;;  %v6910_v50 = vsel %vm6874_vm10, %v6757_v33, -inf  ;;  %v6750_v0 = vpop.f32.mrb[23].mxu1 }
 0x6c7   :  { %v6791_v57 = vmax.f32 %v6789_v40, %v6790_v35  ;;  %v6848_v4 = vmax.f32 %v6846_v54, %v6847_v13  ;;  %v15222_v7 = vmax.f32 %v6903_v51, %v6904_v56  ;;  %v6797_v31 = vrot.slane %v6796_v18, 4 }
 0x6c8   :  { %v15224_v17 = vmax.f32 %v6960_v14, %v6961_v63  ;;  %v6854_v2 = vrot.slane %v6853_v45, 4  ;;  %v6911_v23 = vrot.slane %v6910_v50, 4  ;;  %v6967_v10 = vsel %vm6931_vm11, %v6757_v33, -inf }
 0x6c9   :  { %v6792_v60 = vrot.slane %v6791_v57, 2  ;;  %v6849_v8 = vrot.slane %v6848_v4, 2  ;;  %v6906_v27 = vrot.slane %v15222_v7, 2  ;;  %v6798_v3 = vmax.f32 %v6796_v18, %v6797_v31 }
 0x6ca   :  { %v6855_v43 = vmax.f32 %v6853_v45, %v6854_v2  ;;  %v15228_v49 = vmax.f32 %v6910_v50, %v6911_v23  ;;  %v6968_v32 = vrot.slane %v6967_v10, 4  ;;  %v6880_v29 = vrot.slane %v6879_v61, 1 }
 0x6cb   :  { %v15230_v62 = vmax.f32 %v6791_v57, %v6792_v60  ;;  %v15232_v42 = vmax.f32 %v6848_v4, %v6849_v8  ;;  %v6799_v11 = vrot.slane %v6798_v3, 2  ;;  %v6936_v58 = vmax.f32 %v15165_v39, %v6935_v46 }
 0x6cc   :  { %v6856_v12 = vrot.slane %v6855_v43, 2  ;;  %v6913_v25 = vrot.slane %v15228_v49, 2  ;;  %v15238_v6 = vmax.f32 %v6967_v10, %v6968_v32  ;;  %v6881_v5 = vmax.f32 %v6879_v61, %v6880_v29 }
 0x6cd   :  { %v15240_v44 = vmax.f32 %v6798_v3, %v6799_v11  ;;  %v6937_v36 = vrot.slane %v6936_v58, 1  ;;  %v6989_v26 = vsel %vm6988_vm12, %v6767_v37, %v6824_v20  ;;  %v12731_v48 = vadd.f32 %v15155_v55, %v6741_v21 }
 0x6ce   :  { %v15244_v33 = vmax.f32 %v6855_v43, %v6856_v12  ;;  %v6998_v40 = vsel %vm6997_vm13, %v6989_v26, %v6881_v5  ;;  %v6773_v54 = vrot.slane %v15184_v30, 1  ;;  %v6830_v39 = vrot.slane %v15186_v22, 1 }
 0x6cf   :  { %v6938_v46 = vmax.f32 %v6936_v58, %v6937_v36  ;;  %v6758_v51 = vmax.f32 %v12731_v48, 0.0  ;;  %v6886_v61 = vmax.f32 %v15175_v28, %v6885_v24  ;;  %v6942_v35 = vrot.slane %v15177_v15, 2 }
 0x6d0   :  { %v6774_v37 = vmax.f32 %v15184_v30, %v6773_v54  ;;  %v6831_v21 = vmax.f32 %v15186_v22, %v6830_v39  ;;  %v12732_v20 = vadd.f32 %v15155_v55, %v6748_v47  ;;  %v6780_v13 = vrot.slane %v15196_v34, 1 }
 0x6d1   :  { %v15258_v56 = vsel %vm7006_vm14, %v6998_v40, %v6938_v46  ;;  %v6803_v14 = vsel %vm6760_vm8, %v6758_v51, -inf  ;;  %v6860_v63 = vsel %vm6817_vm9, %v6758_v51, -inf  ;;  %v6917_v18 = vsel %vm6874_vm10, %v6758_v51, -inf }
 0x6d2   :  { %7047 = vrot.lane.b32.xlu1 %v15258_v56, %s13096_s17  ;;  %7023 = vrot.lane.b32.xlu0 %v15258_v56, %s13095_s2  ;;  %v6804_v28 = vrot.slane %v6803_v14, 4  ;;  %v6861_v24 = vrot.slane %v6860_v63, 4  ;;  %v6918_v55 = vrot.slane %v6917_v18, 4  ;;  %v6974_v30 = vsel %vm6931_vm11, %v6758_v51, -inf }
 0x6d3   :  { %v6975_v22 = vrot.slane %v6974_v30, 4  ;;  %v6887_v47 = vrot.slane %v6886_v61, 1  ;;  %v6943_v45 = vmax.f32 %v15177_v15, %v6942_v35  ;;  %v6990_v50 = vsel %vm6988_vm12, %v6774_v37, %v6831_v21 }
 0x6d4   :  { %v6805_v0 = vmax.f32 %v6803_v14, %v6804_v28  ;;  %v6862_v57 = vmax.f32 %v6860_v63, %v6861_v24  ;;  %v15270_v4 = vmax.f32 %v6917_v18, %v6918_v55  ;;  %v6759_v31 = vmax.f32 %v12732_v20, 0.0 }
 0x6d5   :  { %v15272_v2 = vmax.f32 %v6974_v30, %v6975_v22  ;;  %v6888_v23 = vmax.f32 %v6886_v61, %v6887_v47  ;;  %v6944_v10 = vrot.slane %v6943_v45, 1  ;;  %v6781_v60 = vmax.f32 %v15196_v34, %v6780_v13 }
 0x6d6   :  { %v6806_v8 = vrot.slane %v6805_v0, 2  ;;  %v6863_v3 = vrot.slane %v6862_v57, 2  ;;  %v6920_v43 = vrot.slane %v15270_v4, 2  ;;  %v6810_v32 = vsel %vm6760_vm8, %v6759_v31, -inf }
 0x6d7   :  { %v6945_v15 = vmax.f32 %v6943_v45, %v6944_v10  ;;  %v6999_v29 = vsel %vm6997_vm13, %v6990_v50, %v6888_v23  ;;  %v6811_v11 = vrot.slane %v6810_v32, 4  ;;  %v6867_v58 = vsel %vm6817_vm9, %v6759_v31, -inf }
 0x6d8   :  { %v15279_v12 = vmax.f32 %v6805_v0, %v6806_v8  ;;  %v15281_v5 = vmax.f32 %v6862_v57, %v6863_v3  ;;  %v6868_v36 = vrot.slane %v6867_v58, 4  ;;  %v6924_v26 = vsel %vm6874_vm10, %v6759_v31, -inf }
 0x6d9   :  { %v15285_v34 = vsel %vm7006_vm14, %v6999_v29, %v6945_v15  ;;  %v6812_v48 = vmax.f32 %v6810_v32, %v6811_v11  ;;  %v6925_v40 = vrot.slane %v6924_v26, 4  ;;  %v6981_v54 = vsel %vm6931_vm11, %v6759_v31, -inf }
 0x6da   :  { %7049 = vrot.lane.b32.xlu1 %v15285_v34, %s13096_s17  ;;  %7025 = vrot.lane.b32.xlu0 %v15285_v34, %s13095_s2  ;;  %v6869_v39 = vmax.f32 %v6867_v58, %v6868_v36  ;;  %v6982_v46 = vrot.slane %v6981_v54, 4  ;;  %v6837_v51 = vrot.slane %v15198_v19, 1  ;;  %v6893_v61 = vmax.f32 %v15190_v9, %v6892_v59 }
 0x6db   :  { %v6813_v35 = vrot.slane %v6812_v48, 2  ;;  %v15296_v37 = vmax.f32 %v6924_v26, %v6925_v40  ;;  %v6949_v21 = vrot.slane %v15192_v16, 2  ;;  %v6787_v20 = vrot.slane %v15207_v52, 1 }
 0x6dc   :  { %v6870_v13 = vrot.slane %v6869_v39, 2  ;;  %v15300_v14 = vmax.f32 %v6981_v54, %v6982_v46  ;;  %v6838_v63 = vmax.f32 %v15198_v19, %v6837_v51  ;;  %v6894_v18 = vrot.slane %v6893_v61, 1 }
 0x6dd   :  { %v15303_v28 = vmax.f32 %v6812_v48, %v6813_v35  ;;  %v6927_v24 = vrot.slane %v15296_v37, 2  ;;  %v6950_v55 = vmax.f32 %v15192_v16, %v6949_v21  ;;  %v6788_v9 = vmax.f32 %v15207_v52, %v6787_v20 }
 0x6de   :  { %v15308_v59 = vmax.f32 %v6869_v39, %v6870_v13  ;;  %v6895_v30 = vmax.f32 %v6893_v61, %v6894_v18  ;;  %v6991_v22 = vsel %vm6988_vm12, %v6781_v60, %v6838_v63  ;;  %v6844_v47 = vrot.slane %v15209_v1, 1 }
 0x6df   :  { %v6951_v45 = vrot.slane %v6950_v55, 1  ;;  %v6900_v19 = vmax.f32 %v15203_v41, %v6899_v53  ;;  %v6956_v50 = vrot.slane %v15205_v38, 2  ;;  %v6794_v0 = vrot.slane %v15230_v62, 1 }
 0x6e0   :  { %v7000_v16 = vsel %vm6997_vm13, %v6991_v22, %v6895_v30  ;;  %v6845_v52 = vmax.f32 %v15209_v1, %v6844_v47  ;;  %v6851_v57 = vrot.slane %v15232_v42, 1  ;;  %v6907_v31 = vmax.f32 %v15222_v7, %v6906_v27 }
 0x6e1   :  { %v6952_v23 = vmax.f32 %v6950_v55, %v6951_v45  ;;  %v6901_v10 = vrot.slane %v6900_v19, 1  ;;  %v6957_v60 = vmax.f32 %v15205_v38, %v6956_v50  ;;  %v6795_v41 = vmax.f32 %v15230_v62, %v6794_v0 }
 0x6e2   :  { %v6992_v53 = vsel %vm6988_vm12, %v6788_v9, %v6845_v52  ;;  %v6852_v8 = vmax.f32 %v15232_v42, %v6851_v57  ;;  %v6908_v3 = vrot.slane %v6907_v31, 1  ;;  %v6963_v32 = vrot.slane %v15224_v17, 2 }
 0x6e3   :  { %v15329_v1 = vsel %vm7006_vm14, %v7000_v16, %v6952_v23  ;;  %v6902_v15 = vmax.f32 %v6900_v19, %v6901_v10  ;;  %v6958_v29 = vrot.slane %v6957_v60, 1  ;;  %v6801_v7 = vrot.slane %v15240_v44, 1  ;;  %v7207_v23 = vld [vmem:[%s16895_s6] sm:$0xff] }
 0x6e4   :  { %7051 = vrot.lane.b32.xlu1 %v15329_v1, %s13096_s17  ;;  %7027 = vrot.lane.b32.xlu0 %v15329_v1, %s13095_s2  ;;  %v6909_v38 = vmax.f32 %v6907_v31, %v6908_v3  ;;  %v6964_v27 = vmax.f32 %v15224_v17, %v6963_v32  ;;  %v6993_v62 = vsel %vm6988_vm12, %v6795_v41, %v6852_v8  ;;  %v6858_v42 = vrot.slane %v15244_v33, 1  ;;  %v7223_v31 = vld [vmem:[%s16895_s6 + $0x80] sm:$0xff]  ;;  %v7225_v3 = vld [vmem:[%s16895_s6 + $0x90] sm:$0xff] }
 0x6e5   :  { %v6959_v11 = vmax.f32 %v6957_v60, %v6958_v29  ;;  %v7001_v58 = vsel %vm6997_vm13, %v6992_v53, %v6902_v15  ;;  %v6802_v36 = vmax.f32 %v15240_v44, %v6801_v7  ;;  %v6914_v26 = vmax.f32 %v15228_v49, %v6913_v25  ;;  %v7208_v53 = vld [vmem:[%s16895_s6 + $0x8] sm:$0xff]  ;;  %v7226_v32 = vld [vmem:[%s16895_s6 + $0x98] sm:$0xff] }
 0x6e6   :  { %v6965_v48 = vrot.slane %v6964_v27, 1  ;;  %v7002_v40 = vsel %vm6997_vm13, %v6993_v62, %v6909_v38  ;;  %v6859_v54 = vmax.f32 %v15244_v33, %v6858_v42  ;;  %v6970_v17 = vrot.slane %v15238_v6, 2  ;;  %v7210_v62 = vld [vmem:[%s16895_s6 + $0x18] sm:$0xff]  ;;  %v7227_v42 = vld [vmem:[%s16895_s6 + $0xa0] sm:$0xff] }
 0x6e7   :  { %v15348_v39 = vsel %vm7006_vm14, %v7001_v58, %v6959_v11  ;;  %v6915_v46 = vrot.slane %v6914_v26, 1  ;;  %v6808_v51 = vrot.slane %v15279_v12, 1  ;;  %v6865_v61 = vrot.slane %v15281_v5, 1 }
 0x6e8   :  { %7053 = vrot.lane.b32.xlu1 %v15348_v39, %s13096_s17  ;;  %7029 = vrot.lane.b32.xlu0 %v15348_v39, %s13095_s2  ;;  %v6966_v49 = vmax.f32 %v6964_v27, %v6965_v48  ;;  %v6971_v25 = vmax.f32 %v15238_v6, %v6970_v17  ;;  %v6994_v44 = vsel %vm6988_vm12, %v6802_v36, %v6859_v54  ;;  %v6977_v33 = vrot.slane %v15272_v2, 2  ;;  %v7209_v27 = vld [vmem:[%s16895_s6 + $0x10] sm:$0xff]  ;;  %v7228_v48 = vld [vmem:[%s16895_s6 + $0xa8] sm:$0xff] }
 0x6e9   :  { %v6916_v35 = vmax.f32 %v6914_v26, %v6915_v46  ;;  %v6809_v21 = vmax.f32 %v15279_v12, %v6808_v51  ;;  %v6866_v20 = vmax.f32 %v15281_v5, %v6865_v61  ;;  %v6921_v13 = vmax.f32 %v15270_v4, %v6920_v43  ;;  %v7212_v61 = vld [vmem:[%s16895_s6 + $0x28] sm:$0xff] }
 0x6ea   :  { %v15365_v63 = vsel %vm7006_vm14, %v7002_v40, %v6966_v49  ;;  %v6972_v18 = vrot.slane %v6971_v25, 1  ;;  %v6978_v55 = vmax.f32 %v15272_v2, %v6977_v33  ;;  %v6815_v6 = vrot.slane %v15303_v28, 1  ;;  %v7211_v40 = vld [vmem:[%s16895_s6 + $0x20] sm:$0xff]  ;;  %v7229_v49 = vld [vmem:[%s16895_s6 + $0xb0] sm:$0xff] }
 0x6eb   :  { %v7003_v9 = vsel %vm6997_vm13, %v6994_v44, %v6916_v35  ;;  %v6922_v30 = vrot.slane %v6921_v13, 1  ;;  %v6995_v22 = vsel %vm6988_vm12, %v6809_v21, %v6866_v20  ;;  %v6872_v12 = vrot.slane %v15308_v59, 1 }
 0x6ec   :  { %7055 = vrot.lane.b32.xlu1 %v15365_v63, %s13096_s17  ;;  %7031 = vrot.lane.b32.xlu0 %v15365_v63, %s13095_s2  ;;  %v6973_v4 = vmax.f32 %v6971_v25, %v6972_v18  ;;  %v6979_v43 = vrot.slane %v6978_v55, 1  ;;  %v6816_v5 = vmax.f32 %v15303_v28, %v6815_v6  ;;  %v6928_v2 = vmax.f32 %v15296_v37, %v6927_v24  ;;  %v7213_v6 = vld [vmem:[%s16895_s6 + $0x30] sm:$0xff] }
 0x6ed   :  { %v6923_v47 = vmax.f32 %v6921_v13, %v6922_v30  ;;  %v6873_v45 = vmax.f32 %v15308_v59, %v6872_v12  ;;  %v6984_v19 = vrot.slane %v15300_v14, 2  ;;  %v7295_v60 = vand.u32 4294901760, %v7223_v31 }
 0x6ee   :  { %v15383_v50 = vsel %vm7006_vm14, %v7003_v9, %v6973_v4  ;;  %v6929_v0 = vrot.slane %v6928_v2, 1  ;;  %v6980_v16 = vmax.f32 %v6978_v55, %v6979_v43  ;;  %v7247_v8 = vand.u32 4294901760, %v7207_v23  ;;  %v7230_v55 = vld [vmem:[%s16895_s6 + $0xb8] sm:$0xff]  ;;  %v7231_v43 = vld [vmem:[%s16895_s6 + $0xc0] sm:$0xff] }
 0x6ef   :  { %v7004_v52 = vsel %vm6997_vm13, %v6995_v22, %v6923_v47  ;;  %v6985_v57 = vmax.f32 %v15300_v14, %v6984_v19  ;;  %v6996_v28 = vsel %vm6988_vm12, %v6816_v5, %v6873_v45  ;;  %v7224_v14 = vld [vmem:[%s16895_s6 + $0x88] sm:$0xff]  ;;  %v7250_v29 = vand.u32 4294901760, %v7208_v53  ;;  %v7214_v4 = vld [vmem:[%s16895_s6 + $0x38] sm:$0xff] }
 0x6f0   :  { %7057 = vrot.lane.b32.xlu1 %v15383_v50, %s13096_s17  ;;  %7033 = vrot.lane.b32.xlu0 %v15383_v50, %s13095_s2  ;;  %v6930_v37 = vmax.f32 %v6928_v2, %v6929_v0  ;;  %v15393_v24 = vsel %vm7006_vm14, %v7004_v52, %v6980_v16  ;;  %v7298_v41 = vand.u32 4294901760, %v7224_v14  ;;  %v7301_v7 = vand.u32 4294901760, %v7225_v3  ;;  %v7232_v19 = vld [vmem:[%s16895_s6 + $0xc8] sm:$0xff]  ;;  %v7215_v0 = vld [vmem:[%s16895_s6 + $0x40] sm:$0xff] }
 0x6f1   :  { %v6986_v59 = vrot.slane %v6985_v57, 1  ;;  %v7304_v38 = vand.u32 4294901760, %v7226_v32  ;;  %v15429_v58 = vsub.f32 %v7223_v31, %v7295_v60  ;;  %v7253_v26 = vand.u32 4294901760, %v7209_v27 }
 0x6f2   :  { %v7005_v10 = vsel %vm6997_vm13, %v6996_v28, %v6930_v37  ;;  %v15427_v11 = vpack.c.bf16 %v7298_v41, %v7295_v60  ;;  %v15431_v36 = vsub.f32 %v7224_v14, %v7298_v41  ;;  %v15442_v17 = vpack.c.bf16 %v7250_v29, %v7247_v8  ;;  %v7216_v28 = vld [vmem:[%s16895_s6 + $0x48] sm:$0xff] }
 0x6f3   :  { %v6987_v15 = vmax.f32 %v6985_v57, %v6986_v59  ;;  %v15444_v46 = vsub.f32 %v7207_v23, %v7247_v8  ;;  %v15446_v51 = vsub.f32 %v7208_v53, %v7250_v29  ;;  %v15455_v25 = vpack.c.bf16 %v7304_v38, %v7301_v7 }
 0x6f4   :  { %7059 = vrot.lane.b32.xlu1 %v15393_v24, %s13096_s17  ;;  %7035 = vrot.lane.b32.xlu0 %v15393_v24, %s13095_s2  ;;  %17254 = vst [vmem:[#allocation7_spill] sm:$0xff] %v15427_v11  ;;  %17255 = vst [vmem:[#allocation5_spill] sm:$0xff] %v15442_v17  ;;  %v15457_v44 = vsub.f32 %v7225_v3, %v7301_v7  ;;  %v15459_v33 = vsub.f32 %v7226_v32, %v7304_v38  ;;  %v7256_v35 = vand.u32 4294901760, %v7210_v62 }
 0x6f5   :  { %v15440_v54 = vsel %vm7006_vm14, %v7005_v10, %v6987_v15  ;;  %12358 = vmatprep.subr.bf16.mxu0 %v15427_v11  ;;  %17256 = vst [vmem:[#allocation9_spill] sm:$0xff] %v15455_v25  ;;  %v15462_v21 = vsub.f32 %v7209_v27, %v7253_v26  ;;  %v7307_v20 = vand.u32 4294901760, %v7227_v42  ;;  %v7310_v13 = vand.u32 4294901760, %v7228_v48 }
 0x6f6   :  { %12360 = vmatpush3.bf16.msra.mxu0 %v15442_v17  ;;  %v7259_v18 = vand.u32 4294901760, %v7211_v40  ;;  %v15474_v9 = vpack.c.bf16 %v7256_v35, %v7253_v26  ;;  %v15476_v30 = vsub.f32 %v7210_v62, %v7256_v35  ;;  %v7262_v22 = vand.u32 4294901760, %v7212_v61 }
 0x6f7   :  { %v7313_v12 = vand.u32 4294901760, %v7229_v49  ;;  %12362 = vmatprep.subr.bf16.mxu0 %v15455_v25  ;;  %v15485_v5 = vpack.c.bf16 %v7310_v13, %v7307_v20  ;;  %v15487_v2 = vsub.f32 %v7227_v42, %v7307_v20  ;;  %v15489_v47 = vsub.f32 %v7228_v48, %v7310_v13  ;;  %v7217_v13 = vld [vmem:[%s16895_s6 + $0x50] sm:$0xff] }
 0x6f8   :  { %7061 = vrot.lane.b32.xlu1 %v15440_v54, %s13096_s17  ;;  %7037 = vrot.lane.b32.xlu0 %v15440_v54, %s13095_s2  ;;  %17257 = vst [vmem:[#allocation8_spill] sm:$0xff] %v15474_v9  ;;  %v15491_v45 = vsub.f32 %v7211_v40, %v7259_v18  ;;  %v15499_v16 = vsub.f32 %v7212_v61, %v7262_v22  ;;  %v7316_v52 = vand.u32 4294901760, %v7230_v55  ;;  %v7265_v59 = vand.u32 4294901760, %v7213_v6  ;;  %v7233_v40 = vld [vmem:[%s16895_s6 + $0xd0] sm:$0xff]  ;;  %v7234_v61 = vld [vmem:[%s16895_s6 + $0xd8] sm:$0xff] }
 0x6f9   :  { %17258 = vst [vmem:[#allocation18_spill] sm:$0xff] %v15485_v5  ;;  %v15501_v57 = vsub.f32 %v7229_v49, %v7313_v12  ;;  %v15507_v37 = vpack.c.bf16 %v7262_v22, %v7259_v18  ;;  %v7268_v31 = vand.u32 4294901760, %v7214_v4  ;;  %v7319_v14 = vand.u32 4294901760, %v7231_v43  ;;  %v7218_v18 = vld [vmem:[%s16895_s6 + $0x58] sm:$0xff] }
 0x6fa   :  { %12364 = vmatpush3.bf16.msra.mxu0 %v15474_v9  ;;  %v15510_v23 = vpack.c.bf16 %v7316_v52, %v7313_v12  ;;  %v15512_v10 = vsub.f32 %v7230_v55, %v7316_v52  ;;  %v7322_v60 = vand.u32 4294901760, %v7232_v19  ;;  %v7271_v41 = vand.u32 4294901760, %v7215_v0  ;;  %v7235_v52 = vld [vmem:[%s16895_s6 + $0xe0] sm:$0xff] }
 0x6fb   :  { %17259 = vst [vmem:[#allocation17_spill] sm:$0xff] %v15507_v37  ;;  %12366 = vmatprep.subr.bf16.mxu0 %v15485_v5  ;;  %v15514_v53 = vsub.f32 %v7213_v6, %v7265_v59  ;;  %v15516_v8 = vsub.f32 %v7214_v4, %v7268_v31  ;;  %v7274_v3 = vand.u32 4294901760, %v7216_v28  ;;  %v15518_v32 = vsub.f32 %v7231_v43, %v7319_v14 }
 0x6fc   :  { %17260 = vst [vmem:[#allocation21_spill] sm:$0xff] %v15510_v23  ;;  %v15520_v15 = vsub.f32 %v7232_v19, %v7322_v60  ;;  %v15522_v29 = vsub.f32 %v7215_v0, %v7271_v41  ;;  %v15525_v7 = vpack.c.bf16 %v7268_v31, %v7265_v59  ;;  %v15530_v27 = vpack.c.bf16 %v7322_v60, %v7319_v14  ;;  %v7219_v59 = vld [vmem:[%s16895_s6 + $0x60] sm:$0xff] }
 0x6fd   :  { %v15527_v38 = vsub.f32 %v7216_v28, %v7274_v3  ;;  %v15533_v62 = vpack.c.bf16 %v7274_v3, %v7271_v41  ;;  %v7325_v35 = vand.u32 4294901760, %v7233_v40  ;;  %v7328_v20 = vand.u32 4294901760, %v7234_v61  ;;  %v7236_v28 = vld [vmem:[%s16895_s6 + $0xe8] sm:$0xff] }
 0x6fe   :  { %12368 = vmatpush3.bf16.msra.mxu0 %v15507_v37  ;;  %17261 = vst [vmem:[#allocation20_spill] sm:$0xff] %v15525_v7  ;;  %17262 = vst [vmem:[#allocation24_spill] sm:$0xff] %v15530_v27  ;;  %v7277_v55 = vand.u32 4294901760, %v7217_v13  ;;  %v7280_v6 = vand.u32 4294901760, %v7218_v18  ;;  %v7331_v14 = vand.u32 4294901760, %v7235_v52  ;;  %v7334_v60 = vand.u32 4294901760, %v7236_v28 }
 0x6ff   :  { %12370 = vmatprep.subr.bf16.mxu0 %v15510_v23  ;;  %17263 = vst [vmem:[#allocation22_spill] sm:$0xff] %v15533_v62  ;;  %v15555_v4 = vpack.c.bf16 %v7328_v20, %v7325_v35  ;;  %v15559_v43 = vsub.f32 %v7234_v61, %v7328_v20  ;;  %v7220_v41 = vld [vmem:[%s16895_s6 + $0x68] sm:$0xff]  ;;  %v7283_v3 = vand.u32 4294901760, %v7219_v59 }
 0x700   :  { %v15561_v19 = vpack.c.bf16 %v7280_v6, %v7277_v55  ;;  %v15563_v0 = vsub.f32 %v7217_v13, %v7277_v55  ;;  %v15576_v31 = vsub.f32 %v7218_v18, %v7280_v6  ;;  %v15585_v61 = vsub.f32 %v7235_v52, %v7331_v14  ;;  %v7237_v6 = vld [vmem:[%s16895_s6 + $0xf0] sm:$0xff] }
 0x701   :  { %17264 = vst [vmem:[#allocation2_spill] sm:$0xff] %v15555_v4  ;;  %v15589_v20 = vsub.f32 %v7219_v59, %v7283_v3  ;;  %v7337_v52 = vand.u32 4294901760, %v7237_v6  ;;  %v7221_v59 = vld [vmem:[%s16895_s6 + $0x70] sm:$0xff] }
 0x702   :  { %12372 = vmatpush3.bf16.msra.mxu0 %v15525_v7  ;;  %17265 = vst [vmem:[#allocation23_spill] sm:$0xff] %v15561_v19  ;;  %v17275_v7 = vand.u32 4294901760, %v15457_v44 }
 0x703   :  { %12374 = vmatprep.subr.bf16.mxu0 %v15530_v27  ;;  %17267 = vst [vmem:[#allocation25_spill] sm:$0xff] %v15589_v20 }
 0x706   :  { %12376 = vmatpush3.bf16.msra.mxu0 %v15533_v62 }
 0x707   :  { %12378 = vmatprep.subr.bf16.mxu0 %v15555_v4 }
 0x70a   :  { %12380 = vmatpush3.bf16.msra.mxu0 %v15561_v19 }
 0x744   :  { %v7048_v42 = vpop.permute.xlu1 %7047  ;;  %v7024_v26 = vpop.permute.xlu0 %7023 }
 0x745   :  { %v7071_v48 = vsel %vm5460_vm6, %v7024_v26, %v7048_v42  ;;  %v7286_v42 = vand.u32 4294901760, %v7220_v41 }
 0x746   :  { %v15545_v49 = vmax.f32 %v15258_v56, %v7071_v48  ;;  %v15557_v56 = vsub.f32 %v7233_v40, %v7325_v35  ;;  %v15583_v40 = vpack.c.bf16 %v7334_v60, %v7331_v14  ;;  %v15587_v35 = vsub.f32 %v7236_v28, %v7334_v60  ;;  %v7222_v14 = vld [vmem:[%s16895_s6 + $0x78] sm:$0xff] }
 0x747   :  { %v15592_v18 = vpack.c.bf16 %v7286_v42, %v7283_v3  ;;  %v15594_v55 = vsub.f32 %v7220_v41, %v7286_v42  ;;  %v17014_v60 = vand.u32 4294901760, %v15429_v58  ;;  %v7289_v41 = vand.u32 4294901760, %v7221_v59 }
 0x748   :  { %v7143_v22 = vrot.slane %v15545_v49, 3  ;;  %v7095_v12 = vrot.slane %v15545_v49, 1  ;;  %17266 = vst [vmem:[#allocation3_spill] sm:$0xff] %v15583_v40  ;;  %12382 = vmatprep.subr.bf16.mxu0 %v15583_v40  ;;  %v7292_v3 = vand.u32 4294901760, %v7222_v14  ;;  %v17017_v42 = vand.u32 4294901760, %v15431_v36 }
 0x749   :  { %17268 = vst [vmem:[#allocation4_spill] sm:$0xff] %v15592_v18  ;;  %12384 = vmatpush3.bf16.msra.mxu0 %v15592_v18  ;;  %v7579_v19 = vsub.f32 %v15429_v58, %v17014_v60  ;;  %v17021_v18 = vand.u32 4294901760, %v15446_v51  ;;  %v15637_v60 = vsub.f32 %v7237_v6, %v7337_v52  ;;  %v7593_v6 = vsub.f32 %v15457_v44, %v17275_v7 }
 0x74a   :  { %7151 = vrot.lane.b32.xlu0 %v7143_v22, %s13098_s4  ;;  %7103 = vrot.lane.b32.xlu1 %v7095_v12, %s13098_s4  ;;  %v7238_v22 = vld [vmem:[%s16895_s6 + $0xf8] sm:$0xff]  ;;  %v15620_v40 = vpack.c.bf16 %v7292_v3, %v7289_v41  ;;  %v7586_v4 = vsub.f32 %v15431_v36, %v17017_v42  ;;  %v15641_v42 = vsub.f32 %v7221_v59, %v7289_v41  ;;  %v17027_v41 = vand.u32 4294901760, %v15487_v2 }
 0x74b   :  { %v7340_v28 = vand.u32 4294901760, %v7238_v22  ;;  %17271 = vst [vmem:[#allocation19_spill] sm:$0xff] %v15637_v60  ;;  %v15643_v37 = vsub.f32 %v7222_v14, %v7292_v3  ;;  %v7474_v27 = vsub.f32 %v15446_v51, %v17021_v18  ;;  %v17028_v3 = vand.u32 4294901760, %v15489_v47 }
 0x74c   :  { %v7050_v26 = vpop.permute.xlu1 %7049  ;;  %v7026_v48 = vpop.permute.xlu0 %7025  ;;  %17270 = vst [vmem:[#allocation6_spill] sm:$0xff] %v15620_v40  ;;  %17273 = vst [vmem:[#allocation29_spill] sm:$0xff] %v15641_v42 }
 0x74d   :  { %v7072_v13 = vsel %vm5460_vm6, %v7026_v48, %v7050_v26  ;;  %v15639_v23 = vsub.f32 %v7238_v22, %v7340_v28  ;;  %17274 = vst [vmem:[#allocation27_spill] sm:$0xff] %v15643_v37  ;;  %v17276_v22 = vand.u32 4294901760, %v15459_v33 }
 0x74e   :  { %v15603_v12 = vmax.f32 %v15285_v34, %v7072_v13  ;;  %v17020_v34 = vand.u32 4294901760, %v15444_v46  ;;  %v15618_v13 = vpack.c.bf16 %v7340_v28, %v7337_v52  ;;  %v17026_v28 = vand.u32 4294901760, %v15462_v21 }
 0x74f   :  { %17272 = vst [vmem:[#allocation10_spill] sm:$0xff] %v15639_v23  ;;  %v7600_v52 = vsub.f32 %v15459_v33, %v17276_v22 }
 0x750   :  { %v7144_v26 = vrot.slane %v15603_v12, 3  ;;  %v7096_v48 = vrot.slane %v15603_v12, 1  ;;  %17269 = vst [vmem:[#allocation26_spill] sm:$0xff] %v15618_v13  ;;  %v7467_v62 = vsub.f32 %v15444_v46, %v17020_v34  ;;  %12386 = vmatprep.subr.bf16.mxu0 %v15618_v13  ;;  %v7481_v22 = vsub.f32 %v15462_v21, %v17026_v28 }
 0x751   :  { %12388 = vmatpush3.bf16.msra.mxu0 %v15620_v40  ;;  %v7594_v40 = vand.u32 4294901760, %v7593_v6  ;;  %v7601_v7 = vand.u32 4294901760, %v7600_v52 }
 0x752   :  { %7153 = vrot.lane.b32.xlu0 %v7144_v26, %s13098_s4  ;;  %7105 = vrot.lane.b32.xlu1 %v7096_v48, %s13098_s4  ;;  %v7580_v26 = vand.u32 4294901760, %v7579_v19  ;;  %v7587_v48 = vand.u32 4294901760, %v7586_v4  ;;  %v7468_v34 = vand.u32 4294901760, %v7467_v62  ;;  %v7475_v62 = vand.u32 4294901760, %v7474_v27 }
 0x753   :  { %v17277_v27 = vand.u32 4294901760, %v15476_v30  ;;  %v15674_v6 = vpack.c.bf16 %v7601_v7, %v7594_v40  ;;  %v7482_v52 = vand.u32 4294901760, %v7481_v22 }
 0x754   :  { %v12389_v4 = vpack.c.bf16 %v7587_v48, %v7580_v26  ;;  %v15666_v59 = vpack.c.bf16 %v7475_v62, %v7468_v34  ;;  %v7607_v48 = vsub.f32 %v15487_v2, %v17027_v41 }
 0x755   :  { %v7488_v26 = vsub.f32 %v15476_v30, %v17277_v27 }
 0x756   :  { %v7052_v14 = vpop.permute.xlu1 %7051  ;;  %v7028_v19 = vpop.permute.xlu0 %7027  ;;  %12390 = vmatprep.subr.bf16.mxu0 %v12389_v4  ;;  %v7608_v28 = vand.u32 4294901760, %v7607_v48  ;;  %v17034_v48 = vand.u32 4294901760, %v15512_v10 }
 0x757   :  { %v7073_v18 = vsel %vm5460_vm6, %v7028_v19, %v7052_v14  ;;  %v7614_v14 = vsub.f32 %v15489_v47, %v17028_v3  ;;  %v7489_v62 = vand.u32 4294901760, %v7488_v26  ;;  %v17031_v3 = vand.u32 4294901760, %v15499_v16 }
 0x758   :  { %v15664_v13 = vmax.f32 %v15329_v1, %v7073_v18  ;;  %v17029_v1 = vand.u32 4294901760, %v15491_v45  ;;  %v17030_v26 = vand.u32 4294901760, %v15501_v57 }
 0x759   :  { %v7615_v41 = vand.u32 4294901760, %v7614_v14  ;;  %v15691_v22 = vpack.c.bf16 %v7489_v62, %v7482_v52  ;;  %v17039_v14 = vand.u32 4294901760, %v15514_v53  ;;  %v7502_v52 = vsub.f32 %v15499_v16, %v17031_v3 }
 0x75a   :  { %v7054_v18 = vpop.permute.xlu1 %7053  ;;  %v7030_v34 = vpop.permute.xlu0 %7029  ;;  %v7145_v19 = vrot.slane %v15664_v13, 3  ;;  %v7097_v4 = vrot.slane %v15664_v13, 1  ;;  %v7495_v40 = vsub.f32 %v15491_v45, %v17029_v1 }
 0x75b   :  { %v7074_v27 = vsel %vm5460_vm6, %v7030_v34, %v7054_v18  ;;  %v15695_v18 = vpack.c.bf16 %v7615_v41, %v7608_v28  ;;  %v7621_v28 = vsub.f32 %v15501_v57, %v17030_v26  ;;  %v7628_v41 = vsub.f32 %v15512_v10, %v17034_v48 }
 0x75c   :  { %v15687_v7 = vmax.f32 %v15348_v39, %v7074_v27  ;;  %7155 = vrot.lane.b32.xlu0 %v7145_v19, %s13098_s4  ;;  %7107 = vrot.lane.b32.xlu1 %v7097_v4, %s13098_s4  ;;  %v7496_v27 = vand.u32 4294901760, %v7495_v40  ;;  %v7509_v62 = vsub.f32 %v15514_v53, %v17039_v14  ;;  %v17040_v26 = vand.u32 4294901760, %v15518_v32 }
 0x75d   :  { %v7622_v3 = vand.u32 4294901760, %v7621_v28  ;;  %v7629_v5 = vand.u32 4294901760, %v7628_v41 }
 0x75e   :  { %v7056_v34 = vpop.permute.xlu1 %7055  ;;  %v7032_v1 = vpop.permute.xlu0 %7031  ;;  %v7146_v39 = vrot.slane %v15687_v7, 3  ;;  %v7098_v19 = vrot.slane %v15687_v7, 1  ;;  %v7635_v41 = vsub.f32 %v15518_v32, %v17040_v26 }
 0x75f   :  { %v7075_v4 = vsel %vm5460_vm6, %v7032_v1, %v7056_v34  ;;  %v7503_v1 = vand.u32 4294901760, %v7502_v52  ;;  %v17041_v34 = vand.u32 4294901760, %v15516_v8  ;;  %v15727_v52 = vpack.c.bf16 %v7629_v5, %v7622_v3 }
 0x760   :  { %v15715_v40 = vmax.f32 %v15365_v63, %v7075_v4  ;;  %7157 = vrot.lane.b32.xlu0 %v7146_v39, %s13098_s4  ;;  %7109 = vrot.lane.b32.xlu1 %v7098_v19, %s13098_s4  ;;  %v7510_v39 = vand.u32 4294901760, %v7509_v62  ;;  %v17045_v5 = vand.u32 4294901760, %v15527_v38  ;;  %v7636_v62 = vand.u32 4294901760, %v7635_v41 }
 0x761   :  { %v15724_v4 = vpack.c.bf16 %v7503_v1, %v7496_v27  ;;  %v7516_v28 = vsub.f32 %v15516_v8, %v17041_v34  ;;  %v17278_v27 = vand.u32 4294901760, %v15520_v15  ;;  %v17048_v1 = vand.u32 4294901760, %v15557_v56 }
 0x762   :  { %v7058_v9 = vpop.permute.xlu1 %7057  ;;  %v7034_v25 = vpop.permute.xlu0 %7033  ;;  %v7147_v14 = vrot.slane %v15715_v40, 3  ;;  %v7099_v63 = vrot.slane %v15715_v40, 1  ;;  %v7530_v41 = vsub.f32 %v15527_v38, %v17045_v5 }
 0x763   :  { %v7076_v19 = vsel %vm5460_vm6, %v7034_v25, %v7058_v9  ;;  %v7642_v25 = vsub.f32 %v15520_v15, %v17278_v27  ;;  %v17044_v9 = vand.u32 4294901760, %v15522_v29  ;;  %v7517_v3 = vand.u32 4294901760, %v7516_v28 }
 0x764   :  { %v15736_v48 = vmax.f32 %v15383_v50, %v7076_v19  ;;  %7159 = vrot.lane.b32.xlu0 %v7147_v14, %s13098_s4  ;;  %7111 = vrot.lane.b32.xlu1 %v7099_v63, %s13098_s4 }
 0x765   :  { %v7643_v34 = vand.u32 4294901760, %v7642_v25  ;;  %v15750_v27 = vpack.c.bf16 %v7517_v3, %v7510_v39  ;;  %v7523_v28 = vsub.f32 %v15522_v29, %v17044_v9  ;;  %v7649_v39 = vsub.f32 %v15557_v56, %v17048_v1 }
 0x766   :  { %v7060_v50 = vpop.permute.xlu1 %7059  ;;  %v7036_v19 = vpop.permute.xlu0 %7035  ;;  %v7148_v14 = vrot.slane %v15736_v48, 3  ;;  %v7100_v63 = vrot.slane %v15736_v48, 1  ;;  %v17280_v9 = vand.u32 4294901760, %v15559_v43 }
 0x767   :  { %v7077_v17 = vsel %vm5460_vm6, %v7036_v19, %v7060_v50  ;;  %v15763_v25 = vpack.c.bf16 %v7643_v34, %v7636_v62  ;;  %v7524_v50 = vand.u32 4294901760, %v7523_v28  ;;  %v7531_v19 = vand.u32 4294901760, %v7530_v41 }
 0x768   :  { %v15759_v26 = vmax.f32 %v15393_v24, %v7077_v17  ;;  %7161 = vrot.lane.b32.xlu0 %v7148_v14, %s13098_s4  ;;  %7113 = vrot.lane.b32.xlu1 %v7100_v63, %s13098_s4  ;;  %v7656_v5 = vsub.f32 %v15559_v43, %v17280_v9  ;;  %v17049_v24 = vand.u32 4294901760, %v15576_v31  ;;  %v7650_v62 = vand.u32 4294901760, %v7649_v39 }
 0x769   :  { %v15776_v1 = vpack.c.bf16 %v7531_v19, %v7524_v50  ;;  %v17282_v28 = vand.u32 4294901760, %v15563_v0  ;;  %v17051_v50 = vand.u32 4294901760, %v15587_v35 }
 0x76a   :  { %17279 = vst [vmem:[#allocation11_spill] sm:$0xff] %v15759_v26  ;;  %v7062_v17 = vpop.permute.xlu1 %7061  ;;  %v7038_v14 = vpop.permute.xlu0 %7037  ;;  %v7149_v63 = vrot.slane %v15759_v26, 3  ;;  %v7101_v34 = vrot.slane %v15759_v26, 1  ;;  %v7657_v3 = vand.u32 4294901760, %v7656_v5  ;;  %v7544_v39 = vsub.f32 %v15576_v31, %v17049_v24 }
 0x76b   :  { %v7078_v11 = vsel %vm5460_vm6, %v7038_v14, %v7062_v17  ;;  %17281 = vst [vmem:[#allocation30_spill] sm:$0xff] %v15776_v1  ;;  %v7537_v41 = vsub.f32 %v15563_v0, %v17282_v28  ;;  %v17050_v17 = vand.u32 4294901760, %v15585_v61  ;;  %v17054_v14 = vand.u32 4294901760, %v15589_v20 }
 0x76c   :  { %v15782_v9 = vmax.f32 %v15440_v54, %v7078_v11  ;;  %7163 = vrot.lane.b32.xlu0 %v7149_v63, %s13098_s4  ;;  %7115 = vrot.lane.b32.xlu1 %v7101_v34, %s13098_s4  ;;  %v15791_v5 = vpack.c.bf16 %v7657_v3, %v7650_v62  ;;  %v17055_v11 = vand.u32 4294901760, %v15594_v55  ;;  %v7545_v34 = vand.u32 4294901760, %v7544_v39 }
 0x76d   :  { %v7538_v19 = vand.u32 4294901760, %v7537_v41  ;;  %v7663_v28 = vsub.f32 %v15585_v61, %v17050_v17  ;;  %v7670_v24 = vsub.f32 %v15587_v35, %v17051_v50  ;;  %v7551_v3 = vsub.f32 %v15589_v20, %v17054_v14 }
 0x76e   :  { %17283 = vst [vmem:[#allocation28_spill] sm:$0xff] %v15782_v9  ;;  %17284 = vst [vmem:[#allocation12_spill] sm:$0xff] %v15791_v5  ;;  %v7150_v54 = vrot.slane %v15782_v9, 3  ;;  %v7102_v63 = vrot.slane %v15782_v9, 1  ;;  %v7558_v62 = vsub.f32 %v15594_v55, %v17055_v11  ;;  %v17056_v39 = vand.u32 4294901760, %v15637_v60 }
 0x76f   :  { %v15811_v41 = vpack.c.bf16 %v7545_v34, %v7538_v19  ;;  %v17057_v17 = vand.u32 4294901760, %v15639_v23  ;;  %v17058_v50 = vand.u32 4294901760, %v15641_v42  ;;  %v7664_v9 = vand.u32 4294901760, %v7663_v28 }
 0x770   :  { %7165 = vrot.lane.b32.xlu0 %v7150_v54, %s13098_s4  ;;  %7117 = vrot.lane.b32.xlu1 %v7102_v63, %s13098_s4  ;;  %v7671_v5 = vand.u32 4294901760, %v7670_v24  ;;  %v7552_v1 = vand.u32 4294901760, %v7551_v3  ;;  %v7559_v14 = vand.u32 4294901760, %v7558_v62  ;;  %v7677_v11 = vsub.f32 %v15637_v60, %v17056_v39 }
 0x771   :  { %17285 = vst [vmem:[#allocation31_spill] sm:$0xff] %v15811_v41  ;;  %v7684_v54 = vsub.f32 %v15639_v23, %v17057_v17  ;;  %v7565_v19 = vsub.f32 %v15641_v42, %v17058_v50  ;;  %v17061_v63 = vand.u32 4294901760, %v15643_v37 }
 0x772   :  { %v15826_v34 = vpack.c.bf16 %v7671_v5, %v7664_v9  ;;  %v15828_v28 = vpack.c.bf16 %v7559_v14, %v7552_v1  ;;  %v7678_v24 = vand.u32 4294901760, %v7677_v11 }
 0x773   :  { %v7685_v3 = vand.u32 4294901760, %v7684_v54  ;;  %v7566_v62 = vand.u32 4294901760, %v7565_v19  ;;  %v7572_v39 = vsub.f32 %v15643_v37, %v17061_v63  ;;  %v7127_v19 = vrot.slane %v15545_v49, 2 }
 0x775   :  { %v15837_v50 = vpack.c.bf16 %v7685_v3, %v7678_v24  ;;  %v7573_v26 = vand.u32 4294901760, %v7572_v39 }
 0x777   :  { %v15839_v9 = vpack.c.bf16 %v7573_v26, %v7566_v62 }
 0x7bc   :  { %v7104_v54 = vpop.permute.xlu1 %7103  ;;  %v7152_v11 = vpop.permute.xlu0 %7151 }
 0x7bd   :  { %v7175_v24 = vsel %vm5546_vm7, %v15545_v49, %v7104_v54  ;;  %v7183_v3 = vsel %vm5546_vm7, %v7127_v19, %v7152_v11  ;;  %v7128_v49 = vrot.slane %v15603_v12, 2 }
 0x7be   :  { %v7191_v62 = vsel %vm6988_vm12, %v7175_v24, 0.0  ;;  %v7192_v14 = vsel %vm6988_vm12, %v7183_v3, 0.0 }
 0x7bf   :  { %v15875_v63 = vand.u32 4294901760, %v7191_v62  ;;  %v15877_v5 = vand.u32 4294901760, %v7192_v14 }
 0x7c1   :  { %v15880_v39 = vsub.f32 %v7191_v62, %v15875_v63  ;;  %v15883_v26 = vsub.f32 %v7192_v14, %v15877_v5 }
 0x7c3   :  { %17286 = vst [vmem:[#allocation13_spill] sm:$0xff] %v15880_v39  ;;  %17287 = vst [vmem:[#allocation14_spill] sm:$0xff] %v15883_v26  ;;  %v17070_v1 = vand.u32 4294901760, %v15880_v39  ;;  %v17073_v11 = vand.u32 4294901760, %v15883_v26 }
 0x7c4   :  { %v7106_v54 = vpop.permute.xlu1 %7105  ;;  %v7154_v19 = vpop.permute.xlu0 %7153 }
 0x7c5   :  { %v7351_v24 = vsub.f32 %v15880_v39, %v17070_v1  ;;  %v7176_v3 = vsel %vm5546_vm7, %v15603_v12, %v7106_v54  ;;  %v7184_v62 = vsel %vm5546_vm7, %v7128_v49, %v7154_v19  ;;  %v7345_v14 = vsub.f32 %v15883_v26, %v17073_v11  ;;  %v17307_v26 = vld [vmem:[#allocation12_spill] sm:$0xff] }
 0x7c6   :  { %v7193_v41 = vsel %vm6988_vm12, %v7176_v3, 0.0  ;;  %v7194_v17 = vsel %vm6988_vm12, %v7184_v62, 0.0  ;;  %v7129_v19 = vrot.slane %v15664_v13, 2  ;;  %v7130_v11 = vrot.slane %v15687_v7, 2 }
 0x7c7   :  { %v7352_v42 = vand.u32 4294901760, %v7351_v24  ;;  %v15899_v37 = vand.u32 4294901760, %v7193_v41  ;;  %v15901_v60 = vand.u32 4294901760, %v7194_v17  ;;  %v7346_v23 = vand.u32 4294901760, %v7345_v14 }
 0x7c9   :  { %17288 = vst [vmem:[#allocation15_spill] sm:$0xff] %v15899_v37  ;;  %v15904_v1 = vsub.f32 %v7193_v41, %v15899_v37  ;;  %v15907_v12 = vsub.f32 %v7194_v17, %v15901_v60  ;;  %7347 = vmatprep.mubr.f32.mxu0 %v7346_v23 }
 0x7ca   :  { %7353 = vmatmul.mubr.f32.vlgmr.msra.gmra.mrb[16].mxu0 %v7352_v42 }
 0x7cb   :  { %17289 = vst [vmem:[#allocation16_spill] sm:$0xff] %v15904_v1  ;;  %17290 = vst [vmem:[#allocation32_spill] sm:$0xff] %v15907_v12  ;;  %12392 = vmatpush3.bf16.msra.mxu0 %v15666_v59  ;;  %v17071_v49 = vand.u32 4294901760, %v15907_v12  ;;  %v17072_v54 = vand.u32 4294901760, %v15904_v1 }
 0x7cc   :  { %12394 = vmatprep.subr.bf16.mxu0 %v15674_v6 }
 0x7cd   :  { %v7360_v41 = vsub.f32 %v15907_v12, %v17071_v49  ;;  %v7366_v17 = vsub.f32 %v15904_v1, %v17072_v54  ;;  %v17302_v12 = vld [vmem:[#allocation11_spill] sm:$0xff] }
 0x7ce   :  { %v7108_v23 = vpop.permute.xlu1 %7107  ;;  %v7156_v42 = vpop.permute.xlu0 %7155 }
 0x7cf   :  { %v7177_v59 = vsel %vm5546_vm7, %v15664_v13, %v7108_v23  ;;  %v7185_v24 = vsel %vm5546_vm7, %v7129_v19, %v7156_v42  ;;  %v7361_v3 = vand.u32 4294901760, %v7360_v41  ;;  %v7367_v62 = vand.u32 4294901760, %v7366_v17  ;;  %12396 = vmatpush3.bf16.msra.mxu0 %v15691_v22 }
 0x7d0   :  { %v7195_v6 = vsel %vm6988_vm12, %v7177_v59, 0.0  ;;  %v7196_v14 = vsel %vm6988_vm12, %v7185_v24, 0.0  ;;  %12398 = vmatprep.subr.bf16.mxu0 %v15695_v18  ;;  %v7131_v59 = vrot.slane %v15715_v40, 2 }
 0x7d1   :  { %v15927_v49 = vand.u32 4294901760, %v7195_v6  ;;  %v15929_v54 = vand.u32 4294901760, %v7196_v14  ;;  %7362 = vmatprep.mubr.f32.mxu0 %v7361_v3 }
 0x7d2   :  { %v7110_v13 = vpop.permute.xlu1 %7109  ;;  %v7158_v23 = vpop.permute.xlu0 %7157  ;;  %7368 = vmatmul.mubr.f32.gmra.mrb[18].mxu0 %v7367_v62 }
 0x7d3   :  { %17291 = vst [vmem:[#allocation33_spill] sm:$0xff] %v15927_v49  ;;  %17292 = vst [vmem:[#allocation34_spill] sm:$0xff] %v15929_v54  ;;  %v15933_v19 = vsub.f32 %v7195_v6, %v15927_v49  ;;  %v15936_v22 = vsub.f32 %v7196_v14, %v15929_v54  ;;  %v7178_v41 = vsel %vm5546_vm7, %v15687_v7, %v7110_v13  ;;  %12400 = vmatpush3.bf16.msra.mxu0 %v15724_v4 }
 0x7d4   :  { %v7186_v18 = vsel %vm5546_vm7, %v7130_v11, %v7158_v23  ;;  %v7197_v17 = vsel %vm6988_vm12, %v7178_v41, 0.0  ;;  %12402 = vmatprep.subr.bf16.mxu0 %v15727_v52  ;;  %v7132_v4 = vrot.slane %v15736_v48, 2 }
 0x7d5   :  { %17293 = vst [vmem:[#allocation35_spill] sm:$0xff] %v15933_v19  ;;  %17294 = vst [vmem:[#allocation36_spill] sm:$0xff] %v15936_v22  ;;  %v7198_v42 = vsel %vm6988_vm12, %v7186_v18, 0.0  ;;  %v15946_v24 = vand.u32 4294901760, %v7197_v17  ;;  %v17078_v62 = vand.u32 4294901760, %v15936_v22 }
 0x7d6   :  { %v15948_v3 = vand.u32 4294901760, %v7198_v42  ;;  %v7112_v6 = vpop.permute.xlu1 %7111  ;;  %v7160_v11 = vpop.permute.xlu0 %7159 }
 0x7d7   :  { %17295 = vst [vmem:[#allocation37_spill] sm:$0xff] %v15946_v24  ;;  %v15954_v14 = vsub.f32 %v7197_v17, %v15946_v24  ;;  %v7179_v52 = vsel %vm5546_vm7, %v15715_v40, %v7112_v6  ;;  %v7187_v23 = vsel %vm5546_vm7, %v7131_v59, %v7160_v11  ;;  %12404 = vmatpush3.bf16.msra.mxu0 %v15750_v27  ;;  %v17299_v17 = vand.u32 4294901760, %v15933_v19  ;;  %v17304_v27 = vld [vmem:[#allocation30_spill] sm:$0xff] }
 0x7d8   :  { %17296 = vst [vmem:[#allocation38_spill] sm:$0xff] %v15948_v3  ;;  %v15957_v13 = vsub.f32 %v7198_v42, %v15948_v3  ;;  %v7199_v41 = vsel %vm6988_vm12, %v7179_v52, 0.0  ;;  %v7200_v18 = vsel %vm6988_vm12, %v7187_v23, 0.0  ;;  %v7375_v7 = vsub.f32 %v15936_v22, %v17078_v62  ;;  %12406 = vmatprep.subr.bf16.mxu0 %v15763_v25 }
 0x7d9   :  { %17297 = vst [vmem:[#allocation39_spill] sm:$0xff] %v15954_v14  ;;  %v7381_v42 = vsub.f32 %v15933_v19, %v17299_v17  ;;  %v15972_v1 = vand.u32 4294901760, %v7199_v41  ;;  %v15974_v40 = vand.u32 4294901760, %v7200_v18  ;;  %v7133_v62 = vrot.slane %v17302_v12, 2 }
 0x7da   :  { %17298 = vst [vmem:[#allocation40_spill] sm:$0xff] %v15957_v13  ;;  %v7114_v6 = vpop.permute.xlu1 %7113  ;;  %v7162_v11 = vpop.permute.xlu0 %7161  ;;  %v7376_v52 = vand.u32 4294901760, %v7375_v7  ;;  %v17306_v39 = vand.u32 4294901760, %v15954_v14 }
 0x7db   :  { %17300 = vst [vmem:[#allocation41_spill] sm:$0xff] %v15972_v1  ;;  %17301 = vst [vmem:[#allocation42_spill] sm:$0xff] %v15974_v40  ;;  %v7382_v23 = vand.u32 4294901760, %v7381_v42  ;;  %v15980_v22 = vsub.f32 %v7199_v41, %v15972_v1  ;;  %v15983_v17 = vsub.f32 %v7200_v18, %v15974_v40  ;;  %v7180_v25 = vsel %vm5546_vm7, %v15736_v48, %v7114_v6 }
 0x7dc   :  { %v7188_v19 = vsel %vm5546_vm7, %v7132_v4, %v7162_v11  ;;  %12408 = vmatpush3.bf16.msra.mxu0 %v17304_v27  ;;  %v7201_v59 = vsel %vm6988_vm12, %v7180_v25, 0.0  ;;  %7377 = vmatprep.mubr.f32.mxu0 %v7376_v52  ;;  %v17305_v42 = vand.u32 4294901760, %v15957_v13  ;;  %v7396_v18 = vsub.f32 %v15954_v14, %v17306_v39  ;;  %v17311_v27 = vld [vmem:[#allocation31_spill] sm:$0xff] }
 0x7dd   :  { %17303 = vst [vmem:[#allocation11_spill] sm:$0xff] %v15980_v22  ;;  %v7202_v7 = vsel %vm6988_vm12, %v7188_v19, 0.0  ;;  %12410 = vmatprep.subr.bf16.mxu0 %v17307_v26  ;;  %v15998_v48 = vand.u32 4294901760, %v7201_v59  ;;  %7383 = vmatmul.mubr.f32.gmra.mrb[20].mxu0 %v7382_v23  ;;  %v17313_v14 = vand.u32 4294901760, %v15980_v22 }
 0x7de   :  { %v7390_v41 = vsub.f32 %v15957_v13, %v17305_v42  ;;  %v16000_v4 = vand.u32 4294901760, %v7202_v7  ;;  %v7116_v6 = vpop.permute.xlu1 %7115  ;;  %v7164_v11 = vpop.permute.xlu0 %7163  ;;  %v7397_v25 = vand.u32 4294901760, %v7396_v18  ;;  %v17310_v42 = vld [vmem:[#allocation28_spill] sm:$0xff]  ;;  %v17312_v18 = vand.u32 4294901760, %v15983_v17 }
 0x7df   :  { %17308 = vst [vmem:[#allocation30_spill] sm:$0xff] %v15998_v48  ;;  %v7134_v13 = vrot.slane %v17310_v42, 2  ;;  %v16006_v20 = vsub.f32 %v7201_v59, %v15998_v48  ;;  %v7181_v26 = vsel %vm5546_vm7, %v17302_v12, %v7116_v6  ;;  %v7189_v23 = vsel %vm5546_vm7, %v7133_v62, %v7164_v11 }
 0x7e0   :  { %17309 = vst [vmem:[#allocation12_spill] sm:$0xff] %v16000_v4  ;;  %v7391_v52 = vand.u32 4294901760, %v7390_v41  ;;  %v16009_v39 = vsub.f32 %v7202_v7, %v16000_v4  ;;  %12412 = vmatpush3.bf16.msra.mxu0 %v17311_v27  ;;  %v7203_v19 = vsel %vm6988_vm12, %v7181_v26, 0.0  ;;  %v7204_v41 = vsel %vm6988_vm12, %v7189_v23, 0.0 }
 0x7e1   :  { %v7405_v59 = vsub.f32 %v15983_v17, %v17312_v18  ;;  %v7411_v7 = vsub.f32 %v15980_v22, %v17313_v14  ;;  %12414 = vmatprep.subr.bf16.mxu0 %v15826_v34  ;;  %v16024_v12 = vand.u32 4294901760, %v7203_v19  ;;  %v16026_v62 = vand.u32 4294901760, %v7204_v41 }
 0x7e2   :  { %7392 = vmatprep.mubr.f32.mxu0 %v7391_v52  ;;  %v17099_v27 = vand.u32 4294901760, %v16009_v39  ;;  %v7118_v11 = vpop.permute.xlu1 %7117  ;;  %v7166_v52 = vpop.permute.xlu0 %7165 }
 0x7e3   :  { %17314 = vst [vmem:[#allocation28_spill] sm:$0xff] %v16024_v12  ;;  %17315 = vst [vmem:[#allocation31_spill] sm:$0xff] %v16026_v62  ;;  %7398 = vmatmul.mubr.f32.gmra.mrb[22].mxu0 %v7397_v25  ;;  %v7406_v26 = vand.u32 4294901760, %v7405_v59  ;;  %v7412_v23 = vand.u32 4294901760, %v7411_v7  ;;  %v16031_v18 = vsub.f32 %v7203_v19, %v16024_v12  ;;  %v16034_v14 = vsub.f32 %v7204_v41, %v16026_v62 }
 0x7e4   :  { %v7182_v34 = vsel %vm5546_vm7, %v17310_v42, %v7118_v11  ;;  %v7190_v22 = vsel %vm5546_vm7, %v7134_v13, %v7166_v52  ;;  %12416 = vmatpush3.bf16.msra.mxu0 %v15828_v28  ;;  %v7420_v19 = vsub.f32 %v16009_v39, %v17099_v27  ;;  %v17316_v59 = vand.u32 4294901760, %v16006_v20  ;;  %v17346_v27 = vld [vmem:[#allocation16_spill] sm:$0xff] }
 0x7e5   :  { %v7205_v25 = vsel %vm6988_vm12, %v7182_v34, 0.0  ;;  %v7206_v6 = vsel %vm6988_vm12, %v7190_v22, 0.0  ;;  %7407 = vmatprep.mubr.f32.mxu0 %v7406_v26  ;;  %12418 = vmatprep.subr.bf16.mxu0 %v15837_v50  ;;  %v17098_v28 = vand.u32 4294901760, %v16034_v14  ;;  %v17095_v22 = vand.u32 4294901760, %v16031_v18 }
 0x7e6   :  { %v7426_v41 = vsub.f32 %v16006_v20, %v17316_v59  ;;  %v16049_v42 = vand.u32 4294901760, %v7205_v25  ;;  %v16051_v13 = vand.u32 4294901760, %v7206_v6  ;;  %v7421_v7 = vand.u32 4294901760, %v7420_v19 }
 0x7e7   :  { %7413 = vmatmul.mubr.f32.gmra.mrb[24].mxu0 %v7412_v23  ;;  %v7435_v50 = vsub.f32 %v16034_v14, %v17098_v28  ;;  %v7441_v23 = vsub.f32 %v16031_v18, %v17095_v22  ;;  %v17319_v34 = vpack.c.bf16 %v15431_v36, %v15429_v58  ;;  %v17344_v28 = vld [vmem:[#allocation5_spill] sm:$0xff] }
 0x7e8   :  { %17317 = vst [vmem:[#allocation43_spill] sm:$0xff] %v16049_v42  ;;  %17318 = vst [vmem:[#allocation44_spill] sm:$0xff] %v16051_v13  ;;  %v7427_v11 = vand.u32 4294901760, %v7426_v41  ;;  %v16056_v52 = vsub.f32 %v7205_v25, %v16049_v42  ;;  %v16059_v26 = vsub.f32 %v7206_v6, %v16051_v13  ;;  %12420 = vmatpush3.bf16.msra.mxu0 %v15839_v9  ;;  %7422 = vmatprep.mubr.f32.mxu0 %v7421_v7 }
 0x7e9   :  { %12422 = vmatprep.subr.bf16.mxu0 %v17319_v34  ;;  %v7436_v25 = vand.u32 4294901760, %v7435_v50  ;;  %v7442_v19 = vand.u32 4294901760, %v7441_v23  ;;  %v17321_v50 = vpack.c.bf16 %v15459_v33, %v15457_v44  ;;  %v17323_v23 = vpack.c.bf16 %v15489_v47, %v15487_v2 }
 0x7ea   :  { %v17097_v6 = vand.u32 4294901760, %v16059_v26  ;;  %v17096_v59 = vand.u32 4294901760, %v16056_v52  ;;  %v17324_v34 = vpack.c.bf16 %v15499_v16, %v15491_v45 }
 0x7eb   :  { %7428 = vmatmul.mubr.f32.gmra.mrb[26].mxu0 %v7427_v11  ;;  %v17320_v11 = vpack.c.bf16 %v15446_v51, %v15444_v46 }
 0x7ec   :  { %7437 = vmatprep.mubr.f32.mxu0 %v7436_v25  ;;  %v7450_v41 = vsub.f32 %v16059_v26, %v17097_v6  ;;  %v7456_v9 = vsub.f32 %v16056_v52, %v17096_v59  ;;  %v17325_v25 = vpack.c.bf16 %v15512_v10, %v15501_v57  ;;  %v17342_v59 = vld [vmem:[#allocation13_spill] sm:$0xff]  ;;  %v17343_v6 = vld [vmem:[#allocation32_spill] sm:$0xff] }
 0x7ee   :  { %v7451_v7 = vand.u32 4294901760, %v7450_v41  ;;  %v7457_v22 = vand.u32 4294901760, %v7456_v9  ;;  %v17327_v41 = vpack.c.bf16 %v15520_v15, %v15518_v32  ;;  %v17328_v9 = vpack.c.bf16 %v15527_v38, %v15522_v29 }
 0x7ef   :  { %7443 = vmatmul.mubr.f32.gmra.mrb[28].mxu0 %v7442_v19  ;;  %v17326_v19 = vpack.c.bf16 %v15516_v8, %v15514_v53 }
 0x7f0   :  { %7452 = vmatprep.mubr.f32.mxu0 %v7451_v7  ;;  %v17329_v7 = vpack.c.bf16 %v15559_v43, %v15557_v56 }
 0x7f3   :  { %7458 = vmatmul.mubr.f32.gmra.mrb[30].mxu0 %v7457_v22  ;;  %v17322_v22 = vpack.c.bf16 %v15476_v30, %v15462_v21 }
 0x7f4   :  { %7688 = vmatprep.mubr.f32.mxu0 %v15877_v5 }
 0x7f7   :  { %7690 = vmatmul.mubr.f32.vlgmr.msra.gmra.mrb[32].mxu0 %v15875_v63 }
 0x7f8   :  { %7695 = vmatprep.mubr.f32.mxu0 %v15901_v60  ;;  %12424 = vmatpush3.bf16.msra.mxu0 %v17320_v11  ;;  %v17330_v11 = vpack.c.bf16 %v15576_v31, %v15563_v0 }
 0x7f9   :  { %12426 = vmatprep.subr.bf16.mxu0 %v17321_v50  ;;  %v17331_v50 = vpack.c.bf16 %v15587_v35, %v15585_v61 }
 0x7fb   :  { %7697 = vmatmul.mubr.f32.gmra.mrb[34].mxu0 %v15899_v37 }
 0x7fc   :  { %7702 = vmatprep.mubr.f32.mxu0 %v15929_v54  ;;  %12428 = vmatpush3.bf16.msra.mxu0 %v17322_v22  ;;  %v17332_v22 = vld [vmem:[#allocation25_spill] sm:$0xff]  ;;  %v17369_v54 = vand.u32 4294901760, %v15446_v51  ;;  %v17376_v51 = vand.u32 4294901760, %v15487_v2  ;;  %v17383_v2 = vand.u32 4294901760, %v15512_v10 }
 0x7fd   :  { %12430 = vmatprep.subr.bf16.mxu0 %v17323_v23  ;;  %v17333_v23 = vpack.c.bf16 %v15594_v55, %v17332_v22 }
 0x7ff   :  { %7704 = vmatmul.mubr.f32.gmra.mrb[36].mxu0 %v15927_v49  ;;  %v17359_v49 = vld [vmem:[#allocation2_spill] sm:$0xff] }
 0x800   :  { %7709 = vmatprep.mubr.f32.mxu0 %v15948_v3  ;;  %12432 = vmatpush3.bf16.msra.mxu0 %v17324_v34  ;;  %v17334_v34 = vld [vmem:[#allocation10_spill] sm:$0xff] }
 0x801   :  { %12434 = vmatprep.subr.bf16.mxu0 %v17325_v25  ;;  %v17335_v25 = vld [vmem:[#allocation19_spill] sm:$0xff]  ;;  %v17358_v3 = vld [vmem:[#allocation22_spill] sm:$0xff] }
 0x803   :  { %7711 = vmatmul.mubr.f32.gmra.mrb[38].mxu0 %v15946_v24  ;;  %v17357_v24 = vld [vmem:[#allocation11_spill] sm:$0xff] }
 0x804   :  { %7716 = vmatprep.mubr.f32.mxu0 %v15974_v40  ;;  %12436 = vmatpush3.bf16.msra.mxu0 %v17326_v19  ;;  %v17336_v19 = vpack.c.bf16 %v17334_v34, %v17335_v25  ;;  %v17356_v40 = vld [vmem:[#allocation24_spill] sm:$0xff] }
 0x805   :  { %12438 = vmatprep.subr.bf16.mxu0 %v17327_v41  ;;  %v17337_v41 = vld [vmem:[#allocation27_spill] sm:$0xff] }
 0x807   :  { %7718 = vmatmul.mubr.f32.gmra.mrb[40].mxu0 %v15972_v1  ;;  %v17355_v1 = vld [vmem:[#allocation20_spill] sm:$0xff] }
 0x808   :  { %7723 = vmatprep.mubr.f32.mxu0 %v16000_v4  ;;  %12440 = vmatpush3.bf16.msra.mxu0 %v17328_v9  ;;  %v17338_v9 = vld [vmem:[#allocation29_spill] sm:$0xff]  ;;  %v17354_v4 = vld [vmem:[#allocation39_spill] sm:$0xff] }
 0x809   :  { %12442 = vmatprep.subr.bf16.mxu0 %v17329_v7  ;;  %v17339_v7 = vpack.c.bf16 %v17337_v41, %v17338_v9  ;;  %v17390_v10 = vand.u32 4294901760, %v17354_v4 }
 0x80b   :  { %7725 = vmatmul.mubr.f32.gmra.mrb[42].mxu0 %v15998_v48  ;;  %v17353_v48 = vld [vmem:[#allocation21_spill] sm:$0xff] }
 0x80c   :  { %7730 = vmatprep.mubr.f32.mxu0 %v16026_v62  ;;  %12444 = vmatpush3.bf16.msra.mxu0 %v17330_v11  ;;  %v17340_v11 = vld [vmem:[#allocation14_spill] sm:$0xff]  ;;  %v17352_v62 = vld [vmem:[#allocation17_spill] sm:$0xff] }
 0x80d   :  { %12446 = vmatprep.subr.bf16.mxu0 %v17331_v50  ;;  %v17341_v50 = vld [vmem:[#allocation7_spill] sm:$0xff] }
 0x80f   :  { %7732 = vmatmul.mubr.f32.gmra.mrb[44].mxu0 %v16024_v12  ;;  %v17351_v12 = vld [vmem:[#allocation40_spill] sm:$0xff] }
 0x810   :  { %7737 = vmatprep.mubr.f32.mxu0 %v16051_v13  ;;  %12448 = vmatpush3.bf16.msra.mxu0 %v17333_v23  ;;  %v17345_v23 = vld [vmem:[#allocation9_spill] sm:$0xff]  ;;  %v17349_v13 = vld [vmem:[#allocation18_spill] sm:$0xff] }
 0x811   :  { %12450 = vmatprep.subr.bf16.mxu0 %v17336_v19  ;;  %v17347_v19 = vld [vmem:[#allocation36_spill] sm:$0xff] }
 0x813   :  { %7739 = vmatmul.mubr.f32.gmra.mrb[46].mxu0 %v16049_v42  ;;  %v17348_v42 = vld [vmem:[#allocation8_spill] sm:$0xff] }
 0x814   :  { %12452 = vmatpush3.bf16.msra.mxu0 %v17339_v7  ;;  %7874 = vmatprep.mubr.f32.mxu0 %v17340_v11  ;;  %v17350_v7 = vld [vmem:[#allocation35_spill] sm:$0xff] }
 0x815   :  { %12454 = vmatprep.subr.bf16.mxu0 %v17341_v50 }
 0x817   :  { %7877 = vmatmul.mubr.f32.vlgmr.msra.gmra.mrb[48].mxu0 %v17342_v59 }
 0x818   :  { %7883 = vmatprep.mubr.f32.mxu0 %v17343_v6  ;;  %12456 = vmatpush3.bf16.msra.mxu0 %v17344_v28 }
 0x819   :  { %12458 = vmatprep.subr.bf16.mxu0 %v17345_v23 }
 0x81b   :  { %7886 = vmatmul.mubr.f32.gmra.mrb[50].mxu0 %v17346_v27 }
 0x81c   :  { %7892 = vmatprep.mubr.f32.mxu0 %v17347_v19  ;;  %12460 = vmatpush3.bf16.msra.mxu0 %v17348_v42  ;;  %v17366_v42 = vld [vmem:[#allocation6_spill] sm:$0xff] }
 0x81d   :  { %12462 = vmatprep.subr.bf16.mxu0 %v17349_v13 }
 0x81f   :  { %7895 = vmatmul.mubr.f32.gmra.mrb[52].mxu0 %v17350_v7 }
 0x820   :  { %7901 = vmatprep.mubr.f32.mxu0 %v17351_v12  ;;  %12464 = vmatpush3.bf16.msra.mxu0 %v17352_v62  ;;  %v17361_v62 = vld [vmem:[#allocation3_spill] sm:$0xff] }
 0x821   :  { %12466 = vmatprep.subr.bf16.mxu0 %v17353_v48  ;;  %v17360_v48 = vld [vmem:[#allocation23_spill] sm:$0xff] }
 0x823   :  { %7904 = vmatmul.mubr.f32.gmra.mrb[54].mxu0 %v17354_v4  ;;  %v17397_v4 = vand.u32 4294901760, %v16009_v39 }
 0x824   :  { %7910 = vmatprep.mubr.f32.mxu0 %v15983_v17  ;;  %12468 = vmatpush3.bf16.msra.mxu0 %v17355_v1  ;;  %v17363_v1 = vld [vmem:[#allocation26_spill] sm:$0xff] }
 0x825   :  { %12470 = vmatprep.subr.bf16.mxu0 %v17356_v40  ;;  %v17362_v40 = vld [vmem:[#allocation4_spill] sm:$0xff] }
 0x827   :  { %7913 = vmatmul.mubr.f32.gmra.mrb[56].mxu0 %v17357_v24 }
 0x828   :  { %7919 = vmatprep.mubr.f32.mxu0 %v16009_v39  ;;  %12472 = vmatpush3.bf16.msra.mxu0 %v17358_v3  ;;  %v17364_v3 = vand.u32 4294901760, %v15429_v58  ;;  %v17371_v58 = vand.u32 4294901760, %v15459_v33  ;;  %v17378_v33 = vand.u32 4294901760, %v17346_v27  ;;  %v17385_v27 = vand.u32 4294901760, %v17351_v12 }
 0x829   :  { %12474 = vmatprep.subr.bf16.mxu0 %v17359_v49  ;;  %v17365_v49 = vand.u32 4294901760, %v15431_v36  ;;  %v17372_v36 = vand.u32 4294901760, %v17342_v59  ;;  %v17392_v12 = vand.u32 4294901760, %v15522_v29  ;;  %v17399_v29 = vand.u32 4294901760, %v15576_v31 }
 0x82a   :  { %v17404_v39 = vand.u32 4294901760, %v17332_v22  ;;  %v17406_v31 = vand.u32 4294901760, %v17335_v25  ;;  %v17411_v22 = vand.u32 4294901760, %v17337_v41  ;;  %v17417_v25 = vld [vmem:[#allocation33_spill] sm:$0xff]  ;;  %v17418_v41 = vld [vmem:[#allocation38_spill] sm:$0xff] }
 0x82b   :  { %7922 = vmatmul.mubr.f32.gmra.mrb[58].mxu0 %v16006_v20  ;;  %v12485_v13 = vpack.c.bf16 %v17365_v49, %v17364_v3  ;;  %v17373_v49 = vand.u32 4294901760, %v17343_v6  ;;  %v17374_v3 = vand.u32 4294901760, %v15462_v21  ;;  %v17381_v21 = vand.u32 4294901760, %v15499_v16 }
 0x82c   :  { %7928 = vmatprep.mubr.f32.mxu0 %v16034_v14  ;;  %12476 = vmatpush3.bf16.msra.mxu0 %v17360_v48  ;;  %v17367_v48 = vand.u32 4294901760, %v17340_v11  ;;  %v17388_v16 = vand.u32 4294901760, %v15518_v32  ;;  %v17391_v11 = vand.u32 4294901760, %v15983_v17  ;;  %v17395_v32 = vand.u32 4294901760, %v15559_v43 }
 0x82d   :  { %12478 = vmatprep.subr.bf16.mxu0 %v17361_v62  ;;  %v17368_v62 = vand.u32 4294901760, %v15444_v46  ;;  %v17375_v46 = vand.u32 4294901760, %v15476_v30  ;;  %v17382_v30 = vand.u32 4294901760, %v15501_v57  ;;  %v17389_v57 = vand.u32 4294901760, %v15520_v15 }
 0x82e   :  { %v17396_v15 = vand.u32 4294901760, %v17357_v24  ;;  %v17398_v17 = vand.u32 4294901760, %v15563_v0  ;;  %v17402_v43 = vand.u32 4294901760, %v16006_v20  ;;  %v17403_v24 = vand.u32 4294901760, %v16034_v14 }
 0x82f   :  { %7931 = vmatmul.mubr.f32.gmra.mrb[60].mxu0 %v16031_v18  ;;  %v12487_v37 = vpack.c.bf16 %v17369_v54, %v17368_v62  ;;  %v12501_v59 = vpack.c.bf16 %v17389_v57, %v17388_v16  ;;  %v17405_v0 = vand.u32 4294901760, %v15594_v55  ;;  %v17409_v20 = vand.u32 4294901760, %v16059_v26 }
 0x830   :  { %7937 = vmatprep.mubr.f32.mxu0 %v16059_v26  ;;  %12480 = vmatpush3.bf16.msra.mxu0 %v17362_v40  ;;  %v17410_v14 = vand.u32 4294901760, %v17338_v9  ;;  %v17412_v55 = vand.u32 4294901760, %v16056_v52  ;;  %v17414_v26 = vld [vmem:[#allocation34_spill] sm:$0xff]  ;;  %v17419_v9 = vld [vmem:[#allocation17_spill] sm:$0xff] }
 0x831   :  { %12482 = vmatprep.subr.bf16.mxu0 %v17363_v1  ;;  %v17370_v1 = vand.u32 4294901760, %v15457_v44  ;;  %v17377_v44 = vand.u32 4294901760, %v15489_v47  ;;  %v17384_v47 = vand.u32 4294901760, %v17350_v7 }
 0x833   :  { %7940 = vmatmul.mubr.f32.gmra.mrb[62].mxu0 %v16056_v52  ;;  %v12489_v40 = vpack.c.bf16 %v17371_v58, %v17370_v1  ;;  %v12493_v54 = vpack.c.bf16 %v17377_v44, %v17376_v51  ;;  %v17379_v1 = vand.u32 4294901760, %v17347_v19  ;;  %v12507_v58 = vpack.c.bf16 %v17399_v29, %v17398_v17  ;;  %v17416_v52 = vld [vmem:[#allocation18_spill] sm:$0xff]  ;;  %v17424_v51 = vld [vmem:[#allocation24_spill] sm:$0xff]  ;;  %v17425_v44 = vld [vmem:[#allocation41_spill] sm:$0xff] }
 0x834   :  { %12484 = vmatpush3.bf16.msra.mxu0 %v17366_v42  ;;  %8044 = vmatprep.mubr.f32.mxu0 %v17367_v48  ;;  %v12491_v48 = vpack.c.bf16 %v17375_v46, %v17374_v3  ;;  %v12515_v46 = vpack.c.bf16 %v17411_v22, %v17410_v14 }
 0x835   :  { %12486 = vmatprep.subr.bf16.mxu0 %v12485_v13  ;;  %v17386_v13 = vand.u32 4294901760, %v15514_v53  ;;  %v17393_v53 = vand.u32 4294901760, %v15527_v38  ;;  %v17400_v38 = vand.u32 4294901760, %v15585_v61  ;;  %v17407_v61 = vand.u32 4294901760, %v17334_v34  ;;  %v17415_v34 = vld [vmem:[#allocation8_spill] sm:$0xff] }
 0x837   :  { %8048 = vmatmul.mubr.f32.vlgmr.msra.gmra.mrb[64].mxu0 %v17372_v36  ;;  %v12503_v19 = vpack.c.bf16 %v17393_v53, %v17392_v12  ;;  %v12513_v3 = vpack.c.bf16 %v17407_v61, %v17406_v31  ;;  %v8512_v31 = vld [vmem:[%s16896_s8 + $0x20] sm:$0xff]  ;;  %v8513_v61 = vld [vmem:[%s16896_s8 + $0x28] sm:$0xff] }
 0x838   :  { %8055 = vmatprep.mubr.f32.mxu0 %v17373_v49  ;;  %12488 = vmatpush3.bf16.msra.mxu0 %v12487_v37  ;;  %v17380_v37 = vand.u32 4294901760, %v15491_v45  ;;  %v17387_v45 = vand.u32 4294901760, %v15516_v8  ;;  %v17394_v8 = vand.u32 4294901760, %v15557_v56  ;;  %v17401_v56 = vand.u32 4294901760, %v15587_v35 }
 0x839   :  { %12490 = vmatprep.subr.bf16.mxu0 %v12489_v40  ;;  %v12497_v40 = vpack.c.bf16 %v17383_v2, %v17382_v30  ;;  %v12511_v49 = vpack.c.bf16 %v17405_v0, %v17404_v39  ;;  %v17408_v35 = vand.u32 4294901760, %v16031_v18  ;;  %v17413_v18 = vld [vmem:[#allocation15_spill] sm:$0xff]  ;;  %v17433_v2 = vld [vmem:[#allocation28_spill] sm:$0xff] }
 0x83a   :  { %v12495_v62 = vpack.c.bf16 %v17381_v21, %v17380_v37  ;;  %v12499_v6 = vpack.c.bf16 %v17387_v45, %v17386_v13  ;;  %v12505_v7 = vpack.c.bf16 %v17395_v32, %v17394_v8  ;;  %v12509_v36 = vpack.c.bf16 %v17401_v56, %v17400_v38  ;;  %v17429_v37 = vld [vmem:[#allocation30_spill] sm:$0xff]  ;;  %v17430_v21 = vld [vmem:[#allocation31_spill] sm:$0xff] }
 0x83b   :  { %8059 = vmatmul.mubr.f32.gmra.mrb[66].mxu0 %v17378_v33  ;;  %v17427_v33 = vld [vmem:[#allocation22_spill] sm:$0xff]  ;;  %v17432_v30 = vld [vmem:[#allocation3_spill] sm:$0xff] }
 0x83c   :  { %8066 = vmatprep.mubr.f32.mxu0 %v17379_v1  ;;  %12492 = vmatpush3.bf16.msra.mxu0 %v12491_v48  ;;  %v17421_v48 = vld [vmem:[#allocation37_spill] sm:$0xff]  ;;  %v17428_v1 = vld [vmem:[#allocation2_spill] sm:$0xff]  ;;  %v17437_v13 = vld [vmem:[#allocation43_spill] sm:$0xff] }
 0x83d   :  { %12494 = vmatprep.subr.bf16.mxu0 %v12493_v54  ;;  %v17426_v54 = vld [vmem:[#allocation12_spill] sm:$0xff] }
 0x83f   :  { %8070 = vmatmul.mubr.f32.gmra.mrb[68].mxu0 %v17384_v47  ;;  %v17435_v47 = vld [vmem:[#allocation4_spill] sm:$0xff] }
 0x840   :  { %8077 = vmatprep.mubr.f32.mxu0 %v17385_v27  ;;  %12496 = vmatpush3.bf16.msra.mxu0 %v12495_v62  ;;  %v17431_v62 = vld [vmem:[#allocation23_spill] sm:$0xff]  ;;  %v17436_v27 = vld [vmem:[#allocation26_spill] sm:$0xff] }
 0x841   :  { %12498 = vmatprep.subr.bf16.mxu0 %v12497_v40  ;;  %v17434_v40 = vld [vmem:[#allocation44_spill] sm:$0xff] }
 0x843   :  { %8081 = vmatmul.mubr.f32.gmra.mrb[70].mxu0 %v17390_v10  ;;  %v8509_v10 = vld [vmem:[%s16896_s8 + $0x8] sm:$0xff] }
 0x844   :  { %8088 = vmatprep.mubr.f32.mxu0 %v17391_v11  ;;  %12500 = vmatpush3.bf16.msra.mxu0 %v12499_v6  ;;  %v8561_v53 = vand.u32 4294901760, %v8509_v10 }
 0x845   :  { %12502 = vmatprep.subr.bf16.mxu0 %v12501_v59  ;;  %v8508_v59 = vld [vmem:[%s16896_s8] sm:$0xff] }
 0x846   :  { %v8558_v12 = vand.u32 4294901760, %v8508_v59  ;;  %v16330_v32 = vsub.f32 %v8509_v10, %v8561_v53 }
 0x847   :  { %8092 = vmatmul.mubr.f32.gmra.mrb[72].mxu0 %v17396_v15  ;;  %v8510_v15 = vld [vmem:[%s16896_s8 + $0x10] sm:$0xff] }
 0x848   :  { %8099 = vmatprep.mubr.f32.mxu0 %v17397_v4  ;;  %12504 = vmatpush3.bf16.msra.mxu0 %v12503_v19  ;;  %v16328_v8 = vsub.f32 %v8508_v59, %v8558_v12  ;;  %v8511_v4 = vld [vmem:[%s16896_s8 + $0x18] sm:$0xff]  ;;  %v8564_v38 = vand.u32 4294901760, %v8510_v15 }
 0x849   :  { %12506 = vmatprep.subr.bf16.mxu0 %v12505_v7  ;;  %v8567_v56 = vand.u32 4294901760, %v8511_v4 }
 0x84a   :  { %v8718_v29 = vand.u32 4294901760, %v16328_v8  ;;  %v16348_v39 = vsub.f32 %v8510_v15, %v8564_v38 }
 0x84b   :  { %8103 = vmatmul.mubr.f32.gmra.mrb[74].mxu0 %v17402_v43 }
 0x84c   :  { %8110 = vmatprep.mubr.f32.mxu0 %v17403_v24  ;;  %12508 = vmatpush3.bf16.msra.mxu0 %v12507_v58  ;;  %v8725_v58 = vand.u32 4294901760, %v16330_v32  ;;  %v8719_v43 = vsub.f32 %v16328_v8, %v8718_v29  ;;  %v8732_v14 = vand.u32 4294901760, %v16348_v39 }
 0x84d   :  { %12510 = vmatprep.subr.bf16.mxu0 %v12509_v36 }
 0x84e   :  { %v8726_v24 = vsub.f32 %v16330_v32, %v8725_v58 }
 0x84f   :  { %8114 = vmatmul.mubr.f32.gmra.mrb[76].mxu0 %v17408_v35  ;;  %v8720_v35 = vand.u32 4294901760, %v8719_v43  ;;  %v16437_v43 = vld [vmem:[%s16896_s8 + $0x50] sm:$0xff] }
 0x850   :  { %8121 = vmatprep.mubr.f32.mxu0 %v17409_v20  ;;  %12512 = vmatpush3.bf16.msra.mxu0 %v12511_v49  ;;  %v16350_v49 = vsub.f32 %v8511_v4, %v8567_v56  ;;  %v8727_v20 = vand.u32 4294901760, %v8726_v24  ;;  %v16442_v24 = vld [vmem:[%s16896_s8 + $0x58] sm:$0xff] }
 0x851   :  { %12514 = vmatprep.subr.bf16.mxu0 %v12513_v3 }
 0x852   :  { %v8739_v22 = vand.u32 4294901760, %v16350_v49 }
 0x853   :  { %8125 = vmatmul.mubr.f32.gmra.mrb[78].mxu0 %v17412_v55  ;;  %v8573_v55 = vand.u32 4294901760, %v8513_v61 }
 0x854   :  { %12516 = vmatpush3.bf16.msra.mxu0 %v12515_v46  ;;  %8291 = vmatprep.mubr.f32.mxu0 %v15877_v5  ;;  %v8570_v46 = vand.u32 4294901760, %v8512_v31 }
 0x855   :  { %12518 = vmatprep.subr.bf16.mxu0 %v17341_v50  ;;  %v17420_v50 = vld [vmem:[#allocation21_spill] sm:$0xff] }
 0x857   :  { %8293 = vmatmul.mubr.f32.vlgmr.msra.gmra.mrb[80].mxu0 %v15875_v63 }
 0x858   :  { %8298 = vmatprep.mubr.f32.mxu0 %v15901_v60  ;;  %12520 = vmatpush3.bf16.msra.mxu0 %v17344_v28  ;;  %v17422_v28 = vld [vmem:[#allocation42_spill] sm:$0xff] }
 0x859   :  { %12522 = vmatprep.subr.bf16.mxu0 %v17345_v23  ;;  %v17423_v23 = vld [vmem:[#allocation20_spill] sm:$0xff] }
 0x85b   :  { %8300 = vmatmul.mubr.f32.gmra.mrb[82].mxu0 %v17413_v18 }
 0x85c   :  { %8305 = vmatprep.mubr.f32.mxu0 %v17414_v26  ;;  %12524 = vmatpush3.bf16.msra.mxu0 %v17415_v34  ;;  %v12573_v34 = vpack.c.bf16 %v8727_v20, %v8720_v35  ;;  %v8588_v35 = vand.u32 4294901760, %v16437_v43  ;;  %v16451_v20 = vld [vmem:[%s16897_s7] ss:$0 sm:$0xff] }
 0x85d   :  { %12526 = vmatprep.subr.bf16.mxu0 %v17416_v52  ;;  %v8733_v52 = vsub.f32 %v16348_v39, %v8732_v14 }
 0x85f   :  { %8307 = vmatmul.mubr.f32.gmra.mrb[84].mxu0 %v17417_v25 }
 0x860   :  { %8312 = vmatprep.mubr.f32.mxu0 %v17418_v41  ;;  %12528 = vmatpush3.bf16.msra.mxu0 %v17419_v9  ;;  %v16370_v9 = vsub.f32 %v8512_v31, %v8570_v46 }
 0x861   :  { %12530 = vmatprep.subr.bf16.mxu0 %v17420_v50  ;;  %v16372_v50 = vsub.f32 %v8513_v61, %v8573_v55 }
 0x863   :  { %8314 = vmatmul.mubr.f32.gmra.mrb[86].mxu0 %v17421_v48 }
 0x864   :  { %8319 = vmatprep.mubr.f32.mxu0 %v17422_v28  ;;  %12532 = vmatpush3.bf16.msra.mxu0 %v17423_v23 }
 0x865   :  { %12534 = vmatprep.subr.bf16.mxu0 %v17424_v51  ;;  %v8734_v51 = vand.u32 4294901760, %v8733_v52 }
 0x867   :  { %8321 = vmatmul.mubr.f32.gmra.mrb[88].mxu0 %v17425_v44 }
 0x868   :  { %8326 = vmatprep.mubr.f32.mxu0 %v17426_v54  ;;  %12536 = vmatpush3.bf16.msra.mxu0 %v17427_v33 }
 0x869   :  { %12538 = vmatprep.subr.bf16.mxu0 %v17428_v1  ;;  %v8746_v1 = vand.u32 4294901760, %v16370_v9 }
 0x86b   :  { %8328 = vmatmul.mubr.f32.gmra.mrb[90].mxu0 %v17429_v37 }
 0x86c   :  { %8333 = vmatprep.mubr.f32.mxu0 %v17430_v21  ;;  %12540 = vmatpush3.bf16.msra.mxu0 %v17431_v62  ;;  %v16386_v62 = vpack.c.bf16 %v8567_v56, %v8564_v38 }
 0x86d   :  { %12542 = vmatprep.subr.bf16.mxu0 %v17432_v30 }
 0x86f   :  { %8335 = vmatmul.mubr.f32.gmra.mrb[92].mxu0 %v17433_v2 }
 0x870   :  { %8340 = vmatprep.mubr.f32.mxu0 %v17434_v40  ;;  %12544 = vmatpush3.bf16.msra.mxu0 %v17435_v47 }
 0x871   :  { %12546 = vmatprep.subr.bf16.mxu0 %v17436_v27  ;;  %v8747_v27 = vsub.f32 %v16370_v9, %v8746_v1 }
 0x873   :  { %8342 = vmatmul.mubr.f32.gmra.mrb[94].mxu0 %v17437_v13  ;;  %v8748_v59 = vand.u32 4294901760, %v8747_v27 }
 0x874   :  { %12548 = vmatpush3.bf16.msra.mxu0 %v17366_v42  ;;  %8444 = vmatprep.mubr.f32.mxu0 %v15877_v5 }
 0x875   :  { %12574 = vmatprep.subr.bf16.mxu0 %v12573_v34 }
 0x877   :  { %8446 = vmatmul.mubr.f32.vlgmr.msra.gmra.mrb[96].mxu0 %v15875_v63 }
 0x878   :  { %8451 = vmatprep.mubr.f32.mxu0 %v15901_v60  ;;  %12576 = vmatpush3.bf16.msra.mxu0 %v12573_v34 }
 0x87b   :  { %8453 = vmatmul.mubr.f32.gmra.mrb[98].mxu0 %v17413_v18 }
 0x87c   :  { %8458 = vmatprep.mubr.f32.mxu0 %v17414_v26  ;;  %v16362_v26 = vpack.c.bf16 %v8561_v53, %v8558_v12 }
 0x87e   :  { %12550 = vmatprep.subr.bf16.mxu1 %v16362_v26 }
 0x87f   :  { %8460 = vmatmul.mubr.f32.gmra.mrb[100].mxu0 %v17417_v25  ;;  %12552 = vmatpush3.bf16.msra.mxu1 %v16362_v26 }
 0x880   :  { %8465 = vmatprep.mubr.f32.mxu0 %v17418_v41  ;;  %v8740_v41 = vsub.f32 %v16350_v49, %v8739_v22  ;;  %12554 = vmatprep.subr.bf16.mxu1 %v16386_v62 }
 0x882   :  { %v8741_v33 = vand.u32 4294901760, %v8740_v41  ;;  %v16462_v41 = vsub.f32 %v16437_v43, %v8588_v35 }
 0x883   :  { %8467 = vmatmul.mubr.f32.gmra.mrb[102].mxu0 %v17421_v48  ;;  %v8514_v48 = vld [vmem:[%s16896_s8 + $0x30] sm:$0xff]  ;;  %12556 = vmatpush3.bf16.msra.mxu1 %v16386_v62 }
 0x884   :  { %8472 = vmatprep.mubr.f32.mxu0 %v17422_v28  ;;  %v8515_v28 = vld [vmem:[%s16896_s8 + $0x38] sm:$0xff]  ;;  %v12577_v47 = vpack.c.bf16 %v8741_v33, %v8734_v51 }
 0x886   :  { %12578 = vmatprep.subr.bf16.mxu0 %v12577_v47 }
 0x887   :  { %8474 = vmatmul.mubr.f32.gmra.mrb[104].mxu0 %v17425_v44  ;;  %v8576_v44 = vand.u32 4294901760, %v8514_v48 }
 0x888   :  { %8479 = vmatprep.mubr.f32.mxu0 %v17426_v54  ;;  %v8579_v54 = vand.u32 4294901760, %v8515_v28  ;;  %12580 = vmatpush3.bf16.msra.mxu0 %v12577_v47 }
 0x889   :  { %v16388_v30 = vsub.f32 %v8514_v48, %v8576_v44 }
 0x88a   :  { %v16457_v52 = vpack.c.bf16 %v8579_v54, %v8576_v44 }
 0x88b   :  { %8481 = vmatmul.mubr.f32.gmra.mrb[106].mxu0 %v17429_v37  ;;  %v8753_v37 = vand.u32 4294901760, %v16372_v50 }
 0x88c   :  { %8486 = vmatprep.mubr.f32.mxu0 %v17430_v21 }
 0x88f   :  { %8488 = vmatmul.mubr.f32.gmra.mrb[108].mxu0 %v17433_v2  ;;  %v16390_v2 = vsub.f32 %v8515_v28, %v8579_v54 }
 0x890   :  { %8493 = vmatprep.mubr.f32.mxu0 %v17434_v40 }
 0x893   :  { %8495 = vmatmul.mubr.f32.gmra.mrb[110].mxu0 %v17437_v13  ;;  %v8754_v13 = vsub.f32 %v16372_v50, %v8753_v37 }
 0x895   :  { %v8755_v10 = vand.u32 4294901760, %v8754_v13 }
 0x897   :  { %v12581_v38 = vpack.c.bf16 %v8755_v10, %v8748_v59 }
 0x899   :  { %12582 = vmatprep.subr.bf16.mxu0 %v12581_v38 }
 0x89a   :  { %12584 = vmatpush3.bf16.msra.mxu0 %v12581_v38 }
 0x89d   :  { %v10583_v60 = vpop.f32.mrb[16].mxu0 }
 0x89e   :  { %v10584_v63 = vpop.f32.mrb[17].mxu0 }
 0x89f   :  { %v16316_v5 = vadd.f32 %v10584_v63, %v10583_v60  ;;  %v16401_v60 = vld [vmem:[%s16896_s8 + $0x40] sm:$0xff]  ;;  %v16406_v63 = vld [vmem:[%s16896_s8 + $0x48] sm:$0xff] }
 0x8a0   :  { %v8585_v12 = vand.u32 4294901760, %v16406_v63 }
 0x8a1   :  { %v7355_v44 = vadd.f32 %v16316_v5, %v16451_v20 }
 0x8a5   :  { %v10586_v42 = vpop.f32.mrb[18].mxu0 }
 0x8a6   :  { %v10587_v45 = vpop.f32.mrb[19].mxu0 }
 0x8a7   :  { %v16318_v6 = vadd.f32 %v10587_v45, %v10586_v42  ;;  %v8760_v45 = vand.u32 4294901760, %v16388_v30 }
 0x8b0   :  { %v10589_v16 = vpop.f32.mrb[20].mxu0 }
 0x8b1   :  { %v10590_v57 = vpop.f32.mrb[21].mxu0 }
 0x8b2   :  { %v16326_v11 = vadd.f32 %v10590_v57, %v10589_v16  ;;  %v17130_v16 = vand.u32 4294901760, %v16390_v2  ;;  %v8582_v57 = vand.u32 4294901760, %v16401_v60 }
 0x8b4   :  { %v8768_v15 = vsub.f32 %v16390_v2, %v17130_v16  ;;  %v16427_v56 = vsub.f32 %v16401_v60, %v8582_v57  ;;  %v16516_v60 = vpack.c.bf16 %v16330_v32, %v16328_v8  ;;  %v12653_v8 = vpack.c.bf16 %v8753_v37, %v8746_v1 }
 0x8b5   :  { %v17438_v32 = vand.u32 4294901760, %v16390_v2 }
 0x8b6   :  { %v10592_v19 = vpop.f32.mrb[22].mxu0  ;;  %v8769_v61 = vand.u32 4294901760, %v8768_v15 }
 0x8b7   :  { %v10593_v7 = vpop.f32.mrb[23].mxu0 }
 0x8b8   :  { %v16338_v17 = vadd.f32 %v10593_v7, %v10592_v19  ;;  %v16416_v19 = vpack.c.bf16 %v8573_v55, %v8570_v46  ;;  %v8761_v7 = vsub.f32 %v16388_v30, %v8760_v45  ;;  %v17129_v46 = vand.u32 4294901760, %v16427_v56 }
 0x8ba   :  { %v10595_v36 = vpop.f32.mrb[24].mxu0  ;;  %v8762_v31 = vand.u32 4294901760, %v8761_v7  ;;  %12558 = vmatprep.subr.bf16.mxu1 %v16416_v19  ;;  %v8775_v28 = vsub.f32 %v16427_v56, %v17129_v46 }
 0x8bb   :  { %v10596_v0 = vpop.f32.mrb[25].mxu0  ;;  %12560 = vmatpush3.bf16.msra.mxu1 %v16416_v19 }
 0x8bc   :  { %v16358_v3 = vadd.f32 %v10596_v0, %v10595_v36  ;;  %v16432_v36 = vsub.f32 %v16406_v63, %v8585_v12  ;;  %12562 = vmatprep.subr.bf16.mxu1 %v16457_v52  ;;  %v8776_v47 = vand.u32 4294901760, %v8775_v28 }
 0x8be   :  { %v10598_v18 = vpop.f32.mrb[26].mxu0  ;;  %v17128_v55 = vand.u32 4294901760, %v16432_v36 }
 0x8bf   :  { %v10599_v25 = vpop.f32.mrb[27].mxu0  ;;  %12564 = vmatpush3.bf16.msra.mxu1 %v16457_v52 }
 0x8c0   :  { %v16380_v23 = vadd.f32 %v10599_v25, %v10598_v18  ;;  %v8591_v18 = vand.u32 4294901760, %v16442_v24  ;;  %v12585_v25 = vpack.c.bf16 %v8769_v61, %v8762_v31  ;;  %v8782_v51 = vsub.f32 %v16432_v36, %v17128_v55 }
 0x8c2   :  { %v10601_v21 = vpop.f32.mrb[28].mxu0  ;;  %v16471_v33 = vsub.f32 %v16442_v24, %v8591_v18  ;;  %12586 = vmatprep.subr.bf16.mxu0 %v12585_v25  ;;  %v8783_v27 = vand.u32 4294901760, %v8782_v51  ;;  %v7370_v24 = vadd.f32 %v16318_v6, %v16451_v20 }
 0x8c3   :  { %v10602_v40 = vpop.f32.mrb[29].mxu0  ;;  %12588 = vmatpush3.bf16.msra.mxu0 %v12585_v25 }
 0x8c4   :  { %v16408_v42 = vadd.f32 %v10602_v40, %v10601_v21  ;;  %v17127_v21 = vand.u32 4294901760, %v16462_v41  ;;  %v8520_v40 = vld [vmem:[%s16896_s8 + $0x60] sm:$0xf]  ;;  %v17126_v13 = vand.u32 4294901760, %v16471_v33 }
 0x8c5   :  { %v8555_v59 = vsel %vm8553_vm15, %v8520_v40, 0  ;;  %v7385_v40 = vadd.f32 %v16326_v11, %v16451_v20  ;;  %v7400_v11 = vadd.f32 %v16338_v17, %v16451_v20  ;;  %v7415_v17 = vadd.f32 %v16358_v3, %v16451_v20 }
 0x8c6   :  { %v10604_v53 = vpop.f32.mrb[30].mxu0  ;;  %v16487_v7 = vand.u32 4294901760, %v8555_v59  ;;  %v8796_v38 = vsub.f32 %v16471_v33, %v17126_v13  ;;  %v16537_v3 = vpack.c.bf16 %v16372_v50, %v16370_v9  ;;  %v9468_v50 = vld [vmem:[%s16898_s10] sm:$0xff] }
 0x8c7   :  { %v10605_v4 = vpop.f32.mrb[31].mxu0  ;;  %v9499_v37 = vand.u32 4294901760, %v9468_v50 }
 0x8c8   :  { %v16444_v0 = vadd.f32 %v10605_v4, %v10604_v53  ;;  %v8789_v53 = vsub.f32 %v16462_v41, %v17127_v21  ;;  %v12589_v4 = vpack.c.bf16 %v8783_v27, %v8776_v47  ;;  %v8797_v25 = vand.u32 4294901760, %v8796_v38 }
 0x8c9   :  { %v16508_v27 = vpack.c.bf16 %v8585_v12, %v8582_v57  ;;  %v16520_v12 = vpack.c.bf16 %v8591_v18, %v8588_v35  ;;  %v7430_v18 = vadd.f32 %v16380_v23, %v16451_v20 }
 0x8ca   :  { %v10639_v34 = vpop.f32.mrb[32].mxu0  ;;  %v8790_v61 = vand.u32 4294901760, %v8789_v53  ;;  %12590 = vmatprep.subr.bf16.mxu0 %v12589_v4 }
 0x8cb   :  { %v10640_v48 = vpop.f32.mrb[33].mxu0  ;;  %12592 = vmatpush3.bf16.msra.mxu0 %v12589_v4  ;;  %12566 = vmatprep.subr.bf16.mxu1 %v16508_v27 }
 0x8cc   :  { %v10641_v54 = vadd.f32 %v10640_v48, %v10639_v34  ;;  %v16495_v34 = vsub.f32 %v8555_v59, %v16487_v7  ;;  %12568 = vmatpush3.bf16.msra.mxu1 %v16508_v27 }
 0x8cd   :  { %12570 = vmatprep.subr.bf16.mxu1 %v16520_v12 }
 0x8ce   :  { %v16482_v10 = vadd.f32 %v10641_v54, %v7355_v44  ;;  %v10642_v5 = vpop.f32.mrb[34].mxu0  ;;  %v16498_v51 = vand.u32 4294901760, %v16495_v34  ;;  %v12593_v54 = vpack.c.bf16 %v8797_v25, %v8790_v61 }
 0x8cf   :  { %v10643_v15 = vpop.f32.mrb[35].mxu0 }
 0x8d0   :  { %v10644_v31 = vadd.f32 %v10643_v15, %v10642_v5  ;;  %v8803_v6 = vsub.f32 %v16495_v34, %v16498_v51  ;;  %12594 = vmatprep.subr.bf16.mxu0 %v12593_v54  ;;  %12572 = vmatpush3.bf16.msra.mxu1 %v16520_v12 }
 0x8d1   :  { %12596 = vmatpush3.bf16.msra.mxu0 %v12593_v54  ;;  %11577 = vmatprep.subr.mxu1 %v16487_v7 }
 0x8d2   :  { %v7699_v48 = vadd.f32 %v10644_v31, %v7370_v24  ;;  %v10645_v28 = vpop.f32.mrb[36].mxu0  ;;  %v8804_v53 = vand.u32 4294901760, %v8803_v6  ;;  %v16529_v31 = vpack.c.bf16 %v16350_v49, %v16348_v39  ;;  %v16543_v6 = vpack.c.bf16 %v16390_v2, %v16388_v30 }
 0x8d3   :  { %v10646_v44 = vpop.f32.mrb[37].mxu0  ;;  %v17440_v39 = vand.u32 4294901760, %v16432_v36  ;;  %v9647_v2 = vsub.f32 %v9468_v50, %v9499_v37 }
 0x8d4   :  { %v10647_v47 = vadd.f32 %v10646_v44, %v10645_v28  ;;  %11615 = vmatprep.subr.mxu0 %v8804_v53  ;;  %11578 = vmatpush3.msra.mxu1 %v16487_v7 }
 0x8d5   :  { %11616 = vmatpush3.msra.mxu0 %v8804_v53 }
 0x8d6   :  { %v7706_v59 = vadd.f32 %v10647_v47, %v7385_v40  ;;  %v10648_v5 = vpop.f32.mrb[38].mxu0  ;;  %12598 = vmatprep.subr.bf16.mxu0 %v16516_v60  ;;  %v7445_v40 = vadd.f32 %v16408_v42, %v16451_v20 }
 0x8d7   :  { %v10649_v15 = vpop.f32.mrb[39].mxu0 }
 0x8d8   :  { %v10650_v4 = vadd.f32 %v10649_v15, %v10648_v5  ;;  %v7460_v15 = vadd.f32 %v16444_v0, %v16451_v20 }
 0x8da   :  { %v7713_v63 = vadd.f32 %v10650_v4, %v7400_v11  ;;  %v10651_v57 = vpop.f32.mrb[40].mxu0  ;;  %v16549_v4 = vpack.c.bf16 %v16432_v36, %v16427_v56 }
 0x8db   :  { %v10652_v38 = vpop.f32.mrb[41].mxu0 }
 0x8dc   :  { %v10653_v24 = vadd.f32 %v10652_v38, %v10651_v57 }
 0x8de   :  { %v7720_v61 = vadd.f32 %v10653_v24, %v7415_v17  ;;  %v10654_v43 = vpop.f32.mrb[42].mxu0  ;;  %v16553_v24 = vpack.c.bf16 %v16471_v33, %v16462_v41 }
 0x8df   :  { %v10655_v35 = vpop.f32.mrb[43].mxu0 }
 0x8e0   :  { %v10656_v25 = vadd.f32 %v10655_v35, %v10654_v43 }
 0x8e2   :  { %v7727_v28 = vadd.f32 %v10656_v25, %v7430_v18  ;;  %v10657_v44 = vpop.f32.mrb[44].mxu0 }
 0x8e3   :  { %v10658_v54 = vpop.f32.mrb[45].mxu0 }
 0x8e4   :  { %v10659_v47 = vadd.f32 %v10658_v54, %v10657_v44 }
 0x8e6   :  { %v7734_v5 = vadd.f32 %v10659_v47, %v7445_v40  ;;  %v10660_v23 = vpop.f32.mrb[46].mxu0 }
 0x8e7   :  { %v10661_v53 = vpop.f32.mrb[47].mxu0 }
 0x8e8   :  { %v10662_v11 = vadd.f32 %v10661_v53, %v10660_v23 }
 0x8ea   :  { %v7741_v57 = vadd.f32 %v10662_v11, %v7460_v15  ;;  %v10695_v38 = vpop.f32.mrb[48].mxu0 }
 0x8eb   :  { %v10696_v17 = vpop.f32.mrb[49].mxu0 }
 0x8ec   :  { %v10697_v42 = vadd.f32 %v10696_v17, %v10695_v38 }
 0x8ee   :  { %v7879_v43 = vadd.f32 %v10697_v42, %v16482_v10  ;;  %v10698_v35 = vpop.f32.mrb[50].mxu0 }
 0x8ef   :  { %v10699_v18 = vpop.f32.mrb[51].mxu0 }
 0x8f0   :  { %v10700_v25 = vadd.f32 %v10699_v18, %v10698_v35 }
 0x8f2   :  { %v7888_v44 = vadd.f32 %v10700_v25, %v7699_v48  ;;  %v10701_v0 = vpop.f32.mrb[52].mxu0 }
 0x8f3   :  { %v10702_v20 = vpop.f32.mrb[53].mxu0 }
 0x8f4   :  { %v10703_v54 = vadd.f32 %v10702_v20, %v10701_v0 }
 0x8f6   :  { %v7897_v40 = vadd.f32 %v10703_v54, %v7706_v59  ;;  %v10704_v47 = vpop.f32.mrb[54].mxu0 }
 0x8f7   :  { %v10705_v23 = vpop.f32.mrb[55].mxu0 }
 0x8f8   :  { %v10706_v53 = vadd.f32 %v10705_v23, %v10704_v47 }
 0x8fa   :  { %v7906_v15 = vadd.f32 %v10706_v53, %v7713_v63  ;;  %v10707_v11 = vpop.f32.mrb[56].mxu0 }
 0x8fb   :  { %v10708_v38 = vpop.f32.mrb[57].mxu0 }
 0x8fc   :  { %v10709_v17 = vadd.f32 %v10708_v38, %v10707_v11 }
 0x8fe   :  { %v7915_v13 = vadd.f32 %v10709_v17, %v7720_v61  ;;  %v10710_v21 = vpop.f32.mrb[58].mxu0 }
 0x8ff   :  { %v10711_v55 = vpop.f32.mrb[59].mxu0 }
 0x900   :  { %v10712_v46 = vadd.f32 %v10711_v55, %v10710_v21 }
 0x902   :  { %v7924_v10 = vadd.f32 %v10712_v46, %v7727_v28  ;;  %v10713_v42 = vpop.f32.mrb[60].mxu0 }
 0x903   :  { %v10714_v16 = vpop.f32.mrb[61].mxu0 }
 0x904   :  { %v10715_v35 = vadd.f32 %v10714_v16, %v10713_v42 }
 0x906   :  { %v7933_v48 = vadd.f32 %v10715_v35, %v7734_v5  ;;  %v10716_v18 = vpop.f32.mrb[62].mxu0 }
 0x907   :  { %v10717_v25 = vpop.f32.mrb[63].mxu0 }
 0x908   :  { %v10718_v0 = vadd.f32 %v10717_v25, %v10716_v18 }
 0x90a   :  { %v7942_v59 = vadd.f32 %v10718_v0, %v7741_v57  ;;  %v10751_v20 = vpop.f32.mrb[64].mxu0 }
 0x90b   :  { %v10752_v54 = vpop.f32.mrb[65].mxu0 }
 0x90c   :  { %v10753_v47 = vadd.f32 %v10752_v54, %v10751_v20 }
 0x90e   :  { %v8050_v63 = vadd.f32 %v10753_v47, %v7879_v43  ;;  %v10754_v23 = vpop.f32.mrb[66].mxu0 }
 0x90f   :  { %v10755_v53 = vpop.f32.mrb[67].mxu0 }
 0x910   :  { %v10756_v11 = vadd.f32 %v10755_v53, %v10754_v23 }
 0x912   :  { %v8061_v61 = vadd.f32 %v10756_v11, %v7888_v44  ;;  %v10757_v38 = vpop.f32.mrb[68].mxu0 }
 0x913   :  { %v10758_v17 = vpop.f32.mrb[69].mxu0 }
 0x914   :  { %v10759_v55 = vadd.f32 %v10758_v17, %v10757_v38 }
 0x916   :  { %v8072_v46 = vadd.f32 %v10759_v55, %v7897_v40  ;;  %v10760_v21 = vpop.f32.mrb[70].mxu0 }
 0x917   :  { %v10761_v28 = vpop.f32.mrb[71].mxu0 }
 0x918   :  { %v10762_v16 = vadd.f32 %v10761_v28, %v10760_v21 }
 0x91a   :  { %v8083_v5 = vadd.f32 %v10762_v16, %v7906_v15  ;;  %v10763_v42 = vpop.f32.mrb[72].mxu0 }
 0x91b   :  { %v10764_v35 = vpop.f32.mrb[73].mxu0 }
 0x91c   :  { %v10765_v18 = vadd.f32 %v10764_v35, %v10763_v42 }
 0x91e   :  { %v8094_v57 = vadd.f32 %v10765_v18, %v7915_v13  ;;  %v10766_v25 = vpop.f32.mrb[74].mxu0 }
 0x91f   :  { %v10767_v0 = vpop.f32.mrb[75].mxu0 }
 0x920   :  { %v10768_v20 = vadd.f32 %v10767_v0, %v10766_v25 }
 0x922   :  { %v8105_v43 = vadd.f32 %v10768_v20, %v7924_v10  ;;  %v10769_v54 = vpop.f32.mrb[76].mxu0 }
 0x923   :  { %v10770_v47 = vpop.f32.mrb[77].mxu0 }
 0x924   :  { %v10771_v23 = vadd.f32 %v10770_v47, %v10769_v54 }
 0x926   :  { %v8116_v44 = vadd.f32 %v10771_v23, %v7933_v48  ;;  %v10772_v53 = vpop.f32.mrb[78].mxu0 }
 0x927   :  { %v10773_v11 = vpop.f32.mrb[79].mxu0 }
 0x928   :  { %v10774_v38 = vadd.f32 %v10773_v11, %v10772_v53 }
 0x92a   :  { %v8127_v40 = vadd.f32 %v10774_v38, %v7942_v59  ;;  %v10807_v17 = vpop.f32.mrb[80].mxu0 }
 0x92b   :  { %v10808_v55 = vpop.f32.mrb[81].mxu0 }
 0x92c   :  { %v10809_v21 = vadd.f32 %v10808_v55, %v10807_v17 }
 0x92e   :  { %v8295_v15 = vadd.f32 %v10809_v21, %v8050_v63  ;;  %v10810_v28 = vpop.f32.mrb[82].mxu0 }
 0x92f   :  { %v10811_v16 = vpop.f32.mrb[83].mxu0 }
 0x930   :  { %v10812_v42 = vadd.f32 %v10811_v16, %v10810_v28 }
 0x932   :  { %v8302_v13 = vadd.f32 %v10812_v42, %v8061_v61  ;;  %v10813_v35 = vpop.f32.mrb[84].mxu0 }
 0x933   :  { %v10814_v18 = vpop.f32.mrb[85].mxu0 }
 0x934   :  { %v10815_v25 = vadd.f32 %v10814_v18, %v10813_v35 }
 0x936   :  { %v8309_v10 = vadd.f32 %v10815_v25, %v8072_v46  ;;  %v10816_v0 = vpop.f32.mrb[86].mxu0 }
 0x937   :  { %v10817_v20 = vpop.f32.mrb[87].mxu0 }
 0x938   :  { %v10818_v54 = vadd.f32 %v10817_v20, %v10816_v0 }
 0x93a   :  { %v8316_v48 = vadd.f32 %v10818_v54, %v8083_v5  ;;  %v10819_v47 = vpop.f32.mrb[88].mxu0 }
 0x93b   :  { %v10820_v23 = vpop.f32.mrb[89].mxu0 }
 0x93c   :  { %v10821_v53 = vadd.f32 %v10820_v23, %v10819_v47 }
 0x93e   :  { %v8323_v59 = vadd.f32 %v10821_v53, %v8094_v57  ;;  %v10822_v11 = vpop.f32.mrb[90].mxu0 }
 0x93f   :  { %v10823_v38 = vpop.f32.mrb[91].mxu0 }
 0x940   :  { %v10824_v17 = vadd.f32 %v10823_v38, %v10822_v11 }
 0x942   :  { %v16556_v63 = vadd.f32 %v10824_v17, %v8105_v43  ;;  %v10825_v55 = vpop.f32.mrb[92].mxu0 }
 0x943   :  { %v10826_v21 = vpop.f32.mrb[93].mxu0 }
 0x944   :  { %v10827_v61 = vadd.f32 %v10826_v21, %v10825_v55 }
 0x946   :  { %v16558_v28 = vadd.f32 %v10827_v61, %v8116_v44  ;;  %v10828_v16 = vpop.f32.mrb[94].mxu0 }
 0x947   :  { %v10829_v46 = vpop.f32.mrb[95].mxu0 }
 0x948   :  { %v10830_v42 = vadd.f32 %v10829_v46, %v10828_v16 }
 0x94a   :  { %v16560_v35 = vadd.f32 %v10830_v42, %v8127_v40  ;;  %v10863_v5 = vpop.f32.mrb[96].mxu0 }
 0x94b   :  { %v10864_v18 = vpop.f32.mrb[97].mxu0 }
 0x94c   :  { %v10865_v25 = vadd.f32 %v10864_v18, %v10863_v5 }
 0x94e   :  { %v8448_v0 = vadd.f32 %v10865_v25, %v8295_v15  ;;  %v10866_v57 = vpop.f32.mrb[98].mxu0 }
 0x94f   :  { %v10867_v20 = vpop.f32.mrb[99].mxu0 }
 0x950   :  { %v8500_v54 = vmax.f32 %v8448_v0, 0.0  ;;  %v10868_v43 = vadd.f32 %v10867_v20, %v10866_v57 }
 0x952   :  { %v8530_v47 = vsel %vm8528_vm0, %v8500_v54, 0  ;;  %v8455_v23 = vadd.f32 %v10868_v43, %v8302_v13  ;;  %v10869_v53 = vpop.f32.mrb[100].mxu0 }
 0x953   :  { %v16563_v44 = vand.u32 4294901760, %v8530_v47  ;;  %v10870_v11 = vpop.f32.mrb[101].mxu0 }
 0x954   :  { %v8501_v38 = vmax.f32 %v8455_v23, 0.0  ;;  %v10871_v17 = vadd.f32 %v10870_v11, %v10869_v53 }
 0x955   :  { %v16566_v40 = vsub.f32 %v8530_v47, %v16563_v44  ;;  %11617 = vmatprep.mubr.f32.mxu0 %v16563_v44 }
 0x956   :  { %v8533_v15 = vsel %vm8528_vm0, %v8501_v38, 0  ;;  %v8462_v55 = vadd.f32 %v10871_v17, %v8309_v10  ;;  %v10872_v21 = vpop.f32.mrb[102].mxu0 }
 0x957   :  { %v16570_v61 = vand.u32 4294901760, %v8533_v15  ;;  %v10873_v16 = vpop.f32.mrb[103].mxu0  ;;  %v8637_v13 = vand.u32 4294901760, %v16566_v40 }
 0x958   :  { %v8502_v46 = vmax.f32 %v8462_v55, 0.0  ;;  %v10874_v42 = vadd.f32 %v10873_v16, %v10872_v21 }
 0x959   :  { %v16574_v5 = vsub.f32 %v8533_v15, %v16570_v61  ;;  %11618 = vmatmul.mubr.f32.vlgmr.msra.gmra.mrb[112].mxu0 %v16570_v61  ;;  %v8638_v18 = vsub.f32 %v16566_v40, %v8637_v13 }
 0x95a   :  { %v8536_v25 = vsel %vm8528_vm0, %v8502_v46, 0  ;;  %v8469_v10 = vadd.f32 %v10874_v42, %v8316_v48  ;;  %v10875_v0 = vpop.f32.mrb[104].mxu0  ;;  %12600 = vmatpush3.bf16.msra.mxu0 %v16516_v60 }
 0x95b   :  { %v8647_v57 = vand.u32 4294901760, %v16574_v5  ;;  %v16583_v20 = vand.u32 4294901760, %v8536_v25  ;;  %v10876_v54 = vpop.f32.mrb[105].mxu0  ;;  %v8639_v43 = vand.u32 4294901760, %v8638_v18  ;;  %12602 = vmatprep.subr.bf16.mxu0 %v16529_v31 }
 0x95c   :  { %v8503_v47 = vmax.f32 %v8469_v10, 0.0  ;;  %v10877_v23 = vadd.f32 %v10876_v54, %v10875_v0 }
 0x95d   :  { %v8648_v53 = vsub.f32 %v16574_v5, %v8647_v57  ;;  %v16590_v11 = vsub.f32 %v8536_v25, %v16583_v20  ;;  %11579 = vmatprep.mubr.f32.mxu1 %v8639_v43  ;;  %11620 = vmatprep.mubr.f32.mxu0 %v16583_v20 }
 0x95e   :  { %v8539_v60 = vsel %vm8528_vm0, %v8503_v47, 0  ;;  %v8476_v48 = vadd.f32 %v10877_v23, %v8323_v59  ;;  %v10878_v38 = vpop.f32.mrb[106].mxu0  ;;  %12604 = vmatpush3.bf16.msra.mxu0 %v16529_v31 }
 0x95f   :  { %v8649_v17 = vand.u32 4294901760, %v8648_v53  ;;  %v16595_v15 = vand.u32 4294901760, %v8539_v60  ;;  %v10879_v55 = vpop.f32.mrb[107].mxu0  ;;  %12606 = vmatprep.subr.bf16.mxu0 %v16537_v3  ;;  %v8657_v21 = vand.u32 4294901760, %v16590_v11 }
 0x960   :  { %v8504_v16 = vmax.f32 %v8476_v48, 0.0  ;;  %v10880_v46 = vadd.f32 %v10879_v55, %v10878_v38 }
 0x961   :  { %v16600_v42 = vsub.f32 %v8539_v60, %v16595_v15  ;;  %11580 = vmatmul.mubr.f32.vlgmr.msra.gmra.mrb[24].mxu1 %v8649_v17  ;;  %11621 = vmatmul.mubr.f32.gmra.mrb[114].mxu0 %v16595_v15  ;;  %v8658_v31 = vsub.f32 %v16590_v11, %v8657_v21 }
 0x962   :  { %v8542_v59 = vsel %vm8528_vm0, %v8504_v16, 0  ;;  %v8483_v18 = vadd.f32 %v10880_v46, %v16556_v63  ;;  %v10881_v25 = vpop.f32.mrb[108].mxu0  ;;  %12608 = vmatpush3.bf16.msra.mxu0 %v16537_v3 }
 0x963   :  { %v16609_v10 = vand.u32 4294901760, %v8542_v59  ;;  %v10882_v0 = vpop.f32.mrb[109].mxu0  ;;  %v8659_v54 = vand.u32 4294901760, %v8658_v31  ;;  %12610 = vmatprep.subr.bf16.mxu0 %v16543_v6  ;;  %v8667_v43 = vand.u32 4294901760, %v16600_v42 }
 0x964   :  { %v8505_v47 = vmax.f32 %v8483_v18, 0.0  ;;  %v10883_v23 = vadd.f32 %v10882_v0, %v10881_v25 }
 0x965   :  { %v16614_v53 = vsub.f32 %v8542_v59, %v16609_v10  ;;  %11582 = vmatprep.mubr.f32.mxu1 %v8659_v54  ;;  %11623 = vmatprep.mubr.f32.mxu0 %v16609_v10  ;;  %v8668_v3 = vsub.f32 %v16600_v42, %v8667_v43 }
 0x966   :  { %v8545_v63 = vsel %vm8528_vm0, %v8505_v47, 0  ;;  %v8490_v60 = vadd.f32 %v10883_v23, %v16558_v28  ;;  %v10884_v48 = vpop.f32.mrb[110].mxu0  ;;  %12612 = vmatpush3.bf16.msra.mxu0 %v16543_v6 }
 0x967   :  { %v16623_v38 = vand.u32 4294901760, %v8545_v63  ;;  %v10885_v17 = vpop.f32.mrb[111].mxu0  ;;  %v8669_v55 = vand.u32 4294901760, %v8668_v3  ;;  %12614 = vmatprep.subr.bf16.mxu0 %v16549_v4  ;;  %v8677_v16 = vand.u32 4294901760, %v16614_v53 }
 0x968   :  { %v8506_v46 = vmax.f32 %v8490_v60, 0.0  ;;  %v10886_v31 = vadd.f32 %v10885_v17, %v10884_v48 }
 0x969   :  { %v16628_v59 = vsub.f32 %v8545_v63, %v16623_v38  ;;  %11583 = vmatmul.mubr.f32.gmra.mrb[26].mxu1 %v8669_v55  ;;  %11624 = vmatmul.mubr.f32.gmra.mrb[116].mxu0 %v16623_v38  ;;  %v8678_v6 = vsub.f32 %v16614_v53, %v8677_v16 }
 0x96a   :  { %v8548_v28 = vsel %vm8528_vm0, %v8506_v46, 0  ;;  %v8497_v18 = vadd.f32 %v10886_v31, %v16560_v35  ;;  %12616 = vmatpush3.bf16.msra.mxu0 %v16549_v4 }
 0x96b   :  { %v16637_v25 = vand.u32 4294901760, %v8548_v28  ;;  %v8679_v0 = vand.u32 4294901760, %v8678_v6  ;;  %12618 = vmatprep.subr.bf16.mxu0 %v16553_v24  ;;  %v8687_v54 = vand.u32 4294901760, %v16628_v59 }
 0x96c   :  { %v8507_v47 = vmax.f32 %v8497_v18, 0.0 }
 0x96d   :  { %v8696_v23 = vsub.f32 %v8548_v28, %v16637_v25  ;;  %11585 = vmatprep.mubr.f32.mxu1 %v8679_v0  ;;  %11626 = vmatprep.mubr.f32.mxu0 %v16637_v25  ;;  %v8688_v3 = vsub.f32 %v16628_v59, %v8687_v54 }
 0x96e   :  { %v8551_v63 = vsel %vm8528_vm0, %v8507_v47, 0  ;;  %12620 = vmatpush3.bf16.msra.mxu0 %v16553_v24 }
 0x96f   :  { %v16646_v4 = vand.u32 4294901760, %v8551_v63  ;;  %v8689_v35 = vand.u32 4294901760, %v8688_v3  ;;  %11653 = vmatprep.subr.mxu0 %v16495_v34  ;;  %v8697_v60 = vand.u32 4294901760, %v8696_v23 }
 0x971   :  { %v8706_v48 = vsub.f32 %v8551_v63, %v16646_v4  ;;  %11586 = vmatmul.mubr.f32.gmra.mrb[28].mxu1 %v8689_v35  ;;  %11627 = vmatmul.mubr.f32.gmra.mrb[118].mxu0 %v16646_v4  ;;  %v8698_v17 = vsub.f32 %v8696_v23, %v8697_v60 }
 0x972   :  { %11655 = vmatprep.mubr.f32.mxu0 %v16566_v40  ;;  %11654 = vmatpush3.msra.mxu0 %v16495_v34  ;;  %v12645_v34 = vpack.c.bf16 %v8725_v58, %v8718_v29  ;;  %v12649_v40 = vpack.c.bf16 %v8739_v22, %v8732_v14  ;;  %v12657_v29 = vpack.c.bf16 %v17438_v32, %v8760_v45  ;;  %v17439_v58 = vand.u32 4294901760, %v16427_v56 }
 0x973   :  { %12622 = vmatprep.subr.bf16.mxu0 %v16362_v26  ;;  %v8699_v55 = vand.u32 4294901760, %v8698_v17  ;;  %v8707_v24 = vand.u32 4294901760, %v8706_v48  ;;  %v17441_v14 = vand.u32 4294901760, %v16462_v41  ;;  %v17442_v22 = vand.u32 4294901760, %v16471_v33 }
 0x974   :  { %v12661_v49 = vpack.c.bf16 %v17440_v39, %v17439_v58 }
 0x975   :  { %11588 = vmatprep.mubr.f32.mxu1 %v8699_v55  ;;  %11656 = vmatmul.mubr.f32.vlgmr.msra.gmra.mrb[112].mxu0 %v16574_v5  ;;  %v8708_v46 = vsub.f32 %v8706_v48, %v8707_v24  ;;  %v12665_v9 = vpack.c.bf16 %v17442_v22, %v17441_v14 }
 0x976   :  { %12624 = vmatpush3.bf16.msra.mxu0 %v16362_v26  ;;  %11658 = vmatprep.mubr.f32.mxu0 %v16590_v11 }
 0x977   :  { %12626 = vmatprep.subr.bf16.mxu0 %v16386_v62  ;;  %v8709_v31 = vand.u32 4294901760, %v8708_v46 }
 0x979   :  { %11589 = vmatmul.mubr.f32.gmra.mrb[30].mxu1 %v8709_v31  ;;  %11659 = vmatmul.mubr.f32.gmra.mrb[114].mxu0 %v16600_v42 }
 0x97a   :  { %12628 = vmatpush3.bf16.msra.mxu0 %v16386_v62  ;;  %11661 = vmatprep.mubr.f32.mxu0 %v16614_v53 }
 0x97b   :  { %12630 = vmatprep.subr.bf16.mxu0 %v16416_v19 }
 0x97d   :  { %11662 = vmatmul.mubr.f32.gmra.mrb[116].mxu0 %v16628_v59 }
 0x97e   :  { %12632 = vmatpush3.bf16.msra.mxu0 %v16416_v19  ;;  %11664 = vmatprep.mubr.f32.mxu0 %v8696_v23 }
 0x97f   :  { %12634 = vmatprep.subr.bf16.mxu0 %v16457_v52 }
 0x981   :  { %11665 = vmatmul.mubr.f32.gmra.mrb[118].mxu0 %v8706_v48 }
 0x982   :  { %12636 = vmatpush3.bf16.msra.mxu0 %v16457_v52  ;;  %11693 = vmatprep.mubr.f32.mxu0 %v8637_v13 }
 0x983   :  { %12638 = vmatprep.subr.bf16.mxu0 %v16508_v27 }
 0x986   :  { %12640 = vmatpush3.bf16.msra.mxu0 %v16508_v27 }
 0x987   :  { %12642 = vmatprep.subr.bf16.mxu0 %v16520_v12 }
 0x98a   :  { %12644 = vmatpush3.bf16.msra.mxu0 %v16520_v12 }
 0x98b   :  { %11691 = vmatprep.subr.mxu0 %v16487_v7 }
 0x98e   :  { %11692 = vmatpush3.msra.mxu0 %v16487_v7 }
 0x98f   :  { %11694 = vmatmul.mubr.f32.vlgmr.msra.gmra.mrb[112].mxu0 %v8647_v57  ;;  %12646 = vmatprep.subr.bf16.mxu0 %v12645_v34 }
 0x990   :  { %11696 = vmatprep.mubr.f32.mxu0 %v8657_v21  ;;  %12648 = vmatpush3.bf16.msra.mxu0 %v12645_v34 }
 0x991   :  { %12650 = vmatprep.subr.bf16.mxu0 %v12649_v40 }
 0x993   :  { %11697 = vmatmul.mubr.f32.gmra.mrb[114].mxu0 %v8667_v43 }
 0x994   :  { %11699 = vmatprep.mubr.f32.mxu0 %v8677_v16  ;;  %12652 = vmatpush3.bf16.msra.mxu0 %v12649_v40 }
 0x995   :  { %12654 = vmatprep.subr.bf16.mxu0 %v12653_v8 }
 0x997   :  { %11700 = vmatmul.mubr.f32.gmra.mrb[116].mxu0 %v8687_v54 }
 0x998   :  { %11702 = vmatprep.mubr.f32.mxu0 %v8697_v60  ;;  %12656 = vmatpush3.bf16.msra.mxu0 %v12653_v8 }
 0x999   :  { %12658 = vmatprep.subr.bf16.mxu0 %v12657_v29 }
 0x99b   :  { %11703 = vmatmul.mubr.f32.gmra.mrb[118].mxu0 %v8707_v24 }
 0x99c   :  { %12660 = vmatpush3.bf16.msra.mxu0 %v12657_v29  ;;  %11731 = vmatprep.mubr.f32.mxu0 %v16563_v44 }
 0x99d   :  { %12662 = vmatprep.subr.bf16.mxu0 %v12661_v49 }
 0x9a0   :  { %12664 = vmatpush3.bf16.msra.mxu0 %v12661_v49 }
 0x9a1   :  { %12666 = vmatprep.subr.bf16.mxu0 %v12665_v9 }
 0x9a4   :  { %12668 = vmatpush3.bf16.msra.mxu0 %v12665_v9 }
 0x9a5   :  { %11729 = vmatprep.subr.mxu0 %v16498_v51 }
 0x9a8   :  { %11730 = vmatpush3.msra.mxu0 %v16498_v51 }
 0x9a9   :  { %11732 = vmatmul.mubr.f32.vlgmr.msra.gmra.mrb[112].mxu0 %v16570_v61  ;;  %12670 = vmatprep.subr.bf16.mxu0 %v16362_v26 }
 0x9aa   :  { %11734 = vmatprep.mubr.f32.mxu0 %v16583_v20  ;;  %12672 = vmatpush3.bf16.msra.mxu0 %v16362_v26  ;;  %v9469_v26 = vld [vmem:[%s16898_s10 + $0x8] sm:$0x3] }
 0x9ab   :  { %12674 = vmatprep.subr.bf16.mxu0 %v16386_v62  ;;  %v9496_v1 = vsel %vm6997_vm13, %v9469_v26, 0 }
 0x9ad   :  { %11735 = vmatmul.mubr.f32.gmra.mrb[114].mxu0 %v16595_v15 }
 0x9ae   :  { %11737 = vmatprep.mubr.f32.mxu0 %v16609_v10  ;;  %12676 = vmatpush3.bf16.msra.mxu0 %v16386_v62  ;;  %v9502_v62 = vand.u32 4294901760, %v9496_v1 }
 0x9af   :  { %12678 = vmatprep.subr.bf16.mxu0 %v16416_v19 }
 0x9b0   :  { %v16745_v30 = vpack.c.bf16 %v9502_v62, %v9499_v37  ;;  %v9654_v45 = vsub.f32 %v9496_v1, %v9502_v62 }
 0x9b1   :  { %11738 = vmatmul.mubr.f32.gmra.mrb[116].mxu0 %v16623_v38 }
 0x9b2   :  { %11740 = vmatprep.mubr.f32.mxu0 %v16637_v25  ;;  %12680 = vmatpush3.bf16.msra.mxu0 %v16416_v19  ;;  %v9648_v19 = vand.u32 4294901760, %v9647_v2  ;;  %v9655_v56 = vand.u32 4294901760, %v9654_v45 }
 0x9b3   :  { %12682 = vmatprep.subr.bf16.mxu0 %v16457_v52  ;;  %12694 = vmatprep.subr.bf16.mxu1 %v16745_v30 }
 0x9b4   :  { %12696 = vmatpush3.bf16.msra.mxu1 %v16745_v30  ;;  %v9649_v36 = vsub.f32 %v9647_v2, %v9648_v19  ;;  %v16754_v11 = vpack.c.bf16 %v9655_v56, %v9648_v19 }
 0x9b5   :  { %11741 = vmatmul.mubr.f32.gmra.mrb[118].mxu0 %v16646_v4 }
 0x9b6   :  { %12684 = vmatpush3.bf16.msra.mxu0 %v16457_v52  ;;  %11769 = vmatprep.mubr.f32.mxu0 %v16563_v44  ;;  %v9656_v52 = vsub.f32 %v9654_v45, %v9655_v56  ;;  %v9650_v41 = vand.u32 4294901760, %v9649_v36 }
 0x9b7   :  { %12686 = vmatprep.subr.bf16.mxu0 %v16508_v27 }
 0x9b8   :  { %v9657_v33 = vand.u32 4294901760, %v9656_v52 }
 0x9ba   :  { %12688 = vmatpush3.bf16.msra.mxu0 %v16508_v27 }
 0x9bb   :  { %12690 = vmatprep.subr.bf16.mxu0 %v16520_v12 }
 0x9be   :  { %12692 = vmatpush3.bf16.msra.mxu0 %v16520_v12  ;;  %v16752_v12 = vpack.c.bf16 %v9654_v45, %v9647_v2 }
 0x9bf   :  { %11767 = vmatprep.subr.mxu0 %v16487_v7 }
 0x9c2   :  { %11768 = vmatpush3.msra.mxu0 %v16487_v7  ;;  %v16749_v7 = vpack.c.bf16 %v9657_v33, %v9650_v41 }
 0x9c3   :  { %11770 = vmatmul.mubr.f32.vlgmr.msra.gmra.mrb[112].mxu0 %v16570_v61 }
 0x9c4   :  { %11772 = vmatprep.mubr.f32.mxu0 %v16583_v20  ;;  %12698 = vmatprep.subr.bf16.mxu1 %v16749_v7 }
 0x9c7   :  { %11773 = vmatmul.mubr.f32.gmra.mrb[114].mxu0 %v16595_v15  ;;  %v10274_v15 = vld [vmem:[%s16899_s9] ss:$0 sm:$0xff] }
 0x9c8   :  { %11775 = vmatprep.mubr.f32.mxu0 %v16609_v10 }
 0x9cb   :  { %11776 = vmatmul.mubr.f32.gmra.mrb[116].mxu0 %v16623_v38 }
 0x9cc   :  { %11778 = vmatprep.mubr.f32.mxu0 %v16637_v25 }
 0x9cf   :  { %11779 = vmatmul.mubr.f32.gmra.mrb[118].mxu0 %v16646_v4 }
 0xa34   :  { %v11581_v51 = vpop.f32.mrb[24].mxu1 }
 0xa35   :  { %v8641_v27 = vpop.f32.mrb[25].mxu1  ;;  %v8652_v21 = vadd.f32 %v11581_v51, %v10274_v15 }
 0xa36   :  { %v8642_v42 = vadd.f32 %v10274_v15, %v8641_v27 }
 0xa3c   :  { %v11584_v44 = vpop.f32.mrb[26].mxu1 }
 0xa3d   :  { %v8661_v61 = vpop.f32.mrb[27].mxu1  ;;  %v8672_v16 = vadd.f32 %v11584_v44, %v10274_v15 }
 0xa3e   :  { %v8662_v6 = vadd.f32 %v10274_v15, %v8661_v61 }
 0xa44   :  { %v11587_v13 = vpop.f32.mrb[28].mxu1 }
 0xa45   :  { %v8681_v5 = vpop.f32.mrb[29].mxu1  ;;  %v8692_v63 = vadd.f32 %v11587_v13, %v10274_v15 }
 0xa46   :  { %v8682_v60 = vadd.f32 %v10274_v15, %v8681_v5 }
 0xa4c   :  { %v11590_v57 = vpop.f32.mrb[30].mxu1 }
 0xa4d   :  { %v8701_v20 = vpop.f32.mrb[31].mxu1  ;;  %v8712_v58 = vadd.f32 %v11590_v57, %v10274_v15 }
 0xa4e   :  { %v8702_v22 = vadd.f32 %v10274_v15, %v8701_v20 }
 0xa96   :  { %v11771_v10 = vpop.f32.mrb[112].mxu0 }
 0xa97   :  { %v12734_v43 = vadd.f32 %v11771_v10, %v8652_v21  ;;  %v9414_v53 = vpop.f32.mrb[113].mxu0 }
 0xa98   :  { %v12736_v38 = vadd.f32 %v9414_v53, %v8642_v42 }
 0xa99   :  { %v9461_v59 = vmax.f32 %v12734_v43, 0.0 }
 0xa9a   :  { %v9460_v28 = vmax.f32 %v12736_v38, 0.0  ;;  %v11774_v18 = vpop.f32.mrb[114].mxu0 }
 0xa9b   :  { %v9475_v25 = vsel %vm9470_vm1, %v9461_v59, 0  ;;  %v12738_v0 = vadd.f32 %v11774_v18, %v8672_v16  ;;  %v9426_v54 = vpop.f32.mrb[115].mxu0 }
 0xa9c   :  { %v16760_v47 = vand.u32 4294901760, %v9475_v25  ;;  %v9472_v23 = vsel %vm9470_vm1, %v9460_v28, 0  ;;  %v12740_v3 = vadd.f32 %v9426_v54, %v8662_v6 }
 0xa9d   :  { %v16763_v4 = vand.u32 4294901760, %v9472_v23  ;;  %v9463_v35 = vmax.f32 %v12738_v0, 0.0 }
 0xa9e   :  { %v16766_v48 = vsub.f32 %v9475_v25, %v16760_v47  ;;  %v9462_v17 = vmax.f32 %v12740_v3, 0.0  ;;  %v11777_v55 = vpop.f32.mrb[116].mxu0 }
 0xa9f   :  { %v16769_v24 = vsub.f32 %v9472_v23, %v16763_v4  ;;  %v9481_v46 = vsel %vm9470_vm1, %v9463_v35, 0  ;;  %v12742_v31 = vadd.f32 %v11777_v55, %v8692_v63  ;;  %v9438_v34 = vpop.f32.mrb[117].mxu0 }
 0xaa0   :  { %v9577_v40 = vand.u32 4294901760, %v16766_v48  ;;  %v16773_v8 = vand.u32 4294901760, %v9481_v46  ;;  %v9478_v32 = vsel %vm9470_vm1, %v9462_v17, 0  ;;  %v12744_v29 = vadd.f32 %v9438_v34, %v8682_v60 }
 0xaa1   :  { %v16776_v39 = vand.u32 4294901760, %v9478_v32  ;;  %v9465_v49 = vmax.f32 %v12742_v31, 0.0  ;;  %v9567_v14 = vand.u32 4294901760, %v16769_v24 }
 0xaa2   :  { %v9578_v9 = vsub.f32 %v16766_v48, %v9577_v40  ;;  %v16783_v26 = vsub.f32 %v9481_v46, %v16773_v8  ;;  %v9464_v50 = vmax.f32 %v12744_v29, 0.0  ;;  %v11780_v1 = vpop.f32.mrb[118].mxu0 }
 0xaa3   :  { %v16786_v37 = vsub.f32 %v9478_v32, %v16776_v39  ;;  %v9487_v62 = vsel %vm9470_vm1, %v9465_v49, 0  ;;  %v12746_v2 = vadd.f32 %v11780_v1, %v8712_v58  ;;  %v9450_v45 = vpop.f32.mrb[119].mxu0  ;;  %v9568_v19 = vsub.f32 %v16769_v24, %v9567_v14 }
 0xaa4   :  { %v16792_v56 = vand.u32 4294901760, %v9487_v62  ;;  %v9484_v36 = vsel %vm9470_vm1, %v9464_v50, 0  ;;  %v12748_v52 = vadd.f32 %v9450_v45, %v8702_v22  ;;  %v9579_v44 = vand.u32 4294901760, %v9578_v9 }
 0xaa5   :  { %v16795_v41 = vand.u32 4294901760, %v9484_v36  ;;  %v9467_v33 = vmax.f32 %v12746_v2, 0.0  ;;  %v9569_v51 = vand.u32 4294901760, %v9568_v19  ;;  %v9587_v27 = vand.u32 4294901760, %v16786_v37 }
 0xaa6   :  { %v16799_v61 = vsub.f32 %v9487_v62, %v16792_v56  ;;  %v9466_v13 = vmax.f32 %v12748_v52, 0.0  ;;  %v9597_v5 = vand.u32 4294901760, %v16783_v26 }
 0xaa7   :  { %v9606_v57 = vsub.f32 %v9484_v36, %v16795_v41  ;;  %v9493_v20 = vsel %vm9470_vm1, %v9467_v33, 0  ;;  %11785 = vmatprep.mubr.f32.mxu1 %v9569_v51  ;;  %v9588_v15 = vsub.f32 %v16786_v37, %v9587_v27 }
 0xaa8   :  { %v16805_v21 = vand.u32 4294901760, %v9493_v20  ;;  %v9490_v42 = vsel %vm9470_vm1, %v9466_v13, 0  ;;  %11786 = vmatmul.mubr.f32.vlgmr.msra.gmra.mrb[32].mxu1 %v9579_v44  ;;  %v9598_v10 = vsub.f32 %v16783_v26, %v9597_v5  ;;  %v9617_v43 = vand.u32 4294901760, %v16799_v61 }
 0xaa9   :  { %v16810_v53 = vand.u32 4294901760, %v9490_v42  ;;  %12700 = vmatpush3.bf16.msra.mxu1 %v16749_v7  ;;  %v9589_v38 = vand.u32 4294901760, %v9588_v15  ;;  %v9607_v16 = vand.u32 4294901760, %v9606_v57 }
 0xaaa   :  { %v9636_v59 = vsub.f32 %v9493_v20, %v16805_v21  ;;  %v9599_v6 = vand.u32 4294901760, %v9598_v10  ;;  %v9618_v28 = vsub.f32 %v16799_v61, %v9617_v43  ;;  %12702 = vmatprep.subr.bf16.mxu1 %v16752_v12 }
 0xaab   :  { %v9626_v18 = vsub.f32 %v9490_v42, %v16810_v53  ;;  %11788 = vmatprep.mubr.f32.mxu1 %v9589_v38  ;;  %v9608_v25 = vsub.f32 %v9606_v57, %v9607_v16 }
 0xaac   :  { %11789 = vmatmul.mubr.f32.gmra.mrb[34].mxu1 %v9599_v6  ;;  %v9637_v0 = vand.u32 4294901760, %v9636_v59  ;;  %v9619_v3 = vand.u32 4294901760, %v9618_v28 }
 0xaad   :  { %v9609_v54 = vand.u32 4294901760, %v9608_v25  ;;  %v9627_v23 = vand.u32 4294901760, %v9626_v18 }
 0xaae   :  { %v9638_v63 = vsub.f32 %v9636_v59, %v9637_v0 }
 0xaaf   :  { %11791 = vmatprep.mubr.f32.mxu1 %v9609_v54  ;;  %v9628_v7 = vsub.f32 %v9626_v18, %v9627_v23 }
 0xab0   :  { %11792 = vmatmul.mubr.f32.gmra.mrb[36].mxu1 %v9619_v3  ;;  %v9639_v60 = vand.u32 4294901760, %v9638_v63 }
 0xab1   :  { %v9629_v35 = vand.u32 4294901760, %v9628_v7 }
 0xab3   :  { %11794 = vmatprep.mubr.f32.mxu1 %v9629_v35 }
 0xab4   :  { %11795 = vmatmul.mubr.f32.gmra.mrb[38].mxu1 %v9639_v60 }
 0xab5   :  { %11801 = vmatprep.mubr.f32.mxu1 %v16763_v4 }
 0xab8   :  { %11802 = vmatmul.mubr.f32.vlgmr.msra.gmra.mrb[32].mxu1 %v16760_v47 }
 0xab9   :  { %11804 = vmatprep.mubr.f32.mxu1 %v16776_v39  ;;  %12704 = vmatpush3.bf16.msra.mxu1 %v16752_v12 }
 0xaba   :  { %12706 = vmatprep.subr.bf16.mxu1 %v16745_v30 }
 0xabc   :  { %11805 = vmatmul.mubr.f32.gmra.mrb[34].mxu1 %v16773_v8 }
 0xabd   :  { %11807 = vmatprep.mubr.f32.mxu1 %v16795_v41 }
 0xac0   :  { %11808 = vmatmul.mubr.f32.gmra.mrb[36].mxu1 %v16792_v56 }
 0xac1   :  { %11810 = vmatprep.mubr.f32.mxu1 %v16810_v53 }
 0xac4   :  { %11811 = vmatmul.mubr.f32.gmra.mrb[38].mxu1 %v16805_v21 }
 0xac5   :  { %11817 = vmatprep.mubr.f32.mxu1 %v16769_v24 }
 0xac8   :  { %11818 = vmatmul.mubr.f32.vlgmr.msra.gmra.mrb[32].mxu1 %v16766_v48 }
 0xac9   :  { %11820 = vmatprep.mubr.f32.mxu1 %v16786_v37  ;;  %12708 = vmatpush3.bf16.msra.mxu1 %v16745_v30 }
 0xaca   :  { %12710 = vmatprep.subr.bf16.mxu1 %v16754_v11 }
 0xacc   :  { %11821 = vmatmul.mubr.f32.gmra.mrb[34].mxu1 %v16783_v26 }
 0xacd   :  { %11823 = vmatprep.mubr.f32.mxu1 %v9606_v57 }
 0xad0   :  { %11824 = vmatmul.mubr.f32.gmra.mrb[36].mxu1 %v16799_v61 }
 0xad1   :  { %11826 = vmatprep.mubr.f32.mxu1 %v9626_v18 }
 0xad4   :  { %11827 = vmatmul.mubr.f32.gmra.mrb[38].mxu1 %v9636_v59 }
 0xad5   :  { %11833 = vmatprep.mubr.f32.mxu1 %v9567_v14 }
 0xad8   :  { %11834 = vmatmul.mubr.f32.vlgmr.msra.gmra.mrb[32].mxu1 %v9577_v40 }
 0xad9   :  { %11836 = vmatprep.mubr.f32.mxu1 %v9587_v27  ;;  %12712 = vmatpush3.bf16.msra.mxu1 %v16754_v11 }
 0xada   :  { %12714 = vmatprep.subr.bf16.mxu1 %v16745_v30 }
 0xadc   :  { %11837 = vmatmul.mubr.f32.gmra.mrb[34].mxu1 %v9597_v5 }
 0xadd   :  { %11839 = vmatprep.mubr.f32.mxu1 %v9607_v16 }
 0xae0   :  { %11840 = vmatmul.mubr.f32.gmra.mrb[36].mxu1 %v9617_v43 }
 0xae1   :  { %11842 = vmatprep.mubr.f32.mxu1 %v9627_v23 }
 0xae4   :  { %11843 = vmatmul.mubr.f32.gmra.mrb[38].mxu1 %v9637_v0 }
 0xae5   :  { %11849 = vmatprep.mubr.f32.mxu1 %v16763_v4 }
 0xae8   :  { %11850 = vmatmul.mubr.f32.vlgmr.msra.gmra.mrb[32].mxu1 %v16760_v47 }
 0xae9   :  { %11852 = vmatprep.mubr.f32.mxu1 %v16776_v39  ;;  %12716 = vmatpush3.bf16.msra.mxu1 %v16745_v30 }
 0xaec   :  { %11853 = vmatmul.mubr.f32.gmra.mrb[34].mxu1 %v16773_v8 }
 0xaed   :  { %11855 = vmatprep.mubr.f32.mxu1 %v16795_v41 }
 0xaf0   :  { %11856 = vmatmul.mubr.f32.gmra.mrb[36].mxu1 %v16792_v56 }
 0xaf1   :  { %11858 = vmatprep.mubr.f32.mxu1 %v16810_v53 }
 0xaf4   :  { %11859 = vmatmul.mubr.f32.gmra.mrb[38].mxu1 %v16805_v21 }
 0xaf5   :  { %11865 = vmatprep.mubr.f32.mxu1 %v16763_v4 }
 0xaf8   :  { %11866 = vmatmul.mubr.f32.vlgmr.msra.gmra.mrb[32].mxu1 %v16760_v47 }
 0xaf9   :  { %11868 = vmatprep.mubr.f32.mxu1 %v16776_v39 }
 0xafc   :  { %11869 = vmatmul.mubr.f32.gmra.mrb[34].mxu1 %v16773_v8 }
 0xafd   :  { %11871 = vmatprep.mubr.f32.mxu1 %v16795_v41 }
 0xb00   :  { %11872 = vmatmul.mubr.f32.gmra.mrb[36].mxu1 %v16792_v56 }
 0xb01   :  { %11874 = vmatprep.mubr.f32.mxu1 %v16810_v53 }
 0xb04   :  { %11875 = vmatmul.mubr.f32.gmra.mrb[38].mxu1 %v16805_v21 }
 0xbcb   :  { %v11867_v30 = vpop.f32.mrb[32].mxu1 }
 0xbcc   :  { %10260 = vst.msk [vmem:[%s16900_s11 + $0x8] sm:$0xff] %vm10258_vm2, %v11867_v30  ;;  %v10212_v12 = vpop.f32.mrb[33].mxu1 }
 0xbcd   :  { %10259 = vst.msk [vmem:[%s16900_s11] sm:$0xff] %vm10258_vm2, %v10212_v12 }
 0xbcf   :  { %v11870_v11 = vpop.f32.mrb[34].mxu1 }
 0xbd0   :  { %10262 = vst.msk [vmem:[%s16900_s11 + $0x18] sm:$0xff] %vm10258_vm2, %v11870_v11  ;;  %v10224_v47 = vpop.f32.mrb[35].mxu1 }
 0xbd1   :  { %10261 = vst.msk [vmem:[%s16900_s11 + $0x10] sm:$0xff] %vm10258_vm2, %v10224_v47 }
 0xbd3   :  { %v11873_v4 = vpop.f32.mrb[36].mxu1 }
 0xbd4   :  { %10264 = vst.msk [vmem:[%s16900_s11 + $0x28] sm:$0xff] %vm10258_vm2, %v11873_v4  ;;  %v10236_v48 = vpop.f32.mrb[37].mxu1 }
 0xbd5   :  { %10263 = vst.msk [vmem:[%s16900_s11 + $0x20] sm:$0xff] %vm10258_vm2, %v10236_v48 }
 0xbd7   :  { %v11876_v17 = vpop.f32.mrb[38].mxu1 }
 0xbd8   :  { %10266 = vst.msk [vmem:[%s16900_s11 + $0x38] sm:$0xff] %vm10258_vm2, %v11876_v17  ;;  %v10248_v55 = vpop.f32.mrb[39].mxu1 }
 0xbd9   :  { %10265 = vst.msk [vmem:[%s16900_s11 + $0x30] sm:$0xff] %vm10258_vm2, %v10248_v55 }

</bundles_post_ra>
